<compile_context>
chip_gen: v7x
topology: tpu7x:2x2x1
jax: 0.10.0
libtpu: 0.0.40
codegen_flags: <defaults>
</compile_context>

<pallas_src>
import functools

import jax
import jax.numpy as jnp
from jax.experimental import pallas as pl
from jax.experimental.pallas import tpu as pltpu

D_PAD = 128            # lane-padded feature width (all feature dims <= 128 in this demo)
TILE_N = 256           # node tile (dst rows / K axis of the aggregation); 256-512 in production
TILE_E = 512           # edge tile (lane axis of the decoder -> lane-dense output)
VMEM_LIMIT = 48 * 1024 * 1024   # <= ~48 MiB keeps v7x happy; raise toward 96 MiB on v5e/v6e


def _round_up(x, m):
    return ((x + m - 1) // m) * m


# ----------------------------------------------------------------------------------------------
# Fused SAGEConv layer kernel: mean-aggregation K-loop + both weight matmuls + bias (+ReLU)
# ----------------------------------------------------------------------------------------------
def _sage_kernel(a_ref, xs_ref, xd_ref, invdeg_ref, wl_ref, wr_ref, b_ref,
                 o_ref, acc_ref, *, apply_relu, transpose_out):
    k = pl.program_id(1)

    @pl.when(k == 0)
    def _init():
        acc_ref[...] = jnp.zeros_like(acc_ref)

    # bf16 A tile x bf16 X_src tile -> f32 accumulate: native bf16 MXU path, no astype copy.
    acc_ref[...] += jnp.dot(a_ref[...], xs_ref[...], preferred_element_type=jnp.float32)

    @pl.when(k == pl.num_programs(1) - 1)
    def _epilogue():
        # Exact precomputed 1/deg (f32) -> mean aggregation; cast once to bf16 for the MXU.
        agg = (acc_ref[...] * invdeg_ref[...]).astype(jnp.bfloat16)
        out = (jnp.dot(agg, wl_ref[...], preferred_element_type=jnp.float32)
               + jnp.dot(xd_ref[...], wr_ref[...], preferred_element_type=jnp.float32)
               + b_ref[...])
        if apply_relu:
            out = jnp.maximum(out, 0.0)
        if transpose_out:
            # Emit z^T so the decoder gather needs no separate XLA transpose pass.
            o_ref[...] = out.T.astype(o_ref.dtype)
        else:
            o_ref[...] = out.astype(o_ref.dtype)


def sage_layer(a_bf16, inv_deg, x_src, x_dst, wl, wr, b, *, relu, transpose_out=False):
    n_dst, n_src = a_bf16.shape
    grid = (n_dst // TILE_N, n_src // TILE_N)
    kernel = functools.partial(_sage_kernel, apply_relu=relu, transpose_out=transpose_out)
    if transpose_out:
        out_shape = jax.ShapeDtypeStruct((D_PAD, n_dst), jnp.bfloat16)
        out_spec = pl.BlockSpec((D_PAD, TILE_N), lambda i, k: (0, i))
    else:
        out_shape = jax.ShapeDtypeStruct((n_dst, D_PAD), jnp.bfloat16)
        out_spec = pl.BlockSpec((TILE_N, D_PAD), lambda i, k: (i, 0))
    return pl.pallas_call(
        kernel,
        out_shape=out_shape,
        grid_spec=pltpu.PrefetchScalarGridSpec(
            num_scalar_prefetch=0,
            grid=grid,
            in_specs=[
                pl.BlockSpec((TILE_N, TILE_N), lambda i, k: (i, k)),   # A (bf16 edge counts)
                pl.BlockSpec((TILE_N, D_PAD), lambda i, k: (k, 0)),    # X_src (bf16)
                pl.BlockSpec((TILE_N, D_PAD), lambda i, k: (i, 0)),    # X_dst (bf16)
                pl.BlockSpec((TILE_N, 1), lambda i, k: (i, 0)),        # 1/deg (f32, exact)
                pl.BlockSpec((D_PAD, D_PAD), lambda i, k: (0, 0)),     # W_l (bf16)
                pl.BlockSpec((D_PAD, D_PAD), lambda i, k: (0, 0)),     # W_r (bf16)
                pl.BlockSpec((1, D_PAD), lambda i, k: (0, 0)),         # bias (f32)
            ],
            out_specs=out_spec,
            scratch_shapes=[pltpu.VMEM((TILE_N, D_PAD), jnp.float32)],  # f32 accumulator
        ),
        compiler_params=pltpu.CompilerParams(
            dimension_semantics=("parallel", "arbitrary"),
            vmem_limit_bytes=VMEM_LIMIT,
        ),
    )(a_bf16, x_src, x_dst, inv_deg, wl, wr, b)


# ----------------------------------------------------------------------------------------------
# Fully fused EdgeDecoder kernel (transposed orientation: edges on the lane axis)
# ----------------------------------------------------------------------------------------------
def _decoder_kernel(guT_ref, giT_ref, wuT_ref, wiT_ref, b1_ref,
                    w2T_ref, b2_ref, w3T_ref, b3_ref, w4_ref, b4_ref, o_ref):
    # lin1 with split user/item weights: no [E, 2D] concat ever materializes.
    h = (jnp.dot(wuT_ref[...], guT_ref[...], preferred_element_type=jnp.float32)
         + jnp.dot(wiT_ref[...], giT_ref[...], preferred_element_type=jnp.float32)
         + b1_ref[...])
    h = jnp.maximum(h, 0.0).astype(jnp.bfloat16)
    h = jnp.maximum(jnp.dot(w2T_ref[...], h, preferred_element_type=jnp.float32)
                    + b2_ref[...], 0.0).astype(jnp.bfloat16)
    h = jnp.maximum(jnp.dot(w3T_ref[...], h, preferred_element_type=jnp.float32)
                    + b3_ref[...], 0.0)
    # lin4: sublane reduce -> (1, TILE_E) lane-dense row of logits.
    logit = jnp.sum(h * w4_ref[...], axis=0, keepdims=True) + b4_ref[...]
    p = 1.0 / (1.0 + jnp.exp(-logit))          # exact f32 sigmoid (exp on the EUP)
    o_ref[...] = (p * 4.0 + 1.0).astype(o_ref.dtype)


def edge_decoder(guT, giT, dec):
    dp, e_pad = guT.shape
    out = pl.pallas_call(
        _decoder_kernel,
        out_shape=jax.ShapeDtypeStruct((1, e_pad), jnp.float32),
        grid_spec=pltpu.PrefetchScalarGridSpec(
            num_scalar_prefetch=0,
            grid=(e_pad // TILE_E,),
            in_specs=[
                pl.BlockSpec((dp, TILE_E), lambda e: (0, e)),    # z_user[row]^T  (bf16 edge tile)
                pl.BlockSpec((dp, TILE_E), lambda e: (0, e)),    # z_item[col]^T  (bf16 edge tile)
                pl.BlockSpec((D_PAD, D_PAD), lambda e: (0, 0)),  # W1_user^T (bf16)
                pl.BlockSpec((D_PAD, D_PAD), lambda e: (0, 0)),  # W1_item^T (bf16)
                pl.BlockSpec((D_PAD, 1), lambda e: (0, 0)),      # b1 (f32)
                pl.BlockSpec((D_PAD, D_PAD), lambda e: (0, 0)),  # W2^T (bf16)
                pl.BlockSpec((D_PAD, 1), lambda e: (0, 0)),      # b2
                pl.BlockSpec((D_PAD, D_PAD), lambda e: (0, 0)),  # W3^T (bf16)
                pl.BlockSpec((D_PAD, 1), lambda e: (0, 0)),      # b3
                pl.BlockSpec((D_PAD, 1), lambda e: (0, 0)),      # w4 (f32)
                pl.BlockSpec((1, 1), lambda e: (0, 0)),          # b4
            ],
            out_specs=pl.BlockSpec((1, TILE_E), lambda e: (0, e)),
        ),
        compiler_params=pltpu.CompilerParams(
            dimension_semantics=("parallel",),
            vmem_limit_bytes=VMEM_LIMIT,
        ),
    )(guT, giT, dec["wuT"], dec["wiT"], dec["b1"], dec["w2T"], dec["b2"],
      dec["w3T"], dec["b3"], dec["w4"], dec["b4"])
    return out.reshape(-1)


# ----------------------------------------------------------------------------------------------
# Parameter construction / padding (done once, "free" at runtime)
# ----------------------------------------------------------------------------------------------
def init_params(key, f_user, f_item, n_factors, hidden):
    keys = iter(jax.random.split(key, 24))

    def lin(fan_in, fan_out):
        s = 1.0 / (fan_in ** 0.5)
        w = jax.random.uniform(next(keys), (fan_in, fan_out), jnp.float32, -s, s)
        b = jax.random.uniform(next(keys), (fan_out,), jnp.float32, -s, s)
        return w, b

    p = {}
    for name, f_src, f_dst in [("conv1_rates", f_user, f_item),
                               ("conv1_rev", f_item, f_user),
                               ("conv2_rates", n_factors, n_factors),
                               ("conv2_rev", n_factors, n_factors)]:
        wl, b = lin(f_src, n_factors)
        wr, _ = lin(f_dst, n_factors)
        p[name] = {"wl": wl, "wr": wr, "b": b}
    p["lin1_w"], p["lin1_b"] = lin(2 * n_factors, hidden)
    p["lin2_w"], p["lin2_b"] = lin(hidden, hidden)
    p["lin3_w"], p["lin3_b"] = lin(hidden, hidden)
    p["lin4_w"], p["lin4_b"] = lin(hidden, 1)
    return p


def _pad2(w):
    out = jnp.zeros((D_PAD, D_PAD), jnp.float32)
    return out.at[: w.shape[0], : w.shape[1]].set(w)


def _pad_row(b):
    out = jnp.zeros((1, D_PAD), jnp.float32)
    return out.at[0, : b.shape[0]].set(b)


def _pad_col(b):
    out = jnp.zeros((D_PAD, 1), jnp.float32)
    return out.at[: b.shape[0], 0].set(b)


def prepare_padded_params(p, n_factors):
    pp = {}
    for name in ["conv1_rates", "conv1_rev", "conv2_rates", "conv2_rev"]:
        c = p[name]
        pp[name] = {"wl": _pad2(c["wl"]).astype(jnp.bfloat16),
                    "wr": _pad2(c["wr"]).astype(jnp.bfloat16),
                    "b": _pad_row(c["b"])}
    pp["dec"] = {
        "wuT": _pad2(p["lin1_w"][:n_factors]).T.astype(jnp.bfloat16),
        "wiT": _pad2(p["lin1_w"][n_factors:]).T.astype(jnp.bfloat16),
        "b1": _pad_col(p["lin1_b"]),
        "w2T": _pad2(p["lin2_w"]).T.astype(jnp.bfloat16),
        "b2": _pad_col(p["lin2_b"]),
        "w3T": _pad2(p["lin3_w"]).T.astype(jnp.bfloat16),
        "b3": _pad_col(p["lin3_b"]),
        "w4": _pad_col(p["lin4_w"][:, 0]),
        "b4": p["lin4_b"].reshape(1, 1).astype(jnp.float32),
    }
    return pp


# ----------------------------------------------------------------------------------------------
# Static graph preprocessing — hoisted out of the forward, computed once.
# ----------------------------------------------------------------------------------------------
def prepare_graph(x_user, x_item, edge_index_rates, edge_index_rev, n_user, n_item):
    nu_p = _round_up(n_user, TILE_N)
    ni_p = _round_up(n_item, TILE_N)

    # Dense unnormalized adjacency (edge multiplicity preserved -> matches scatter-mean).
    su, di = edge_index_rates
    a_rates = jnp.zeros((ni_p, nu_p), jnp.float32).at[di, su].add(1.0)
    si, du = edge_index_rev
    a_rev = jnp.zeros((nu_p, ni_p), jnp.float32).at[du, si].add(1.0)
    # Exact 1/deg, computed once in f32 (no approx reciprocal in the kernel).
    inv_deg_i = 1.0 / jnp.maximum(jnp.sum(a_rates, axis=1, keepdims=True), 1.0)
    inv_deg_u = 1.0 / jnp.maximum(jnp.sum(a_rev, axis=1, keepdims=True), 1.0)
    # bf16 edge counts are exact only for multiplicity <= 256 (one-time check at prep).
    assert float(jnp.max(a_rates)) <= 256.0 and float(jnp.max(a_rev)) <= 256.0

    # Lane-pad node features and cast to bf16 (MXU-native operand).
    xu = jnp.zeros((nu_p, D_PAD), jnp.float32).at[:n_user, : x_user.shape[1]].set(x_user)
    xi = jnp.zeros((ni_p, D_PAD), jnp.float32).at[:n_item, : x_item.shape[1]].set(x_item)

    return {
        "a_rates": a_rates.astype(jnp.bfloat16),
        "a_rev": a_rev.astype(jnp.bfloat16),
        "inv_deg_i": inv_deg_i,
        "inv_deg_u": inv_deg_u,
        "xu": xu.astype(jnp.bfloat16),
        "xi": xi.astype(jnp.bfloat16),
    }


# ----------------------------------------------------------------------------------------------
# Full model forward (eval mode)
# ----------------------------------------------------------------------------------------------
def model_forward(pp, graph, edge_label_index):
    c1r, c1v = pp["conv1_rates"], pp["conv1_rev"]
    c2r, c2v = pp["conv2_rates"], pp["conv2_rev"]

    # Encoder (to_hetero(sum): single incoming relation per node type -> no cross-type sum).
    h_i = sage_layer(graph["a_rates"], graph["inv_deg_i"], graph["xu"], graph["xi"],
                     c1r["wl"], c1r["wr"], c1r["b"], relu=True)
    h_u = sage_layer(graph["a_rev"], graph["inv_deg_u"], graph["xi"], graph["xu"],
                     c1v["wl"], c1v["wr"], c1v["b"], relu=True)
    # Layer 2 emits z^T directly so the decoder gather needs no separate XLA transpose.
    z_iT = sage_layer(graph["a_rates"], graph["inv_deg_i"], h_u, h_i,
                      c2r["wl"], c2r["wr"], c2r["b"], relu=False, transpose_out=True)
    z_uT = sage_layer(graph["a_rev"], graph["inv_deg_u"], h_i, h_u,
                      c2v["wl"], c2v["wr"], c2v["b"], relu=False, transpose_out=True)

    # Decoder. dropout_edge(p=0.02, training=False) is the identity, mask = all True.
    row, col = edge_label_index
    n_edges = row.shape[0]
    e_pad = _round_up(n_edges, TILE_E)
    row_p = jnp.zeros((e_pad,), row.dtype).at[:n_edges].set(row)
    col_p = jnp.zeros((e_pad,), col.dtype).at[:n_edges].set(col)
    guT = jnp.take(z_uT, row_p, axis=1)      # (D_PAD, e_pad) bf16, single gather pass
    giT = jnp.take(z_iT, col_p, axis=1)      # (D_PAD, e_pad) bf16

    out = edge_decoder(guT, giT, pp["dec"])[:n_edges]
    mask = jnp.ones((n_edges,), dtype=bool)
    return out, mask


# ----------------------------------------------------------------------------------------------
# Pure-JAX reference (unpadded, f32, exact division / sigmoid) for validation
# ----------------------------------------------------------------------------------------------
def ref_forward(p, xu, xi, a_rates, a_rev, row, col):
    deg_i = jnp.maximum(jnp.sum(a_rates, axis=1, keepdims=True), 1.0)
    deg_u = jnp.maximum(jnp.sum(a_rev, axis=1, keepdims=True), 1.0)

    def sage(a, deg, xs, xd, c, relu):
        out = ((a @ xs) / deg) @ c["wl"] + xd @ c["wr"] + c["b"]
        return jnp.maximum(out, 0.0) if relu else out

    h_i = sage(a_rates, deg_i, xu, xi, p["conv1_rates"], True)
    h_u = sage(a_rev, deg_u, xi, xu, p["conv1_rev"], True)
    z_i = sage(a_rates, deg_i, h_u, h_i, p["conv2_rates"], False)
    z_u = sage(a_rev, deg_u, h_i, h_u, p["conv2_rev"], False)

    z = jnp.concatenate([z_u[row], z_i[col]], axis=-1)
    h = jnp.maximum(z @ p["lin1_w"] + p["lin1_b"], 0.0)
    h = jnp.maximum(h @ p["lin2_w"] + p["lin2_b"], 0.0)
    h = jnp.maximum(h @ p["lin3_w"] + p["lin3_b"], 0.0)
    logit = (h @ p["lin4_w"] + p["lin4_b"]).reshape(-1)
    return jax.nn.sigmoid(logit) * 4.0 + 1.0


# ----------------------------------------------------------------------------------------------
if __name__ == "__main__":
    key = jax.random.PRNGKey(0)
    k1, k2, k3, k4, k5, k6, k7 = jax.random.split(key, 7)

    N_USER, N_ITEM = 100, 180
    F_USER, F_ITEM = 24, 40
    N_FACTORS, HIDDEN = 32, 48
    E_MSG, E_LABEL = 600, 300

    x_user = jax.random.normal(k1, (N_USER, F_USER), jnp.float32) * 0.5
    x_item = jax.random.normal(k2, (N_ITEM, F_ITEM), jnp.float32) * 0.5

    src_u = jax.random.randint(k3, (E_MSG,), 0, N_USER)
    dst_i = jax.random.randint(k4, (E_MSG,), 0, N_ITEM)
    edge_index_rates = jnp.stack([src_u, dst_i])          # ('user','rates','item')
    edge_index_rev = jnp.stack([dst_i, src_u])            # ('item','rev_rates','user')

    row = jax.random.randint(k5, (E_LABEL,), 0, N_USER)
    col = jax.random.randint(k6, (E_LABEL,), 0, N_ITEM)
    edge_label_index = jnp.stack([row, col])

    params = init_params(k7, F_USER, F_ITEM, N_FACTORS, HIDDEN)
    padded = prepare_padded_params(params, N_FACTORS)

    # Static graph preprocessing done ONCE (not per forward).
    graph = prepare_graph(x_user, x_item, edge_index_rates, edge_index_rev, N_USER, N_ITEM)

    fwd = jax.jit(model_forward)
    out, mask = fwd(padded, graph, edge_label_index)
    out = jax.block_until_ready(out)

    # Validate against the pure-JAX f32 reference (kernel path is bf16 with f32 accumulation).
    a_rates_ref = jnp.zeros((N_ITEM, N_USER), jnp.float32).at[dst_i, src_u].add(1.0)
    a_rev_ref = a_rates_ref.T
    ref = ref_forward(params, x_user, x_item, a_rates_ref, a_rev_ref, row, col)

    assert out.shape == (E_LABEL,), out.shape
    assert mask.shape == (E_LABEL,) and bool(jnp.all(mask))
    max_err = float(jnp.max(jnp.abs(out - ref)))
    assert max_err < 5e-2, f"max abs error vs reference: {max_err}"

    print("KERNEL_OK")
</pallas_src>

<mosaic_0001>
module attributes {stable_mosaic.version = 11 : i64} {
  func.func @_sage_kernel(%arg0: i32, %arg1: i32, %arg2: memref<256x256xbf16, #tpu.memory_space<vmem>>, %arg3: memref<256x128xbf16, #tpu.memory_space<vmem>>, %arg4: memref<256x128xbf16, #tpu.memory_space<vmem>>, %arg5: memref<256x1xf32, #tpu.memory_space<vmem>>, %arg6: memref<128x128xbf16, #tpu.memory_space<vmem>>, %arg7: memref<128x128xbf16, #tpu.memory_space<vmem>>, %arg8: memref<1x128xf32, #tpu.memory_space<vmem>>, %arg9: memref<256x128xbf16, #tpu.memory_space<vmem>>, %arg10: memref<256x128xf32, #tpu.memory_space<vmem>>) attributes {dimension_semantics = [#tpu.dimension_semantics<parallel>, #tpu.dimension_semantics<arbitrary>], iteration_bounds = array<i64: 1, 1>, scalar_prefetch = 0 : i64, scratch_operands = 1 : i64, tpu.core_type = #tpu.core_type<tc>, window_params = [{transform_indices = @transform_0, window_bounds = array<i64: 256, 256>}, {transform_indices = @transform_1, window_bounds = array<i64: 256, 128>}, {transform_indices = @transform_2, window_bounds = array<i64: 256, 128>}, {transform_indices = @transform_3, window_bounds = array<i64: 256, 1>}, {pipeline_mode = #tpu.pipeline_mode<synchronous>, transform_indices = @transform_4, window_bounds = array<i64: 128, 128>}, {pipeline_mode = #tpu.pipeline_mode<synchronous>, transform_indices = @transform_5, window_bounds = array<i64: 128, 128>}, {pipeline_mode = #tpu.pipeline_mode<synchronous>, transform_indices = @transform_6, window_bounds = array<i64: 1, 128>}, {transform_indices = @transform_7, window_bounds = array<i64: 256, 128>}]} {
    %c0_i32 = arith.constant 0 : i32
    %0 = arith.cmpi eq, %arg1, %c0_i32 : i32
    %1 = arith.extui %0 : i1 to i32
    %c0_i32_0 = arith.constant 0 : i32
    %2 = arith.cmpi ne, %1, %c0_i32_0 : i32
    scf.if %2 {
      %cst_10 = arith.constant 0.000000e+00 : f32
      %12 = vector.broadcast %cst_10 : f32 to vector<256x128xf32>
      %c0_11 = arith.constant 0 : index
      %c0_12 = arith.constant 0 : index
      %13 = vector.load %arg10[%c0_11, %c0_12] : memref<256x128xf32, #tpu.memory_space<vmem>>, vector<256x128xf32>
      tpu.vector_store %arg10[%c0_11, %c0_12], %12 {strides = array<i32>} : memref<256x128xf32, #tpu.memory_space<vmem>>, vector<256x128xf32>,
    } else {
    }
    %c0 = arith.constant 0 : index
    %c0_1 = arith.constant 0 : index
    %3 = vector.load %arg10[%c0, %c0_1] : memref<256x128xf32, #tpu.memory_space<vmem>>, vector<256x128xf32>
    %c0_2 = arith.constant 0 : index
    %c0_3 = arith.constant 0 : index
    %4 = vector.load %arg2[%c0_2, %c0_3] : memref<256x256xbf16, #tpu.memory_space<vmem>>, vector<256x256xbf16>
    %c0_4 = arith.constant 0 : index
    %c0_5 = arith.constant 0 : index
    %5 = vector.load %arg3[%c0_4, %c0_5] : memref<256x128xbf16, #tpu.memory_space<vmem>>, vector<256x128xbf16>
    %cst = arith.constant dense<0.000000e+00> : vector<256x128xf32>
    %6 = tpu.matmul %4, %5, %cst {dimension_numbers = #tpu.dot_dimension_numbers<[1], [0], [0], [1], [0, 0, 1, 1], [], []>} : vector<256x256xbf16>, vector<256x128xbf16>, vector<256x128xf32> -> vector<256x128xf32>
    %7 = arith.addf %3, %6 : vector<256x128xf32>
    %c0_6 = arith.constant 0 : index
    %c0_7 = arith.constant 0 : index
    %8 = vector.load %arg10[%c0_6, %c0_7] : memref<256x128xf32, #tpu.memory_space<vmem>>, vector<256x128xf32>
    tpu.vector_store %arg10[%c0_6, %c0_7], %7 {strides = array<i32>} : memref<256x128xf32, #tpu.memory_space<vmem>>, vector<256x128xf32>,
    %c0_i32_8 = arith.constant 0 : i32
    %9 = arith.cmpi eq, %arg1, %c0_i32_8 : i32
    %10 = arith.extui %9 : i1 to i32
    %c0_i32_9 = arith.constant 0 : i32
    %11 = arith.cmpi ne, %10, %c0_i32_9 : i32
    scf.if %11 {
      %c0_10 = arith.constant 0 : index
      %c0_11 = arith.constant 0 : index
      %12 = vector.load %arg10[%c0_10, %c0_11] : memref<256x128xf32, #tpu.memory_space<vmem>>, vector<256x128xf32>
      %c0_12 = arith.constant 0 : index
      %c0_13 = arith.constant 0 : index
      %13 = vector.load %arg5[%c0_12, %c0_13] : memref<256x1xf32, #tpu.memory_space<vmem>>, vector<256x1xf32>
      %14 = vector.broadcast %13 : vector<256x1xf32> to vector<256x128xf32>
      %15 = arith.mulf %12, %14 : vector<256x128xf32>
      %16 = arith.truncf %15 : vector<256x128xf32> to vector<256x128xbf16>
      %c0_14 = arith.constant 0 : index
      %c0_15 = arith.constant 0 : index
      %17 = vector.load %arg6[%c0_14, %c0_15] : memref<128x128xbf16, #tpu.memory_space<vmem>>, vector<128x128xbf16>
      %cst_16 = arith.constant dense<0.000000e+00> : vector<256x128xf32>
      %18 = tpu.matmul %16, %17, %cst_16 {dimension_numbers = #tpu.dot_dimension_numbers<[1], [0], [0], [1], [0, 0, 1, 1], [], []>} : vector<256x128xbf16>, vector<128x128xbf16>, vector<256x128xf32> -> vector<256x128xf32>
      %c0_17 = arith.constant 0 : index
      %c0_18 = arith.constant 0 : index
      %19 = vector.load %arg4[%c0_17, %c0_18] : memref<256x128xbf16, #tpu.memory_space<vmem>>, vector<256x128xbf16>
      %c0_19 = arith.constant 0 : index
      %c0_20 = arith.constant 0 : index
      %20 = vector.load %arg7[%c0_19, %c0_20] : memref<128x128xbf16, #tpu.memory_space<vmem>>, vector<128x128xbf16>
      %cst_21 = arith.constant dense<0.000000e+00> : vector<256x128xf32>
      %21 = tpu.matmul %19, %20, %cst_21 {dimension_numbers = #tpu.dot_dimension_numbers<[1], [0], [0], [1], [0, 0, 1, 1], [], []>} : vector<256x128xbf16>, vector<128x128xbf16>, vector<256x128xf32> -> vector<256x128xf32>
      %22 = arith.addf %18, %21 : vector<256x128xf32>
      %c0_22 = arith.constant 0 : index
      %c0_23 = arith.constant 0 : index
      %23 = vector.load %arg8[%c0_22, %c0_23] : memref<1x128xf32, #tpu.memory_space<vmem>>, vector<1x128xf32>
      %24 = vector.broadcast %23 : vector<1x128xf32> to vector<256x128xf32>
      %25 = arith.addf %22, %24 : vector<256x128xf32>
      %cst_24 = arith.constant 0.000000e+00 : f32
      %26 = vector.broadcast %cst_24 : f32 to vector<256x128xf32>
      %27 = arith.maximumf %25, %26 : vector<256x128xf32>
      %28 = arith.truncf %27 : vector<256x128xf32> to vector<256x128xbf16>
      %c0_25 = arith.constant 0 : index
      %c0_26 = arith.constant 0 : index
      %29 = vector.load %arg9[%c0_25, %c0_26] : memref<256x128xbf16, #tpu.memory_space<vmem>>, vector<256x128xbf16>
      tpu.vector_store %arg9[%c0_25, %c0_26], %28 {strides = array<i32>} : memref<256x128xbf16, #tpu.memory_space<vmem>>, vector<256x128xbf16>,
    } else {
    }
    return
  }
  func.func @transform_0(%arg0: i32, %arg1: i32) -> (i32, i32) {
    %c0_i32 = arith.constant 0 : i32
    return %arg0, %arg1 : i32, i32
  }
  func.func @transform_1(%arg0: i32, %arg1: i32) -> (i32, i32) {
    %c0_i32 = arith.constant 0 : i32
    %c0_i32_0 = arith.constant 0 : i32
    return %arg1, %c0_i32 : i32, i32
  }
  func.func @transform_2(%arg0: i32, %arg1: i32) -> (i32, i32) {
    %c0_i32 = arith.constant 0 : i32
    %c0_i32_0 = arith.constant 0 : i32
    return %arg0, %c0_i32 : i32, i32
  }
  func.func @transform_3(%arg0: i32, %arg1: i32) -> (i32, i32) {
    %c0_i32 = arith.constant 0 : i32
    %c0_i32_0 = arith.constant 0 : i32
    return %arg0, %c0_i32 : i32, i32
  }
  func.func @transform_4(%arg0: i32, %arg1: i32) -> (i32, i32) {
    %c0_i32 = arith.constant 0 : i32
    %c0_i32_0 = arith.constant 0 : i32
    %c0_i32_1 = arith.constant 0 : i32
    return %c0_i32, %c0_i32_0 : i32, i32
  }
  func.func @transform_5(%arg0: i32, %arg1: i32) -> (i32, i32) {
    %c0_i32 = arith.constant 0 : i32
    %c0_i32_0 = arith.constant 0 : i32
    %c0_i32_1 = arith.constant 0 : i32
    return %c0_i32, %c0_i32_0 : i32, i32
  }
  func.func @transform_6(%arg0: i32, %arg1: i32) -> (i32, i32) {
    %c0_i32 = arith.constant 0 : i32
    %c0_i32_0 = arith.constant 0 : i32
    %c0_i32_1 = arith.constant 0 : i32
    return %c0_i32, %c0_i32_0 : i32, i32
  }
  func.func @transform_7(%arg0: i32, %arg1: i32) -> (i32, i32) {
    %c0_i32 = arith.constant 0 : i32
    %c0_i32_0 = arith.constant 0 : i32
    return %arg0, %c0_i32 : i32, i32
  }
}

module attributes {stable_mosaic.version = 11 : i64} {
  func.func @_sage_kernel(%arg0: i32, %arg1: i32, %arg2: memref<256x256xbf16, #tpu.memory_space<vmem>>, %arg3: memref<256x128xbf16, #tpu.memory_space<vmem>>, %arg4: memref<256x128xbf16, #tpu.memory_space<vmem>>, %arg5: memref<256x1xf32, #tpu.memory_space<vmem>>, %arg6: memref<128x128xbf16, #tpu.memory_space<vmem>>, %arg7: memref<128x128xbf16, #tpu.memory_space<vmem>>, %arg8: memref<1x128xf32, #tpu.memory_space<vmem>>, %arg9: memref<256x128xbf16, #tpu.memory_space<vmem>>, %arg10: memref<256x128xf32, #tpu.memory_space<vmem>>) attributes {dimension_semantics = [#tpu.dimension_semantics<parallel>, #tpu.dimension_semantics<arbitrary>], iteration_bounds = array<i64: 1, 1>, scalar_prefetch = 0 : i64, scratch_operands = 1 : i64, tpu.core_type = #tpu.core_type<tc>, window_params = [{transform_indices = @transform_0, window_bounds = array<i64: 256, 256>}, {transform_indices = @transform_1, window_bounds = array<i64: 256, 128>}, {transform_indices = @transform_2, window_bounds = array<i64: 256, 128>}, {transform_indices = @transform_3, window_bounds = array<i64: 256, 1>}, {pipeline_mode = #tpu.pipeline_mode<synchronous>, transform_indices = @transform_4, window_bounds = array<i64: 128, 128>}, {pipeline_mode = #tpu.pipeline_mode<synchronous>, transform_indices = @transform_5, window_bounds = array<i64: 128, 128>}, {pipeline_mode = #tpu.pipeline_mode<synchronous>, transform_indices = @transform_6, window_bounds = array<i64: 1, 128>}, {transform_indices = @transform_7, window_bounds = array<i64: 256, 128>}]} {
    %c0_i32 = arith.constant 0 : i32
    %0 = arith.cmpi eq, %arg1, %c0_i32 : i32
    %1 = arith.extui %0 : i1 to i32
    %c0_i32_0 = arith.constant 0 : i32
    %2 = arith.cmpi ne, %1, %c0_i32_0 : i32
    scf.if %2 {
      %cst_10 = arith.constant 0.000000e+00 : f32
      %12 = vector.broadcast %cst_10 : f32 to vector<256x128xf32>
      %c0_11 = arith.constant 0 : index
      %c0_12 = arith.constant 0 : index
      %13 = vector.load %arg10[%c0_11, %c0_12] : memref<256x128xf32, #tpu.memory_space<vmem>>, vector<256x128xf32>
      tpu.vector_store %arg10[%c0_11, %c0_12], %12 {strides = array<i32>} : memref<256x128xf32, #tpu.memory_space<vmem>>, vector<256x128xf32>,
    } else {
    }
    %c0 = arith.constant 0 : index
    %c0_1 = arith.constant 0 : index
    %3 = vector.load %arg10[%c0, %c0_1] : memref<256x128xf32, #tpu.memory_space<vmem>>, vector<256x128xf32>
    %c0_2 = arith.constant 0 : index
    %c0_3 = arith.constant 0 : index
    %4 = vector.load %arg2[%c0_2, %c0_3] : memref<256x256xbf16, #tpu.memory_space<vmem>>, vector<256x256xbf16>
    %c0_4 = arith.constant 0 : index
    %c0_5 = arith.constant 0 : index
    %5 = vector.load %arg3[%c0_4, %c0_5] : memref<256x128xbf16, #tpu.memory_space<vmem>>, vector<256x128xbf16>
    %cst = arith.constant dense<0.000000e+00> : vector<256x128xf32>
    %6 = tpu.matmul %4, %5, %cst {dimension_numbers = #tpu.dot_dimension_numbers<[1], [0], [0], [1], [0, 0, 1, 1], [], []>} : vector<256x256xbf16>, vector<256x128xbf16>, vector<256x128xf32> -> vector<256x128xf32>
    %7 = arith.addf %3, %6 : vector<256x128xf32>
    %c0_6 = arith.constant 0 : index
    %c0_7 = arith.constant 0 : index
    %8 = vector.load %arg10[%c0_6, %c0_7] : memref<256x128xf32, #tpu.memory_space<vmem>>, vector<256x128xf32>
    tpu.vector_store %arg10[%c0_6, %c0_7], %7 {strides = array<i32>} : memref<256x128xf32, #tpu.memory_space<vmem>>, vector<256x128xf32>,
    %c0_i32_8 = arith.constant 0 : i32
    %9 = arith.cmpi eq, %arg1, %c0_i32_8 : i32
    %10 = arith.extui %9 : i1 to i32
    %c0_i32_9 = arith.constant 0 : i32
    %11 = arith.cmpi ne, %10, %c0_i32_9 : i32
    scf.if %11 {
      %c0_10 = arith.constant 0 : index
      %c0_11 = arith.constant 0 : index
      %12 = vector.load %arg10[%c0_10, %c0_11] : memref<256x128xf32, #tpu.memory_space<vmem>>, vector<256x128xf32>
      %c0_12 = arith.constant 0 : index
      %c0_13 = arith.constant 0 : index
      %13 = vector.load %arg5[%c0_12, %c0_13] : memref<256x1xf32, #tpu.memory_space<vmem>>, vector<256x1xf32>
      %14 = vector.broadcast %13 : vector<256x1xf32> to vector<256x128xf32>
      %15 = arith.mulf %12, %14 : vector<256x128xf32>
      %16 = arith.truncf %15 : vector<256x128xf32> to vector<256x128xbf16>
      %c0_14 = arith.constant 0 : index
      %c0_15 = arith.constant 0 : index
      %17 = vector.load %arg6[%c0_14, %c0_15] : memref<128x128xbf16, #tpu.memory_space<vmem>>, vector<128x128xbf16>
      %cst_16 = arith.constant dense<0.000000e+00> : vector<256x128xf32>
      %18 = tpu.matmul %16, %17, %cst_16 {dimension_numbers = #tpu.dot_dimension_numbers<[1], [0], [0], [1], [0, 0, 1, 1], [], []>} : vector<256x128xbf16>, vector<128x128xbf16>, vector<256x128xf32> -> vector<256x128xf32>
      %c0_17 = arith.constant 0 : index
      %c0_18 = arith.constant 0 : index
      %19 = vector.load %arg4[%c0_17, %c0_18] : memref<256x128xbf16, #tpu.memory_space<vmem>>, vector<256x128xbf16>
      %c0_19 = arith.constant 0 : index
      %c0_20 = arith.constant 0 : index
      %20 = vector.load %arg7[%c0_19, %c0_20] : memref<128x128xbf16, #tpu.memory_space<vmem>>, vector<128x128xbf16>
      %cst_21 = arith.constant dense<0.000000e+00> : vector<256x128xf32>
      %21 = tpu.matmul %19, %20, %cst_21 {dimension_numbers = #tpu.dot_dimension_numbers<[1], [0], [0], [1], [0, 0, 1, 1], [], []>} : vector<256x128xbf16>, vector<128x128xbf16>, vector<256x128xf32> -> vector<256x128xf32>
      %22 = arith.addf %18, %21 : vector<256x128xf32>
      %c0_22 = arith.constant 0 : index
      %c0_23 = arith.constant 0 : index
      %23 = vector.load %arg8[%c0_22, %c0_23] : memref<1x128xf32, #tpu.memory_space<vmem>>, vector<1x128xf32>
      %24 = vector.broadcast %23 : vector<1x128xf32> to vector<256x128xf32>
      %25 = arith.addf %22, %24 : vector<256x128xf32>
      %cst_24 = arith.constant 0.000000e+00 : f32
      %26 = vector.broadcast %cst_24 : f32 to vector<256x128xf32>
      %27 = arith.maximumf %25, %26 : vector<256x128xf32>
      %28 = arith.truncf %27 : vector<256x128xf32> to vector<256x128xbf16>
      %c0_25 = arith.constant 0 : index
      %c0_26 = arith.constant 0 : index
      %29 = vector.load %arg9[%c0_25, %c0_26] : memref<256x128xbf16, #tpu.memory_space<vmem>>, vector<256x128xbf16>
      tpu.vector_store %arg9[%c0_25, %c0_26], %28 {strides = array<i32>} : memref<256x128xbf16, #tpu.memory_space<vmem>>, vector<256x128xbf16>,
    } else {
    }
    return
  }
  func.func @transform_0(%arg0: i32, %arg1: i32) -> (i32, i32) {
    %c0_i32 = arith.constant 0 : i32
    return %arg0, %arg1 : i32, i32
  }
  func.func @transform_1(%arg0: i32, %arg1: i32) -> (i32, i32) {
    %c0_i32 = arith.constant 0 : i32
    %c0_i32_0 = arith.constant 0 : i32
    return %arg1, %c0_i32 : i32, i32
  }
  func.func @transform_2(%arg0: i32, %arg1: i32) -> (i32, i32) {
    %c0_i32 = arith.constant 0 : i32
    %c0_i32_0 = arith.constant 0 : i32
    return %arg0, %c0_i32 : i32, i32
  }
  func.func @transform_3(%arg0: i32, %arg1: i32) -> (i32, i32) {
    %c0_i32 = arith.constant 0 : i32
    %c0_i32_0 = arith.constant 0 : i32
    return %arg0, %c0_i32 : i32, i32
  }
  func.func @transform_4(%arg0: i32, %arg1: i32) -> (i32, i32) {
    %c0_i32 = arith.constant 0 : i32
    %c0_i32_0 = arith.constant 0 : i32
    %c0_i32_1 = arith.constant 0 : i32
    return %c0_i32, %c0_i32_0 : i32, i32
  }
  func.func @transform_5(%arg0: i32, %arg1: i32) -> (i32, i32) {
    %c0_i32 = arith.constant 0 : i32
    %c0_i32_0 = arith.constant 0 : i32
    %c0_i32_1 = arith.constant 0 : i32
    return %c0_i32, %c0_i32_0 : i32, i32
  }
  func.func @transform_6(%arg0: i32, %arg1: i32) -> (i32, i32) {
    %c0_i32 = arith.constant 0 : i32
    %c0_i32_0 = arith.constant 0 : i32
    %c0_i32_1 = arith.constant 0 : i32
    return %c0_i32, %c0_i32_0 : i32, i32
  }
  func.func @transform_7(%arg0: i32, %arg1: i32) -> (i32, i32) {
    %c0_i32 = arith.constant 0 : i32
    %c0_i32_0 = arith.constant 0 : i32
    return %arg0, %c0_i32 : i32, i32
  }
}

module attributes {stable_mosaic.version = 11 : i64} {
  func.func @_sage_kernel(%arg0: i32, %arg1: i32, %arg2: memref<256x256xbf16, #tpu.memory_space<vmem>>, %arg3: memref<256x128xbf16, #tpu.memory_space<vmem>>, %arg4: memref<256x128xbf16, #tpu.memory_space<vmem>>, %arg5: memref<256x1xf32, #tpu.memory_space<vmem>>, %arg6: memref<128x128xbf16, #tpu.memory_space<vmem>>, %arg7: memref<128x128xbf16, #tpu.memory_space<vmem>>, %arg8: memref<1x128xf32, #tpu.memory_space<vmem>>, %arg9: memref<128x256xbf16, #tpu.memory_space<vmem>>, %arg10: memref<256x128xf32, #tpu.memory_space<vmem>>) attributes {dimension_semantics = [#tpu.dimension_semantics<parallel>, #tpu.dimension_semantics<arbitrary>], iteration_bounds = array<i64: 1, 1>, scalar_prefetch = 0 : i64, scratch_operands = 1 : i64, tpu.core_type = #tpu.core_type<tc>, window_params = [{transform_indices = @transform_0, window_bounds = array<i64: 256, 256>}, {transform_indices = @transform_1, window_bounds = array<i64: 256, 128>}, {transform_indices = @transform_2, window_bounds = array<i64: 256, 128>}, {transform_indices = @transform_3, window_bounds = array<i64: 256, 1>}, {pipeline_mode = #tpu.pipeline_mode<synchronous>, transform_indices = @transform_4, window_bounds = array<i64: 128, 128>}, {pipeline_mode = #tpu.pipeline_mode<synchronous>, transform_indices = @transform_5, window_bounds = array<i64: 128, 128>}, {pipeline_mode = #tpu.pipeline_mode<synchronous>, transform_indices = @transform_6, window_bounds = array<i64: 1, 128>}, {transform_indices = @transform_7, window_bounds = array<i64: 128, 256>}]} {
    %c0_i32 = arith.constant 0 : i32
    %0 = arith.cmpi eq, %arg1, %c0_i32 : i32
    %1 = arith.extui %0 : i1 to i32
    %c0_i32_0 = arith.constant 0 : i32
    %2 = arith.cmpi ne, %1, %c0_i32_0 : i32
    scf.if %2 {
      %cst_10 = arith.constant 0.000000e+00 : f32
      %12 = vector.broadcast %cst_10 : f32 to vector<256x128xf32>
      %c0_11 = arith.constant 0 : index
      %c0_12 = arith.constant 0 : index
      %13 = vector.load %arg10[%c0_11, %c0_12] : memref<256x128xf32, #tpu.memory_space<vmem>>, vector<256x128xf32>
      tpu.vector_store %arg10[%c0_11, %c0_12], %12 {strides = array<i32>} : memref<256x128xf32, #tpu.memory_space<vmem>>, vector<256x128xf32>,
    } else {
    }
    %c0 = arith.constant 0 : index
    %c0_1 = arith.constant 0 : index
    %3 = vector.load %arg10[%c0, %c0_1] : memref<256x128xf32, #tpu.memory_space<vmem>>, vector<256x128xf32>
    %c0_2 = arith.constant 0 : index
    %c0_3 = arith.constant 0 : index
    %4 = vector.load %arg2[%c0_2, %c0_3] : memref<256x256xbf16, #tpu.memory_space<vmem>>, vector<256x256xbf16>
    %c0_4 = arith.constant 0 : index
    %c0_5 = arith.constant 0 : index
    %5 = vector.load %arg3[%c0_4, %c0_5] : memref<256x128xbf16, #tpu.memory_space<vmem>>, vector<256x128xbf16>
    %cst = arith.constant dense<0.000000e+00> : vector<256x128xf32>
    %6 = tpu.matmul %4, %5, %cst {dimension_numbers = #tpu.dot_dimension_numbers<[1], [0], [0], [1], [0, 0, 1, 1], [], []>} : vector<256x256xbf16>, vector<256x128xbf16>, vector<256x128xf32> -> vector<256x128xf32>
    %7 = arith.addf %3, %6 : vector<256x128xf32>
    %c0_6 = arith.constant 0 : index
    %c0_7 = arith.constant 0 : index
    %8 = vector.load %arg10[%c0_6, %c0_7] : memref<256x128xf32, #tpu.memory_space<vmem>>, vector<256x128xf32>
    tpu.vector_store %arg10[%c0_6, %c0_7], %7 {strides = array<i32>} : memref<256x128xf32, #tpu.memory_space<vmem>>, vector<256x128xf32>,
    %c0_i32_8 = arith.constant 0 : i32
    %9 = arith.cmpi eq, %arg1, %c0_i32_8 : i32
    %10 = arith.extui %9 : i1 to i32
    %c0_i32_9 = arith.constant 0 : i32
    %11 = arith.cmpi ne, %10, %c0_i32_9 : i32
    scf.if %11 {
      %c0_10 = arith.constant 0 : index
      %c0_11 = arith.constant 0 : index
      %12 = vector.load %arg10[%c0_10, %c0_11] : memref<256x128xf32, #tpu.memory_space<vmem>>, vector<256x128xf32>
      %c0_12 = arith.constant 0 : index
      %c0_13 = arith.constant 0 : index
      %13 = vector.load %arg5[%c0_12, %c0_13] : memref<256x1xf32, #tpu.memory_space<vmem>>, vector<256x1xf32>
      %14 = vector.broadcast %13 : vector<256x1xf32> to vector<256x128xf32>
      %15 = arith.mulf %12, %14 : vector<256x128xf32>
      %16 = arith.truncf %15 : vector<256x128xf32> to vector<256x128xbf16>
      %c0_14 = arith.constant 0 : index
      %c0_15 = arith.constant 0 : index
      %17 = vector.load %arg6[%c0_14, %c0_15] : memref<128x128xbf16, #tpu.memory_space<vmem>>, vector<128x128xbf16>
      %cst_16 = arith.constant dense<0.000000e+00> : vector<256x128xf32>
      %18 = tpu.matmul %16, %17, %cst_16 {dimension_numbers = #tpu.dot_dimension_numbers<[1], [0], [0], [1], [0, 0, 1, 1], [], []>} : vector<256x128xbf16>, vector<128x128xbf16>, vector<256x128xf32> -> vector<256x128xf32>
      %c0_17 = arith.constant 0 : index
      %c0_18 = arith.constant 0 : index
      %19 = vector.load %arg4[%c0_17, %c0_18] : memref<256x128xbf16, #tpu.memory_space<vmem>>, vector<256x128xbf16>
      %c0_19 = arith.constant 0 : index
      %c0_20 = arith.constant 0 : index
      %20 = vector.load %arg7[%c0_19, %c0_20] : memref<128x128xbf16, #tpu.memory_space<vmem>>, vector<128x128xbf16>
      %cst_21 = arith.constant dense<0.000000e+00> : vector<256x128xf32>
      %21 = tpu.matmul %19, %20, %cst_21 {dimension_numbers = #tpu.dot_dimension_numbers<[1], [0], [0], [1], [0, 0, 1, 1], [], []>} : vector<256x128xbf16>, vector<128x128xbf16>, vector<256x128xf32> -> vector<256x128xf32>
      %22 = arith.addf %18, %21 : vector<256x128xf32>
      %c0_22 = arith.constant 0 : index
      %c0_23 = arith.constant 0 : index
      %23 = vector.load %arg8[%c0_22, %c0_23] : memref<1x128xf32, #tpu.memory_space<vmem>>, vector<1x128xf32>
      %24 = vector.broadcast %23 : vector<1x128xf32> to vector<256x128xf32>
      %25 = arith.addf %22, %24 : vector<256x128xf32>
      %26 = tpu.transpose %25, [1, 0] : vector<256x128xf32> -> vector<128x256xf32>
      %27 = arith.truncf %26 : vector<128x256xf32> to vector<128x256xbf16>
      %c0_24 = arith.constant 0 : index
      %c0_25 = arith.constant 0 : index
      %28 = vector.load %arg9[%c0_24, %c0_25] : memref<128x256xbf16, #tpu.memory_space<vmem>>, vector<128x256xbf16>
      tpu.vector_store %arg9[%c0_24, %c0_25], %27 {strides = array<i32>} : memref<128x256xbf16, #tpu.memory_space<vmem>>, vector<128x256xbf16>,
    } else {
    }
    return
  }
  func.func @transform_0(%arg0: i32, %arg1: i32) -> (i32, i32) {
    %c0_i32 = arith.constant 0 : i32
    return %arg0, %arg1 : i32, i32
  }
  func.func @transform_1(%arg0: i32, %arg1: i32) -> (i32, i32) {
    %c0_i32 = arith.constant 0 : i32
    %c0_i32_0 = arith.constant 0 : i32
    return %arg1, %c0_i32 : i32, i32
  }
  func.func @transform_2(%arg0: i32, %arg1: i32) -> (i32, i32) {
    %c0_i32 = arith.constant 0 : i32
    %c0_i32_0 = arith.constant 0 : i32
    return %arg0, %c0_i32 : i32, i32
  }
  func.func @transform_3(%arg0: i32, %arg1: i32) -> (i32, i32) {
    %c0_i32 = arith.constant 0 : i32
    %c0_i32_0 = arith.constant 0 : i32
    return %arg0, %c0_i32 : i32, i32
  }
  func.func @transform_4(%arg0: i32, %arg1: i32) -> (i32, i32) {
    %c0_i32 = arith.constant 0 : i32
    %c0_i32_0 = arith.constant 0 : i32
    %c0_i32_1 = arith.constant 0 : i32
    return %c0_i32, %c0_i32_0 : i32, i32
  }
  func.func @transform_5(%arg0: i32, %arg1: i32) -> (i32, i32) {
    %c0_i32 = arith.constant 0 : i32
    %c0_i32_0 = arith.constant 0 : i32
    %c0_i32_1 = arith.constant 0 : i32
    return %c0_i32, %c0_i32_0 : i32, i32
  }
  func.func @transform_6(%arg0: i32, %arg1: i32) -> (i32, i32) {
    %c0_i32 = arith.constant 0 : i32
    %c0_i32_0 = arith.constant 0 : i32
    %c0_i32_1 = arith.constant 0 : i32
    return %c0_i32, %c0_i32_0 : i32, i32
  }
  func.func @transform_7(%arg0: i32, %arg1: i32) -> (i32, i32) {
    %c0_i32 = arith.constant 0 : i32
    %c0_i32_0 = arith.constant 0 : i32
    return %c0_i32, %arg0 : i32, i32
  }
}

module attributes {stable_mosaic.version = 11 : i64} {
  func.func @_decoder_kernel(%arg0: i32, %arg1: memref<128x512xbf16, #tpu.memory_space<vmem>>, %arg2: memref<128x512xbf16, #tpu.memory_space<vmem>>, %arg3: memref<128x128xbf16, #tpu.memory_space<vmem>>, %arg4: memref<128x128xbf16, #tpu.memory_space<vmem>>, %arg5: memref<128x1xf32, #tpu.memory_space<vmem>>, %arg6: memref<128x128xbf16, #tpu.memory_space<vmem>>, %arg7: memref<128x1xf32, #tpu.memory_space<vmem>>, %arg8: memref<128x128xbf16, #tpu.memory_space<vmem>>, %arg9: memref<128x1xf32, #tpu.memory_space<vmem>>, %arg10: memref<128x1xf32, #tpu.memory_space<vmem>>, %arg11: memref<1x1xf32, #tpu.memory_space<vmem>>, %arg12: memref<1x512xf32, #tpu.memory_space<vmem>>) attributes {dimension_semantics = [#tpu.dimension_semantics<parallel>], iteration_bounds = array<i64: 1>, scalar_prefetch = 0 : i64, scratch_operands = 0 : i64, tpu.core_type = #tpu.core_type<tc>, window_params = [{transform_indices = @transform_0, window_bounds = array<i64: 128, 512>}, {transform_indices = @transform_1, window_bounds = array<i64: 128, 512>}, {pipeline_mode = #tpu.pipeline_mode<synchronous>, transform_indices = @transform_2, window_bounds = array<i64: 128, 128>}, {pipeline_mode = #tpu.pipeline_mode<synchronous>, transform_indices = @transform_3, window_bounds = array<i64: 128, 128>}, {pipeline_mode = #tpu.pipeline_mode<synchronous>, transform_indices = @transform_4, window_bounds = array<i64: 128, 1>}, {pipeline_mode = #tpu.pipeline_mode<synchronous>, transform_indices = @transform_5, window_bounds = array<i64: 128, 128>}, {pipeline_mode = #tpu.pipeline_mode<synchronous>, transform_indices = @transform_6, window_bounds = array<i64: 128, 1>}, {pipeline_mode = #tpu.pipeline_mode<synchronous>, transform_indices = @transform_7, window_bounds = array<i64: 128, 128>}, {pipeline_mode = #tpu.pipeline_mode<synchronous>, transform_indices = @transform_8, window_bounds = array<i64: 128, 1>}, {pipeline_mode = #tpu.pipeline_mode<synchronous>, transform_indices = @transform_9, window_bounds = array<i64: 128, 1>}, {pipeline_mode = #tpu.pipeline_mode<synchronous>, transform_indices = @transform_10, window_bounds = array<i64: 1, 1>}, {transform_indices = @transform_11, window_bounds = array<i64: 1, 512>}]} {
    %c0 = arith.constant 0 : index
    %c0_0 = arith.constant 0 : index
    %0 = vector.load %arg3[%c0, %c0_0] : memref<128x128xbf16, #tpu.memory_space<vmem>>, vector<128x128xbf16>
    %c0_1 = arith.constant 0 : index
    %c0_2 = arith.constant 0 : index
    %1 = vector.load %arg1[%c0_1, %c0_2] : memref<128x512xbf16, #tpu.memory_space<vmem>>, vector<128x512xbf16>
    %cst = arith.constant dense<0.000000e+00> : vector<128x512xf32>
    %2 = tpu.matmul %0, %1, %cst {dimension_numbers = #tpu.dot_dimension_numbers<[1], [0], [0], [1], [0, 0, 1, 1], [], []>} : vector<128x128xbf16>, vector<128x512xbf16>, vector<128x512xf32> -> vector<128x512xf32>
    %c0_3 = arith.constant 0 : index
    %c0_4 = arith.constant 0 : index
    %3 = vector.load %arg4[%c0_3, %c0_4] : memref<128x128xbf16, #tpu.memory_space<vmem>>, vector<128x128xbf16>
    %c0_5 = arith.constant 0 : index
    %c0_6 = arith.constant 0 : index
    %4 = vector.load %arg2[%c0_5, %c0_6] : memref<128x512xbf16, #tpu.memory_space<vmem>>, vector<128x512xbf16>
    %cst_7 = arith.constant dense<0.000000e+00> : vector<128x512xf32>
    %5 = tpu.matmul %3, %4, %cst_7 {dimension_numbers = #tpu.dot_dimension_numbers<[1], [0], [0], [1], [0, 0, 1, 1], [], []>} : vector<128x128xbf16>, vector<128x512xbf16>, vector<128x512xf32> -> vector<128x512xf32>
    %6 = arith.addf %2, %5 : vector<128x512xf32>
    %c0_8 = arith.constant 0 : index
    %c0_9 = arith.constant 0 : index
    %7 = vector.load %arg5[%c0_8, %c0_9] : memref<128x1xf32, #tpu.memory_space<vmem>>, vector<128x1xf32>
    %8 = vector.broadcast %7 : vector<128x1xf32> to vector<128x512xf32>
    %9 = arith.addf %6, %8 : vector<128x512xf32>
    %cst_10 = arith.constant 0.000000e+00 : f32
    %10 = vector.broadcast %cst_10 : f32 to vector<128x512xf32>
    %11 = arith.maximumf %9, %10 : vector<128x512xf32>
    %12 = arith.truncf %11 : vector<128x512xf32> to vector<128x512xbf16>
    %c0_11 = arith.constant 0 : index
    %c0_12 = arith.constant 0 : index
    %13 = vector.load %arg6[%c0_11, %c0_12] : memref<128x128xbf16, #tpu.memory_space<vmem>>, vector<128x128xbf16>
    %cst_13 = arith.constant dense<0.000000e+00> : vector<128x512xf32>
    %14 = tpu.matmul %13, %12, %cst_13 {dimension_numbers = #tpu.dot_dimension_numbers<[1], [0], [0], [1], [0, 0, 1, 1], [], []>} : vector<128x128xbf16>, vector<128x512xbf16>, vector<128x512xf32> -> vector<128x512xf32>
    %c0_14 = arith.constant 0 : index
    %c0_15 = arith.constant 0 : index
    %15 = vector.load %arg7[%c0_14, %c0_15] : memref<128x1xf32, #tpu.memory_space<vmem>>, vector<128x1xf32>
    %16 = vector.broadcast %15 : vector<128x1xf32> to vector<128x512xf32>
    %17 = arith.addf %14, %16 : vector<128x512xf32>
    %cst_16 = arith.constant 0.000000e+00 : f32
    %18 = vector.broadcast %cst_16 : f32 to vector<128x512xf32>
    %19 = arith.maximumf %17, %18 : vector<128x512xf32>
    %20 = arith.truncf %19 : vector<128x512xf32> to vector<128x512xbf16>
    %c0_17 = arith.constant 0 : index
    %c0_18 = arith.constant 0 : index
    %21 = vector.load %arg8[%c0_17, %c0_18] : memref<128x128xbf16, #tpu.memory_space<vmem>>, vector<128x128xbf16>
    %cst_19 = arith.constant dense<0.000000e+00> : vector<128x512xf32>
    %22 = tpu.matmul %21, %20, %cst_19 {dimension_numbers = #tpu.dot_dimension_numbers<[1], [0], [0], [1], [0, 0, 1, 1], [], []>} : vector<128x128xbf16>, vector<128x512xbf16>, vector<128x512xf32> -> vector<128x512xf32>
    %c0_20 = arith.constant 0 : index
    %c0_21 = arith.constant 0 : index
    %23 = vector.load %arg9[%c0_20, %c0_21] : memref<128x1xf32, #tpu.memory_space<vmem>>, vector<128x1xf32>
    %24 = vector.broadcast %23 : vector<128x1xf32> to vector<128x512xf32>
    %25 = arith.addf %22, %24 : vector<128x512xf32>
    %cst_22 = arith.constant 0.000000e+00 : f32
    %26 = vector.broadcast %cst_22 : f32 to vector<128x512xf32>
    %27 = arith.maximumf %25, %26 : vector<128x512xf32>
    %c0_23 = arith.constant 0 : index
    %c0_24 = arith.constant 0 : index
    %28 = vector.load %arg10[%c0_23, %c0_24] : memref<128x1xf32, #tpu.memory_space<vmem>>, vector<128x1xf32>
    %29 = vector.broadcast %28 : vector<128x1xf32> to vector<128x512xf32>
    %30 = arith.mulf %27, %29 : vector<128x512xf32>
    %cst_25 = arith.constant dense<0.000000e+00> : vector<512xf32>
    %31 = vector.multi_reduction <add>, %30, %cst_25 [0] : vector<128x512xf32> to vector<512xf32>
    %32 = vector.shape_cast %31 : vector<512xf32> to vector<1x512xf32>
    %c0_26 = arith.constant 0 : index
    %c0_27 = arith.constant 0 : index
    %33 = vector.load %arg11[%c0_26, %c0_27] : memref<1x1xf32, #tpu.memory_space<vmem>>, vector<1x1xf32>
    %34 = vector.broadcast %33 : vector<1x1xf32> to vector<1x512xf32>
    %35 = arith.addf %32, %34 : vector<1x512xf32>
    %cst_28 = arith.constant 0.000000e+00 : f32
    %36 = vector.broadcast %cst_28 : f32 to vector<1x512xf32>
    %37 = arith.subf %36, %35 : vector<1x512xf32>
    %38 = math.exp %37 : vector<1x512xf32>
    %cst_29 = arith.constant 1.000000e+00 : f32
    %39 = vector.broadcast %cst_29 : f32 to vector<1x512xf32>
    %40 = arith.addf %39, %38 : vector<1x512xf32>
    %cst_30 = arith.constant 1.000000e+00 : f32
    %41 = vector.broadcast %cst_30 : f32 to vector<1x512xf32>
    %42 = arith.divf %41, %40 : vector<1x512xf32>
    %cst_31 = arith.constant 4.000000e+00 : f32
    %43 = vector.broadcast %cst_31 : f32 to vector<1x512xf32>
    %44 = arith.mulf %42, %43 : vector<1x512xf32>
    %cst_32 = arith.constant 1.000000e+00 : f32
    %45 = vector.broadcast %cst_32 : f32 to vector<1x512xf32>
    %46 = arith.addf %44, %45 : vector<1x512xf32>
    %c0_33 = arith.constant 0 : index
    %c0_34 = arith.constant 0 : index
    %47 = vector.load %arg12[%c0_33, %c0_34] : memref<1x512xf32, #tpu.memory_space<vmem>>, vector<1x512xf32>
    tpu.vector_store %arg12[%c0_33, %c0_34], %46 {strides = array<i32>} : memref<1x512xf32, #tpu.memory_space<vmem>>, vector<1x512xf32>,
    return
  }
  func.func @transform_0(%arg0: i32) -> (i32, i32) {
    %c0_i32 = arith.constant 0 : i32
    %c0_i32_0 = arith.constant 0 : i32
    return %c0_i32, %arg0 : i32, i32
  }
  func.func @transform_1(%arg0: i32) -> (i32, i32) {
    %c0_i32 = arith.constant 0 : i32
    %c0_i32_0 = arith.constant 0 : i32
    return %c0_i32, %arg0 : i32, i32
  }
  func.func @transform_2(%arg0: i32) -> (i32, i32) {
    %c0_i32 = arith.constant 0 : i32
    %c0_i32_0 = arith.constant 0 : i32
    %c0_i32_1 = arith.constant 0 : i32
    return %c0_i32, %c0_i32_0 : i32, i32
  }
  func.func @transform_3(%arg0: i32) -> (i32, i32) {
    %c0_i32 = arith.constant 0 : i32
    %c0_i32_0 = arith.constant 0 : i32
    %c0_i32_1 = arith.constant 0 : i32
    return %c0_i32, %c0_i32_0 : i32, i32
  }
  func.func @transform_4(%arg0: i32) -> (i32, i32) {
    %c0_i32 = arith.constant 0 : i32
    %c0_i32_0 = arith.constant 0 : i32
    %c0_i32_1 = arith.constant 0 : i32
    return %c0_i32, %c0_i32_0 : i32, i32
  }
  func.func @transform_5(%arg0: i32) -> (i32, i32) {
    %c0_i32 = arith.constant 0 : i32
    %c0_i32_0 = arith.constant 0 : i32
    %c0_i32_1 = arith.constant 0 : i32
    return %c0_i32, %c0_i32_0 : i32, i32
  }
  func.func @transform_6(%arg0: i32) -> (i32, i32) {
    %c0_i32 = arith.constant 0 : i32
    %c0_i32_0 = arith.constant 0 : i32
    %c0_i32_1 = arith.constant 0 : i32
    return %c0_i32, %c0_i32_0 : i32, i32
  }
  func.func @transform_7(%arg0: i32) -> (i32, i32) {
    %c0_i32 = arith.constant 0 : i32
    %c0_i32_0 = arith.constant 0 : i32
    %c0_i32_1 = arith.constant 0 : i32
    return %c0_i32, %c0_i32_0 : i32, i32
  }
  func.func @transform_8(%arg0: i32) -> (i32, i32) {
    %c0_i32 = arith.constant 0 : i32
    %c0_i32_0 = arith.constant 0 : i32
    %c0_i32_1 = arith.constant 0 : i32
    return %c0_i32, %c0_i32_0 : i32, i32
  }
  func.func @transform_9(%arg0: i32) -> (i32, i32) {
    %c0_i32 = arith.constant 0 : i32
    %c0_i32_0 = arith.constant 0 : i32
    %c0_i32_1 = arith.constant 0 : i32
    return %c0_i32, %c0_i32_0 : i32, i32
  }
  func.func @transform_10(%arg0: i32) -> (i32, i32) {
    %c0_i32 = arith.constant 0 : i32
    %c0_i32_0 = arith.constant 0 : i32
    %c0_i32_1 = arith.constant 0 : i32
    return %c0_i32, %c0_i32_0 : i32, i32
  }
  func.func @transform_11(%arg0: i32) -> (i32, i32) {
    %c0_i32 = arith.constant 0 : i32
    %c0_i32_0 = arith.constant 0 : i32
    return %c0_i32, %arg0 : i32, i32
  }
}

</mosaic_0001>

<bundles_post_ra>
// kernel: model_forward.5
= control target key start
LH: loop header
LB: loop body
LE: loop exit
PB: predicated region body
PF: predicated region fallthrough
CT: control target
= control target key end

     0   :  { %12 = vsyncpa [#allocation4], 0  ;;  %s2872_s0 = inlined_call_operand.vmem [shape: bf16[256,256], index: 0, kind: input, shape index: {}]   ;;  %s2873_s1 = inlined_call_operand.hbm [shape: bf16[256,128], index: 1, kind: input, shape index: {}]   ;;  %s2874_s2 = inlined_call_operand.hbm [shape: bf16[256,128], index: 2, kind: input, shape index: {}]   ;;  %s2875_s3 = inlined_call_operand.vmem [shape: f32[256,1], index: 3, kind: input, shape index: {}]   ;;  %s2876_s4 = inlined_call_operand.vmem [shape: bf16[128,128], index: 4, kind: input, shape index: {}]   ;;  %s2877_s5 = inlined_call_operand.hbm [shape: bf16[128,128], index: 5, kind: input, shape index: {}]   ;;  %s2878_s6 = inlined_call_operand.vmem [shape: f32[1,128], index: 6, kind: input, shape index: {}]   ;;  %s2879_s7 = inlined_call_operand.vmem [shape: bf16[256,128], index: 7, kind: output, shape index: {}]  }
   0x1   :  { %13 = vsyncpa [#allocation6], 0  ;;  %s2473_s24 = smov [#allocation5]   ;;  %s2474_s26 = smov [#allocation3]  }
   0x2   :  { %s33_s25 = sshll.u32 %s2473_s24, 4  ;;  %s21_s27 = sshll.u32 %s2474_s26, 4  ;;  %s34_s25 = int_to_ptr.vmem [resolvable:$true] %s33_s25  ;;  %s2519_s27 = int_to_ptr.vmem [resolvable:$true] %s21_s27 }
   0x3   :  { %s2403_s30 = scalar_lea.hbm %s2874_s2, 2048 }
   0x4   :  { %p2404_p0 = scmp.ne.s32.totalorder %s2874_s2, %s2403_s30  ;;  %p2407_p1 = scmp.lt.u32.totalorder %s2403_s30, %s2874_s2 }
   0x6   :  { %p2409_p2 = pnand %p2407_p1, %p2404_p0 }
   0x8   :  { %2412 = shalt.err (!%p2409_p2)
}
   0x9   :  { %s2413_s12 = scalar_lea.vmem %s34_s25, 2048  ;;  %p2418_p4 = scmp.lt.s32.totalorder %s34_s25, %s34_s25 }
   0xa   :  { %p2414_p3 = scmp.ne.s32.totalorder %s34_s25, %s2413_s12  ;;  %p2419_p5 = scmp.lt.s32.totalorder %s2413_s12, %s2413_s12 }
   0xc   :  { %p2420_p6 = por %p2419_p5, %p2418_p4 }
   0xe   :  { %p2421_p7 = pnand %p2420_p6, %p2414_p3 }
  0x10   :  { %2424 = shalt.err (!%p2421_p7)
}
  0x11   :  { %s2475_s13 = smov 64   ;;  %s2476_s14 = smov 4  }
  0x12   :  { %39 = dma.hbm_to_vmem [thread:$0]  %s2874_s2, 2048, %s34_s25, [#allocation6], %s2475_s13, %s2475_s13, %s2476_s14  }
  0x13   :  { %s2425_s19 = scalar_lea.hbm %s2873_s1, 2048 }
  0x14   :  { %p2426_p8 = scmp.ne.s32.totalorder %s2873_s1, %s2425_s19  ;;  %p2429_p9 = scmp.lt.u32.totalorder %s2425_s19, %s2873_s1 }
  0x16   :  { %p2431_p10 = pnand %p2429_p9, %p2426_p8 }
  0x18   :  { %2434 = shalt.err (!%p2431_p10)
}
  0x19   :  { %s2435_s24 = scalar_lea.vmem %s2519_s27, 2048  ;;  %p2440_p12 = scmp.lt.s32.totalorder %s2519_s27, %s2519_s27 }
  0x1a   :  { %p2436_p11 = scmp.ne.s32.totalorder %s2519_s27, %s2435_s24  ;;  %p2441_p13 = scmp.lt.s32.totalorder %s2435_s24, %s2435_s24 }
  0x1c   :  { %p2442_p0 = por %p2441_p13, %p2440_p12 }
  0x1e   :  { %p2443_p1 = pnand %p2442_p0, %p2436_p11 }
  0x20   :  { %2446 = shalt.err (!%p2443_p1)
}
  0x21   :  { %27 = dma.hbm_to_vmem [thread:$0]  %s2873_s1, 2048, %s2519_s27, [#allocation4], %s2475_s13, %s2475_s13, %s2476_s14  }
  0x22   :  { %s2477_s26 = smov [#allocation7]   ;;  %s2447_s8 = scalar_lea.hbm %s2877_s5, 1024 }
  0x23   :  { %s49_s28 = sshll.u32 %s2477_s26, 4  ;;  %p2448_p2 = scmp.ne.s32.totalorder %s2877_s5, %s2447_s8  ;;  %s50_s28 = int_to_ptr.vmem [resolvable:$true] %s49_s28 }
  0x24   :  { %p2451_p3 = scmp.lt.u32.totalorder %s2447_s8, %s2877_s5 }
  0x26   :  { %p2453_p4 = pnand %p2451_p3, %p2448_p2 }
  0x28   :  { %2456 = shalt.err (!%p2453_p4)
}
  0x29   :  { %s2457_s15 = scalar_lea.vmem %s50_s28, 1024  ;;  %p2462_p6 = scmp.lt.s32.totalorder %s50_s28, %s50_s28 }
  0x2a   :  { %p2458_p5 = scmp.ne.s32.totalorder %s50_s28, %s2457_s15  ;;  %p2463_p7 = scmp.lt.s32.totalorder %s2457_s15, %s2457_s15 }
  0x2c   :  { %p2464_p8 = por %p2463_p7, %p2462_p6 }
  0x2e   :  { %p2465_p9 = pnand %p2464_p8, %p2458_p5 }
  0x30   :  { %2468 = shalt.err (!%p2465_p9)
}
  0x31   :  { %55 = dma.hbm_to_vmem [thread:$0]  %s2877_s5, 1024, %s50_s28, [#allocation6], %s2475_s13, %s2475_s13, %s2476_s14  }
  0x32   :  { %2469 = dma.done.wait [#allocation4], 2048  }
  0x33   :  { %2470 = vsyncadd [#allocation4], 4294965248 }
  0x34   :  { %2471 = dma.done.wait [#allocation6], 3072  }
  0x35   :  { %2472 = vsyncadd [#allocation6], 4294964224  ;;  %v2478_v0 = vmov 0   ;;  %v2307_v1 = vld [vmem:[#allocation3 + $0x40] sm:$0xff]   ;;  %v2309_v3 = vld [vmem:[#allocation3 + $0x48] sm:$0xff]  }
  0x36   :  { %2305 = vset.pattern.permute.xlu0 %v2478_v0  ;;  %2306 = vset.pattern.permute.xlu1 %v2478_v0  ;;  %v2308_v2 = vld [vmem:[#allocation3] sm:$0xff]   ;;  %v2310_v4 = vld [vmem:[#allocation3 + $0x8] sm:$0xff]   ;;  %v2311_v5 = vld [vmem:[#allocation3 + $0x50] sm:$0xff]  }
  0x37   :  { %2011 = vmatprep.subr.bf16.mxu0 %v2307_v1  ;;  %v2312_v6 = vld [vmem:[#allocation3 + $0x10] sm:$0xff]   ;;  %v2313_v7 = vld [vmem:[#allocation3 + $0x58] sm:$0xff]   ;;  %v2315_v9 = vld [vmem:[#allocation3 + $0x60] sm:$0xff]  }
  0x38   :  { %2012 = vmatpush3.bf16.msra.mxu0 %v2308_v2  ;;  %v2314_v8 = vld [vmem:[#allocation3 + $0x18] sm:$0xff]   ;;  %v2316_v10 = vld [vmem:[#allocation3 + $0x20] sm:$0xff]   ;;  %v2317_v11 = vld [vmem:[#allocation3 + $0x68] sm:$0xff]  }
  0x39   :  { %2013 = vmatprep.subr.bf16.mxu0 %v2309_v3  ;;  %v2325_v12 = vld [vmem:[%s2872_s0 + $0x4] ss:$8 sps:$4 sm:$0xff]   ;;  %v2319_v14 = vld [vmem:[#allocation3 + $0x70] sm:$0xff]   ;;  %v2321_v16 = vld [vmem:[#allocation3 + $0x78] sm:$0xff]  }
  0x3a   :  { %v2318_v13 = vld [vmem:[#allocation3 + $0x28] sm:$0xff]   ;;  %488 = vmatprep.mubr.bf16.mxu0 %v2325_v12  ;;  %v2320_v15 = vld [vmem:[#allocation3 + $0x30] sm:$0xff]   ;;  %v2322_v17 = vld [vmem:[#allocation3 + $0x38] sm:$0xff]  }
  0x3b   :  { %v2323_v18 = vld [vmem:[%s2872_s0] ss:$8 sps:$4 sm:$0xff]   ;;  %v2326_v20 = vld [vmem:[%s2872_s0 + $0x14] ss:$8 sps:$4 sm:$0xff]   ;;  %v2328_v25 = vld [vmem:[%s2872_s0 + $0x10] ss:$8 sps:$4 sm:$0xff]  }
  0x3c   :  { %2014 = vmatpush3.bf16.msra.mxu0 %v2310_v4  ;;  %v716_v19 = vld [vmem:[%s2875_s3] sm:$0xff]  ;;  %v718_v21 = vld [vmem:[%s2875_s3 + $0x10] sm:$0xff]  ;;  %v717_v22 = vld [vmem:[%s2875_s3 + $0x8] sm:$0xff] }
  0x3d   :  { %2015 = vmatprep.subr.bf16.mxu0 %v2311_v5  ;;  %750 = vperm.xlu0 %2305, %v716_v19   ;;  %v719_v23 = vld [vmem:[%s2875_s3 + $0x18] sm:$0xff]  ;;  %v720_v24 = vld [vmem:[%s2875_s3 + $0x20] sm:$0xff]  ;;  %v721_v26 = vld [vmem:[%s2875_s3 + $0x28] sm:$0xff] }
  0x3e   :  { %760 = vperm.xlu1 %2306, %v718_v21   ;;  %v2329_v27 = vld [vmem:[%s2872_s0 + $0x24] ss:$8 sps:$4 sm:$0xff]   ;;  %v722_v28 = vld [vmem:[%s2875_s3 + $0x30] sm:$0xff]  ;;  %v723_v29 = vld [vmem:[%s2875_s3 + $0x38] sm:$0xff] }
  0x3f   :  { %v724_v30 = vld [vmem:[%s2875_s3 + $0x40] sm:$0xff]  ;;  %v725_v33 = vld [vmem:[%s2875_s3 + $0x48] sm:$0xff]  ;;  %v2332_v34 = vld [vmem:[%s2872_s0 + $0x34] ss:$8 sps:$4 sm:$0xff]  }
  0x40   :  { %2016 = vmatpush3.bf16.msra.mxu0 %v2312_v6  ;;  %v2331_v31 = vld [vmem:[%s2872_s0 + $0x20] ss:$8 sps:$4 sm:$0xff]   ;;  %v726_v36 = vld [vmem:[%s2875_s3 + $0x50] sm:$0xff]  ;;  %v727_v38 = vld [vmem:[%s2875_s3 + $0x58] sm:$0xff] }
  0x41   :  { %2017 = vmatprep.subr.bf16.mxu0 %v2313_v7  ;;  %755 = vperm.xlu0 %2305, %v717_v22   ;;  %v2371_v32 = vld [vmem:[#allocation7] sm:$0xff]   ;;  %v2372_v35 = vld [vmem:[#allocation7 + $0x8] sm:$0xff]   ;;  %v2373_v37 = vld [vmem:[#allocation7 + $0x10] sm:$0xff]  }
  0x42   :  { %765 = vperm.xlu1 %2306, %v719_v23   ;;  %2171 = vmatprep.subr.bf16.mxu1 %v2371_v32  ;;  %v2334_v39 = vld [vmem:[%s2872_s0 + $0x30] ss:$8 sps:$4 sm:$0xff]   ;;  %v728_v40 = vld [vmem:[%s2875_s3 + $0x60] sm:$0xff]  ;;  %v729_v43 = vld [vmem:[%s2875_s3 + $0x68] sm:$0xff] }
  0x43   :  { %2172 = vmatpush3.bf16.msra.mxu1 %v2371_v32  ;;  %v2335_v41 = vld [vmem:[%s2872_s0 + $0x44] ss:$8 sps:$4 sm:$0xff]   ;;  %v2374_v42 = vld [vmem:[#allocation7 + $0x18] sm:$0xff]   ;;  %v730_v44 = vld [vmem:[%s2875_s3 + $0x70] sm:$0xff] }
  0x44   :  { %2018 = vmatpush3.bf16.msra.mxu0 %v2314_v8  ;;  %2173 = vmatprep.subr.bf16.mxu1 %v2372_v35  ;;  %v2379_v45 = vld [vmem:[#allocation5] sm:$0xff]   ;;  %v731_v47 = vld [vmem:[%s2875_s3 + $0x78] sm:$0xff]  ;;  %v2376_v50 = vld [vmem:[#allocation7 + $0x28] sm:$0xff]  }
  0x45   :  { %2019 = vmatprep.subr.bf16.mxu0 %v2315_v9  ;;  %770 = vperm.xlu0 %2305, %v720_v24   ;;  %v2375_v46 = vld [vmem:[#allocation7 + $0x20] sm:$0xff]   ;;  %v733_v51 = vld [vmem:[%s2875_s3 + $0x88] sm:$0xff]  ;;  %v2338_v52 = vld [vmem:[%s2872_s0 + $0x54] ss:$8 sps:$4 sm:$0xff]  }
  0x46   :  { %775 = vperm.xlu1 %2306, %v721_v26   ;;  %2187 = vmatprep.mubr.bf16.mxu1 %v2379_v45  ;;  %v2337_v48 = vld [vmem:[%s2872_s0 + $0x40] ss:$8 sps:$4 sm:$0xff]   ;;  %v734_v53 = vld [vmem:[%s2875_s3 + $0x90] sm:$0xff]  ;;  %v735_v55 = vld [vmem:[%s2875_s3 + $0x98] sm:$0xff] }
  0x47   :  { %2174 = vmatpush3.bf16.msra.mxu1 %v2372_v35  ;;  %v732_v49 = vld [vmem:[%s2875_s3 + $0x80] sm:$0xff]  ;;  %v2377_v54 = vld [vmem:[#allocation7 + $0x30] sm:$0xff]   ;;  %v737_v58 = vld [vmem:[%s2875_s3 + $0xa8] sm:$0xff] }
  0x48   :  { %2020 = vmatpush3.bf16.msra.mxu0 %v2316_v10  ;;  %2175 = vmatprep.subr.bf16.mxu1 %v2373_v37  ;;  %v736_v56 = vld [vmem:[%s2875_s3 + $0xa0] sm:$0xff]  ;;  %v2340_v57 = vld [vmem:[%s2872_s0 + $0x50] ss:$8 sps:$4 sm:$0xff]   ;;  %v2380_v0 = vld [vmem:[#allocation5 + $0x8] sm:$0xff]  }
  0x49   :  { %2021 = vmatprep.subr.bf16.mxu0 %v2317_v11  ;;  %780 = vperm.xlu0 %2305, %v722_v28   ;;  %v2341_v59 = vld [vmem:[%s2872_s0 + $0x64] ss:$8 sps:$4 sm:$0xff]   ;;  %v2378_v60 = vld [vmem:[#allocation7 + $0x38] sm:$0xff]   ;;  %v738_v61 = vld [vmem:[%s2875_s3 + $0xb0] sm:$0xff] }
  0x4a   :  { %785 = vperm.xlu1 %2306, %v723_v29   ;;  %v2389_v62 = vld [vmem:[%s2876_s4] sm:$0xff]   ;;  %v739_v63 = vld [vmem:[%s2875_s3 + $0xb8] sm:$0xff]  ;;  %v2381_v2 = vld [vmem:[#allocation5 + $0x10] sm:$0xff]  }
  0x4b   :  { %2176 = vmatpush3.bf16.msra.mxu1 %v2373_v37  ;;  %v740_v1 = vld [vmem:[%s2875_s3 + $0xc0] sm:$0xff]  ;;  %v2390_v3 = vld [vmem:[%s2876_s4 + $0x8] sm:$0xff]   ;;  %v2344_v6 = vld [vmem:[%s2872_s0 + $0x74] ss:$8 sps:$4 sm:$0xff]  }
  0x4c   :  { %2022 = vmatpush3.bf16.msra.mxu0 %v2318_v13  ;;  %2177 = vmatprep.subr.bf16.mxu1 %v2374_v42  ;;  %v2343_v4 = vld [vmem:[%s2872_s0 + $0x60] ss:$8 sps:$4 sm:$0xff]   ;;  %v742_v7 = vld [vmem:[%s2875_s3 + $0xd0] sm:$0xff]  ;;  %v743_v9 = vld [vmem:[%s2875_s3 + $0xd8] sm:$0xff] }
  0x4d   :  { %2023 = vmatprep.subr.bf16.mxu0 %v2319_v14  ;;  %790 = vperm.xlu0 %2305, %v724_v30   ;;  %v741_v5 = vld [vmem:[%s2875_s3 + $0xc8] sm:$0xff]  ;;  %v2393_v8 = vld [vmem:[%s2876_s4 + $0x10] sm:$0xff]   ;;  %v2382_v10 = vld [vmem:[#allocation5 + $0x18] sm:$0xff]  }
  0x4e   :  { %795 = vperm.xlu1 %2306, %v725_v33   ;;  %v744_v11 = vld [vmem:[%s2875_s3 + $0xe0] sm:$0xff]  ;;  %v2394_v13 = vld [vmem:[%s2876_s4 + $0x18] sm:$0xff]   ;;  %v2384_v19 = vld [vmem:[#allocation5 + $0x28] sm:$0xff]  }
  0x4f   :  { %2178 = vmatpush3.bf16.msra.mxu1 %v2374_v42  ;;  %v2383_v12 = vld [vmem:[#allocation5 + $0x20] sm:$0xff]   ;;  %v2346_v14 = vld [vmem:[%s2872_s0 + $0x70] ss:$8 sps:$4 sm:$0xff]   ;;  %v2350_v22 = vld [vmem:[%s2872_s0 + $0x94] ss:$8 sps:$4 sm:$0xff]  }
  0x50   :  { %2024 = vmatpush3.bf16.msra.mxu0 %v2320_v15  ;;  %2179 = vmatprep.subr.bf16.mxu1 %v2375_v46  ;;  %v745_v15 = vld [vmem:[%s2875_s3 + $0xe8] sm:$0xff]  ;;  %v2386_v23 = vld [vmem:[#allocation5 + $0x38] sm:$0xff]   ;;  %v2387_v24 = vld [vmem:[#allocation5 + $0x40] sm:$0xff]  }
  0x51   :  { %2025 = vmatprep.subr.bf16.mxu0 %v2321_v16  ;;  %800 = vperm.xlu0 %2305, %v726_v36   ;;  %v2347_v16 = vld [vmem:[%s2872_s0 + $0x84] ss:$8 sps:$4 sm:$0xff]   ;;  %v2349_v21 = vld [vmem:[%s2872_s0 + $0x80] ss:$8 sps:$4 sm:$0xff]   ;;  %v2391_v28 = vld [vmem:[#allocation5 + $0x50] sm:$0xff]  }
  0x52   :  { %805 = vperm.xlu1 %2306, %v727_v38   ;;  %v2353_v26 = vld [vmem:[%s2872_s0 + $0xa4] ss:$8 sps:$4 sm:$0xff]   ;;  %v2355_v29 = vld [vmem:[%s2872_s0 + $0xa0] ss:$8 sps:$4 sm:$0xff]   ;;  %v2356_v30 = vld [vmem:[%s2872_s0 + $0xb4] ss:$8 sps:$4 sm:$0xff]  }
  0x53   :  { %2180 = vmatpush3.bf16.msra.mxu1 %v2375_v46  ;;  %v2395_v32 = vld [vmem:[#allocation5 + $0x60] sm:$0xff]   ;;  %v2398_v36 = vld [vmem:[%s2876_s4 + $0x28] sm:$0xff]   ;;  %v2399_v38 = vld [vmem:[#allocation5 + $0x70] sm:$0xff]  }
  0x54   :  { %2026 = vmatpush3.bf16.msra.mxu0 %v2322_v17  ;;  %2181 = vmatprep.subr.bf16.mxu1 %v2376_v50  ;;  %v746_v17 = vld [vmem:[%s2875_s3 + $0xf0] sm:$0xff]  ;;  %v2397_v33 = vld [vmem:[%s2876_s4 + $0x20] sm:$0xff]   ;;  %v2396_v37 = vld [vmem:[#allocation5 + $0x68] sm:$0xff]  }
  0x55   :  { %810 = vperm.xlu0 %2305, %v728_v40   ;;  %v2359_v35 = vld [vmem:[%s2872_s0 + $0xc4] ss:$8 sps:$4 sm:$0xff]   ;;  %v2361_v40 = vld [vmem:[%s2872_s0 + $0xc0] ss:$8 sps:$4 sm:$0xff]   ;;  %v2402_v42 = vld [vmem:[%s2876_s4 + $0x38] sm:$0xff]  }
  0x56   :  { %815 = vperm.xlu1 %2306, %v729_v43   ;;  %v2400_v43 = vld [vmem:[#allocation5 + $0x78] sm:$0xff]   ;;  %v2365_v45 = vld [vmem:[%s2872_s0 + $0xe4] ss:$8 sps:$4 sm:$0xff]   ;;  %v2367_v46 = vld [vmem:[%s2872_s0 + $0xe0] ss:$8 sps:$4 sm:$0xff]  }
  0x57   :  { %489 = vmatmul.mubr.bf16.vlgmr.msra.gmra.mrb[0].mxu0 %v2323_v18  ;;  %2182 = vmatpush3.bf16.msra.mxu1 %v2376_v50  ;;  %v747_v18 = vld [vmem:[%s2875_s3 + $0xf8] sm:$0xff] }
  0x58   :  { %496 = vmatprep.mubr.bf16.mxu0 %v2326_v20  ;;  %2183 = vmatprep.subr.bf16.mxu1 %v2377_v54  ;;  %v2385_v20 = vld [vmem:[#allocation5 + $0x30] sm:$0xff]  }
  0x59   :  { %820 = vperm.xlu0 %2305, %v730_v44   ;;  %v2364_v44 = vld [vmem:[%s2872_s0 + $0xd0] ss:$8 sps:$4 sm:$0xff]  }
  0x5a   :  { %825 = vperm.xlu1 %2306, %v731_v47   ;;  %v2368_v47 = vld [vmem:[%s2872_s0 + $0xf4] ss:$8 sps:$4 sm:$0xff]  }
  0x5b   :  { %2184 = vmatpush3.bf16.msra.mxu1 %v2377_v54 }
  0x5c   :  { %2185 = vmatprep.subr.bf16.mxu1 %v2378_v60 }
  0x5d   :  { %830 = vperm.xlu0 %2305, %v732_v49  }
  0x5e   :  { %835 = vperm.xlu1 %2306, %v733_v51  }
  0x5f   :  { %497 = vmatmul.mubr.bf16.gmra.mrb[4].mxu0 %v2328_v25  ;;  %2186 = vmatpush3.bf16.msra.mxu1 %v2378_v60  ;;  %v2352_v25 = vld [vmem:[%s2872_s0 + $0x90] ss:$8 sps:$4 sm:$0xff]  }
  0x60   :  { %504 = vmatprep.mubr.bf16.mxu0 %v2329_v27  ;;  %2219 = vmatprep.subr.bf16.mxu1 %v2389_v62  ;;  %v2388_v27 = vld [vmem:[#allocation5 + $0x48] sm:$0xff]  }
  0x61   :  { %840 = vperm.xlu0 %2305, %v734_v53  }
  0x62   :  { %845 = vperm.xlu1 %2306, %v735_v55   ;;  %2188 = vmatmul.mubr.bf16.vlgmr.msra.gmra.mrb[0].mxu1 %v2380_v0 }
  0x63   :  { %2191 = vmatprep.mubr.bf16.mxu1 %v2381_v2  ;;  %2220 = vmatpush3.bf16.msra.mxu1 %v2389_v62 }
  0x64   :  { %2221 = vmatprep.subr.bf16.mxu1 %v2390_v3 }
  0x65   :  { %850 = vperm.xlu0 %2305, %v736_v56  }
  0x66   :  { %855 = vperm.xlu1 %2306, %v737_v58  }
  0x67   :  { %505 = vmatmul.mubr.bf16.gmra.mrb[8].mxu0 %v2331_v31  ;;  %2222 = vmatpush3.bf16.msra.mxu1 %v2390_v3  ;;  %v2392_v31 = vld [vmem:[#allocation5 + $0x58] sm:$0xff]  }
  0x68   :  { %512 = vmatprep.mubr.bf16.mxu0 %v2332_v34  ;;  %2223 = vmatprep.subr.bf16.mxu1 %v2393_v8  ;;  %v2358_v34 = vld [vmem:[%s2872_s0 + $0xb0] ss:$8 sps:$4 sm:$0xff]  }
  0x69   :  { %860 = vperm.xlu0 %2305, %v738_v61  }
  0x6a   :  { %865 = vperm.xlu1 %2306, %v739_v63   ;;  %2192 = vmatmul.mubr.bf16.gmra.mrb[4].mxu1 %v2382_v10 }
  0x6b   :  { %2195 = vmatprep.mubr.bf16.mxu1 %v2383_v12  ;;  %2224 = vmatpush3.bf16.msra.mxu1 %v2393_v8 }
  0x6c   :  { %2225 = vmatprep.subr.bf16.mxu1 %v2394_v13 }
  0x6d   :  { %870 = vperm.xlu0 %2305, %v740_v1  }
  0x6e   :  { %875 = vperm.xlu1 %2306, %v741_v5  }
  0x6f   :  { %513 = vmatmul.mubr.bf16.gmra.mrb[12].mxu0 %v2334_v39  ;;  %2226 = vmatpush3.bf16.msra.mxu1 %v2394_v13  ;;  %v2401_v39 = vld [vmem:[%s2876_s4 + $0x30] sm:$0xff]  }
  0x70   :  { %520 = vmatprep.mubr.bf16.mxu0 %v2335_v41  ;;  %2227 = vmatprep.subr.bf16.mxu1 %v2397_v33  ;;  %v2362_v41 = vld [vmem:[%s2872_s0 + $0xd4] ss:$8 sps:$4 sm:$0xff]  }
  0x71   :  { %880 = vperm.xlu0 %2305, %v742_v7  }
  0x72   :  { %885 = vperm.xlu1 %2306, %v743_v9   ;;  %2196 = vmatmul.mubr.bf16.gmra.mrb[8].mxu1 %v2384_v19 }
  0x73   :  { %2199 = vmatprep.mubr.bf16.mxu1 %v2385_v20  ;;  %2228 = vmatpush3.bf16.msra.mxu1 %v2397_v33 }
  0x74   :  { %2229 = vmatprep.subr.bf16.mxu1 %v2398_v36 }
  0x75   :  { %890 = vperm.xlu0 %2305, %v744_v11  }
  0x76   :  { %895 = vperm.xlu1 %2306, %v745_v15  }
  0x77   :  { %521 = vmatmul.mubr.bf16.gmra.mrb[16].mxu0 %v2337_v48  ;;  %2230 = vmatpush3.bf16.msra.mxu1 %v2398_v36  ;;  %v2370_v48 = vld [vmem:[%s2872_s0 + $0xf0] ss:$8 sps:$4 sm:$0xff]  }
  0x78   :  { %528 = vmatprep.mubr.bf16.mxu0 %v2338_v52  ;;  %2231 = vmatprep.subr.bf16.mxu1 %v2401_v39 }
  0x79   :  { %900 = vperm.xlu0 %2305, %v746_v17  }
  0x7a   :  { %905 = vperm.xlu1 %2306, %v747_v18   ;;  %2200 = vmatmul.mubr.bf16.gmra.mrb[12].mxu1 %v2386_v23 }
  0x7b   :  { %2203 = vmatprep.mubr.bf16.mxu1 %v2387_v24  ;;  %2232 = vmatpush3.bf16.msra.mxu1 %v2401_v39 }
  0x7c   :  { %2233 = vmatprep.subr.bf16.mxu1 %v2402_v42 }
  0x7f   :  { %529 = vmatmul.mubr.bf16.gmra.mrb[20].mxu0 %v2340_v57  ;;  %2234 = vmatpush3.bf16.msra.mxu1 %v2402_v42 }
  0x80   :  { %536 = vmatprep.mubr.bf16.mxu0 %v2341_v59 }
  0x82   :  { %2204 = vmatmul.mubr.bf16.gmra.mrb[16].mxu1 %v2388_v27 }
  0x83   :  { %2207 = vmatprep.mubr.bf16.mxu1 %v2391_v28 }
  0x87   :  { %537 = vmatmul.mubr.bf16.gmra.mrb[24].mxu0 %v2343_v4 }
  0x88   :  { %544 = vmatprep.mubr.bf16.mxu0 %v2344_v6 }
  0x8a   :  { %2208 = vmatmul.mubr.bf16.gmra.mrb[20].mxu1 %v2392_v31 }
  0x8b   :  { %2211 = vmatprep.mubr.bf16.mxu1 %v2395_v32 }
  0x8f   :  { %545 = vmatmul.mubr.bf16.gmra.mrb[28].mxu0 %v2346_v14 }
  0x90   :  { %552 = vmatprep.mubr.bf16.mxu0 %v2347_v16 }
  0x92   :  { %2212 = vmatmul.mubr.bf16.gmra.mrb[24].mxu1 %v2396_v37 }
  0x93   :  { %2215 = vmatprep.mubr.bf16.mxu1 %v2399_v38 }
  0x97   :  { %553 = vmatmul.mubr.bf16.gmra.mrb[32].mxu0 %v2349_v21 }
  0x98   :  { %560 = vmatprep.mubr.bf16.mxu0 %v2350_v22 }
  0x9a   :  { %2216 = vmatmul.mubr.bf16.gmra.mrb[28].mxu1 %v2400_v43 }
  0x9f   :  { %561 = vmatmul.mubr.bf16.gmra.mrb[36].mxu0 %v2352_v25 }
  0xa0   :  { %568 = vmatprep.mubr.bf16.mxu0 %v2353_v26 }
  0xa7   :  { %569 = vmatmul.mubr.bf16.gmra.mrb[40].mxu0 %v2355_v29 }
  0xa8   :  { %576 = vmatprep.mubr.bf16.mxu0 %v2356_v30 }
  0xaf   :  { %577 = vmatmul.mubr.bf16.gmra.mrb[44].mxu0 %v2358_v34 }
  0xb0   :  { %584 = vmatprep.mubr.bf16.mxu0 %v2359_v35 }
  0xb7   :  { %585 = vmatmul.mubr.bf16.gmra.mrb[48].mxu0 %v2361_v40 }
  0xb8   :  { %592 = vmatprep.mubr.bf16.mxu0 %v2362_v41 }
  0xbc   :  { %v751_v49 = vpop.permute.xlu0 %750 }
  0xbd   :  { %v761_v59 = vpop.permute.xlu1 %760 }
  0xbf   :  { %593 = vmatmul.mubr.bf16.gmra.mrb[52].mxu0 %v2364_v44 }
  0xc0   :  { %600 = vmatprep.mubr.bf16.mxu0 %v2365_v45  ;;  %v756_v55 = vpop.permute.xlu0 %755 }
  0xc1   :  { %v766_v3 = vpop.permute.xlu1 %765 }
  0xc4   :  { %v771_v13 = vpop.permute.xlu0 %770 }
  0xc5   :  { %v776_v14 = vpop.permute.xlu1 %775 }
  0xc7   :  { %601 = vmatmul.mubr.bf16.gmra.mrb[56].mxu0 %v2367_v46 }
  0xc8   :  { %608 = vmatprep.mubr.bf16.mxu0 %v2368_v47  ;;  %v781_v24 = vpop.permute.xlu0 %780 }
  0xc9   :  { %v786_v25 = vpop.permute.xlu1 %785 }
  0xcc   :  { %v791_v35 = vpop.permute.xlu0 %790 }
  0xcd   :  { %v796_v36 = vpop.permute.xlu1 %795 }
  0xcf   :  { %609 = vmatmul.mubr.bf16.gmra.mrb[60].mxu0 %v2370_v48 }
  0xd0   :  { %v801_v46 = vpop.permute.xlu0 %800 }
  0xd1   :  { %v806_v47 = vpop.permute.xlu1 %805 }
 0x12a   :  { %v2027_v50 = vpop.f32.mrb[0].mxu0 }
 0x12b   :  { %v2028_v51 = vpop.f32.mrb[1].mxu0 }
 0x12c   :  { %v2029_v52 = vadd.f32 %v2028_v51, %v2027_v50  ;;  %v2030_v53 = vpop.f32.mrb[2].mxu0 }
 0x12d   :  { %v2031_v54 = vpop.f32.mrb[3].mxu0 }
 0x12e   :  { %v2032_v56 = vadd.f32 %v2031_v54, %v2030_v53  ;;  %v908_v57 = vmul.f32 %v2029_v52, %v751_v49 }
 0x130   :  { %v909_v58 = vmul.f32 %v2032_v56, %v756_v55 }
 0x132   :  { %v940_v60 = vpack.c.bf16 %v909_v58, %v908_v57  ;;  %v2033_v61 = vpop.f32.mrb[4].mxu0  ;;  %v811_v57 = vpop.permute.xlu0 %810 }
 0x133   :  { %v2034_v62 = vpop.f32.mrb[5].mxu0  ;;  %v816_v58 = vpop.permute.xlu1 %815 }
 0x134   :  { %v2035_v63 = vadd.f32 %v2034_v62, %v2033_v61  ;;  %v2036_v0 = vpop.f32.mrb[6].mxu0  ;;  %2235 = vmatprep.mubr.bf16.mxu1 %v940_v60 }
 0x135   :  { %v2037_v1 = vpop.f32.mrb[7].mxu0 }
 0x136   :  { %v2038_v2 = vadd.f32 %v2037_v1, %v2036_v0  ;;  %v910_v4 = vmul.f32 %v2035_v63, %v761_v59 }
 0x138   :  { %v911_v5 = vmul.f32 %v2038_v2, %v766_v3 }
 0x13a   :  { %v941_v6 = vpack.c.bf16 %v911_v5, %v910_v4  ;;  %v2039_v7 = vpop.f32.mrb[8].mxu0  ;;  %v821_v4 = vpop.permute.xlu0 %820 }
 0x13b   :  { %v2040_v8 = vpop.f32.mrb[9].mxu0  ;;  %v826_v5 = vpop.permute.xlu1 %825 }
 0x13c   :  { %v2041_v9 = vadd.f32 %v2040_v8, %v2039_v7  ;;  %v2042_v10 = vpop.f32.mrb[10].mxu0  ;;  %2236 = vmatmul.mubr.bf16.vlgmr.msra.gmra.mrb[0].mxu1 %v941_v6 }
 0x13d   :  { %v2043_v11 = vpop.f32.mrb[11].mxu0 }
 0x13e   :  { %v2044_v12 = vadd.f32 %v2043_v11, %v2042_v10  ;;  %v912_v15 = vmul.f32 %v2041_v9, %v771_v13 }
 0x140   :  { %v913_v16 = vmul.f32 %v2044_v12, %v776_v14 }
 0x142   :  { %v2045_v17 = vpop.f32.mrb[12].mxu0  ;;  %v942_v18 = vpack.c.bf16 %v913_v16, %v912_v15  ;;  %v831_v15 = vpop.permute.xlu0 %830 }
 0x143   :  { %v2046_v19 = vpop.f32.mrb[13].mxu0  ;;  %v836_v16 = vpop.permute.xlu1 %835 }
 0x144   :  { %v2047_v20 = vadd.f32 %v2046_v19, %v2045_v17  ;;  %v2048_v21 = vpop.f32.mrb[14].mxu0  ;;  %2239 = vmatprep.mubr.bf16.mxu1 %v942_v18 }
 0x145   :  { %v2049_v22 = vpop.f32.mrb[15].mxu0 }
 0x146   :  { %v2050_v23 = vadd.f32 %v2049_v22, %v2048_v21  ;;  %v914_v26 = vmul.f32 %v2047_v20, %v781_v24 }
 0x148   :  { %v915_v27 = vmul.f32 %v2050_v23, %v786_v25 }
 0x14a   :  { %v2051_v28 = vpop.f32.mrb[16].mxu0  ;;  %v943_v29 = vpack.c.bf16 %v915_v27, %v914_v26  ;;  %v841_v26 = vpop.permute.xlu0 %840 }
 0x14b   :  { %v2052_v30 = vpop.f32.mrb[17].mxu0  ;;  %v846_v27 = vpop.permute.xlu1 %845 }
 0x14c   :  { %v2053_v31 = vadd.f32 %v2052_v30, %v2051_v28  ;;  %v2054_v32 = vpop.f32.mrb[18].mxu0  ;;  %2240 = vmatmul.mubr.bf16.gmra.mrb[4].mxu1 %v943_v29 }
 0x14d   :  { %v2055_v33 = vpop.f32.mrb[19].mxu0 }
 0x14e   :  { %v2056_v34 = vadd.f32 %v2055_v33, %v2054_v32  ;;  %v916_v37 = vmul.f32 %v2053_v31, %v791_v35 }
 0x150   :  { %v917_v38 = vmul.f32 %v2056_v34, %v796_v36 }
 0x152   :  { %v2057_v39 = vpop.f32.mrb[20].mxu0  ;;  %v944_v40 = vpack.c.bf16 %v917_v38, %v916_v37  ;;  %v851_v37 = vpop.permute.xlu0 %850 }
 0x153   :  { %v2058_v41 = vpop.f32.mrb[21].mxu0  ;;  %v856_v38 = vpop.permute.xlu1 %855 }
 0x154   :  { %v2059_v42 = vadd.f32 %v2058_v41, %v2057_v39  ;;  %v2060_v43 = vpop.f32.mrb[22].mxu0  ;;  %2243 = vmatprep.mubr.bf16.mxu1 %v944_v40 }
 0x155   :  { %v2061_v44 = vpop.f32.mrb[23].mxu0 }
 0x156   :  { %v2062_v45 = vadd.f32 %v2061_v44, %v2060_v43  ;;  %v918_v48 = vmul.f32 %v2059_v42, %v801_v46 }
 0x158   :  { %v919_v49 = vmul.f32 %v2062_v45, %v806_v47 }
 0x15a   :  { %v2063_v50 = vpop.f32.mrb[24].mxu0  ;;  %v945_v51 = vpack.c.bf16 %v919_v49, %v918_v48  ;;  %v861_v48 = vpop.permute.xlu0 %860 }
 0x15b   :  { %v2064_v52 = vpop.f32.mrb[25].mxu0  ;;  %v866_v49 = vpop.permute.xlu1 %865 }
 0x15c   :  { %v2065_v53 = vadd.f32 %v2064_v52, %v2063_v50  ;;  %v2066_v54 = vpop.f32.mrb[26].mxu0  ;;  %2244 = vmatmul.mubr.bf16.gmra.mrb[8].mxu1 %v945_v51 }
 0x15d   :  { %v2067_v55 = vpop.f32.mrb[27].mxu0 }
 0x15e   :  { %v2068_v56 = vadd.f32 %v2067_v55, %v2066_v54  ;;  %v920_v59 = vmul.f32 %v2065_v53, %v811_v57 }
 0x160   :  { %v921_v60 = vmul.f32 %v2068_v56, %v816_v58 }
 0x162   :  { %v2069_v61 = vpop.f32.mrb[28].mxu0  ;;  %v946_v62 = vpack.c.bf16 %v921_v60, %v920_v59  ;;  %v871_v59 = vpop.permute.xlu0 %870 }
 0x163   :  { %v2070_v63 = vpop.f32.mrb[29].mxu0  ;;  %v876_v60 = vpop.permute.xlu1 %875 }
 0x164   :  { %v2071_v0 = vadd.f32 %v2070_v63, %v2069_v61  ;;  %v2072_v1 = vpop.f32.mrb[30].mxu0  ;;  %2247 = vmatprep.mubr.bf16.mxu1 %v946_v62 }
 0x165   :  { %v2073_v2 = vpop.f32.mrb[31].mxu0 }
 0x166   :  { %v2074_v3 = vadd.f32 %v2073_v2, %v2072_v1  ;;  %v922_v6 = vmul.f32 %v2071_v0, %v821_v4 }
 0x168   :  { %v923_v7 = vmul.f32 %v2074_v3, %v826_v5 }
 0x16a   :  { %v2075_v8 = vpop.f32.mrb[32].mxu0  ;;  %v947_v9 = vpack.c.bf16 %v923_v7, %v922_v6  ;;  %v881_v6 = vpop.permute.xlu0 %880 }
 0x16b   :  { %v2076_v10 = vpop.f32.mrb[33].mxu0  ;;  %v886_v7 = vpop.permute.xlu1 %885 }
 0x16c   :  { %v2077_v11 = vadd.f32 %v2076_v10, %v2075_v8  ;;  %v2078_v12 = vpop.f32.mrb[34].mxu0  ;;  %2248 = vmatmul.mubr.bf16.gmra.mrb[12].mxu1 %v947_v9 }
 0x16d   :  { %v2079_v13 = vpop.f32.mrb[35].mxu0 }
 0x16e   :  { %v2080_v14 = vadd.f32 %v2079_v13, %v2078_v12  ;;  %v924_v17 = vmul.f32 %v2077_v11, %v831_v15 }
 0x170   :  { %v925_v18 = vmul.f32 %v2080_v14, %v836_v16 }
 0x172   :  { %v2081_v19 = vpop.f32.mrb[36].mxu0  ;;  %v948_v20 = vpack.c.bf16 %v925_v18, %v924_v17  ;;  %v891_v17 = vpop.permute.xlu0 %890 }
 0x173   :  { %v2082_v21 = vpop.f32.mrb[37].mxu0  ;;  %v896_v18 = vpop.permute.xlu1 %895 }
 0x174   :  { %v2083_v22 = vadd.f32 %v2082_v21, %v2081_v19  ;;  %v2084_v23 = vpop.f32.mrb[38].mxu0  ;;  %2251 = vmatprep.mubr.bf16.mxu1 %v948_v20 }
 0x175   :  { %v2085_v24 = vpop.f32.mrb[39].mxu0 }
 0x176   :  { %v2086_v25 = vadd.f32 %v2085_v24, %v2084_v23  ;;  %v926_v28 = vmul.f32 %v2083_v22, %v841_v26 }
 0x178   :  { %v927_v29 = vmul.f32 %v2086_v25, %v846_v27 }
 0x17a   :  { %v2087_v30 = vpop.f32.mrb[40].mxu0  ;;  %v949_v31 = vpack.c.bf16 %v927_v29, %v926_v28  ;;  %v901_v28 = vpop.permute.xlu0 %900 }
 0x17b   :  { %v2088_v32 = vpop.f32.mrb[41].mxu0  ;;  %v906_v29 = vpop.permute.xlu1 %905 }
 0x17c   :  { %v2089_v33 = vadd.f32 %v2088_v32, %v2087_v30  ;;  %v2090_v34 = vpop.f32.mrb[42].mxu0  ;;  %2252 = vmatmul.mubr.bf16.gmra.mrb[16].mxu1 %v949_v31 }
 0x17d   :  { %v2091_v35 = vpop.f32.mrb[43].mxu0 }
 0x17e   :  { %v2092_v36 = vadd.f32 %v2091_v35, %v2090_v34  ;;  %v928_v39 = vmul.f32 %v2089_v33, %v851_v37  ;;  %v2790_v33 = vld [vmem:[%s2878_s6] ss:$0 sm:$0xff] }
 0x180   :  { %v929_v40 = vmul.f32 %v2092_v36, %v856_v38 }
 0x182   :  { %v2093_v41 = vpop.f32.mrb[44].mxu0  ;;  %v950_v42 = vpack.c.bf16 %v929_v40, %v928_v39 }
 0x183   :  { %v2094_v43 = vpop.f32.mrb[45].mxu0 }
 0x184   :  { %v2095_v44 = vadd.f32 %v2094_v43, %v2093_v41  ;;  %v2096_v45 = vpop.f32.mrb[46].mxu0  ;;  %2255 = vmatprep.mubr.bf16.mxu1 %v950_v42 }
 0x185   :  { %v2097_v46 = vpop.f32.mrb[47].mxu0 }
 0x186   :  { %v2098_v47 = vadd.f32 %v2097_v46, %v2096_v45  ;;  %v930_v50 = vmul.f32 %v2095_v44, %v861_v48 }
 0x188   :  { %v931_v51 = vmul.f32 %v2098_v47, %v866_v49 }
 0x18a   :  { %v2099_v52 = vpop.f32.mrb[48].mxu0  ;;  %v951_v53 = vpack.c.bf16 %v931_v51, %v930_v50 }
 0x18b   :  { %v2100_v54 = vpop.f32.mrb[49].mxu0 }
 0x18c   :  { %v2101_v55 = vadd.f32 %v2100_v54, %v2099_v52  ;;  %v2102_v56 = vpop.f32.mrb[50].mxu0  ;;  %2256 = vmatmul.mubr.bf16.gmra.mrb[20].mxu1 %v951_v53 }
 0x18d   :  { %v2103_v57 = vpop.f32.mrb[51].mxu0 }
 0x18e   :  { %v2104_v58 = vadd.f32 %v2103_v57, %v2102_v56  ;;  %v932_v61 = vmul.f32 %v2101_v55, %v871_v59 }
 0x190   :  { %v933_v62 = vmul.f32 %v2104_v58, %v876_v60 }
 0x192   :  { %v2105_v63 = vpop.f32.mrb[52].mxu0  ;;  %v952_v0 = vpack.c.bf16 %v933_v62, %v932_v61 }
 0x193   :  { %v2106_v1 = vpop.f32.mrb[53].mxu0 }
 0x194   :  { %v2107_v2 = vadd.f32 %v2106_v1, %v2105_v63  ;;  %v2108_v3 = vpop.f32.mrb[54].mxu0  ;;  %2259 = vmatprep.mubr.bf16.mxu1 %v952_v0 }
 0x195   :  { %v2109_v4 = vpop.f32.mrb[55].mxu0 }
 0x196   :  { %v2110_v5 = vadd.f32 %v2109_v4, %v2108_v3  ;;  %v934_v8 = vmul.f32 %v2107_v2, %v881_v6 }
 0x198   :  { %v935_v9 = vmul.f32 %v2110_v5, %v886_v7 }
 0x19a   :  { %v2111_v10 = vpop.f32.mrb[56].mxu0  ;;  %v953_v11 = vpack.c.bf16 %v935_v9, %v934_v8 }
 0x19b   :  { %v2112_v12 = vpop.f32.mrb[57].mxu0 }
 0x19c   :  { %v2113_v13 = vadd.f32 %v2112_v12, %v2111_v10  ;;  %v2114_v14 = vpop.f32.mrb[58].mxu0  ;;  %2260 = vmatmul.mubr.bf16.gmra.mrb[24].mxu1 %v953_v11 }
 0x19d   :  { %v2115_v15 = vpop.f32.mrb[59].mxu0 }
 0x19e   :  { %v2116_v16 = vadd.f32 %v2115_v15, %v2114_v14  ;;  %v936_v19 = vmul.f32 %v2113_v13, %v891_v17 }
 0x1a0   :  { %v937_v20 = vmul.f32 %v2116_v16, %v896_v18 }
 0x1a2   :  { %v2117_v21 = vpop.f32.mrb[60].mxu0  ;;  %v954_v22 = vpack.c.bf16 %v937_v20, %v936_v19 }
 0x1a3   :  { %v2118_v23 = vpop.f32.mrb[61].mxu0 }
 0x1a4   :  { %v2119_v24 = vadd.f32 %v2118_v23, %v2117_v21  ;;  %v2120_v25 = vpop.f32.mrb[62].mxu0  ;;  %2263 = vmatprep.mubr.bf16.mxu1 %v954_v22 }
 0x1a5   :  { %v2121_v26 = vpop.f32.mrb[63].mxu0 }
 0x1a6   :  { %v2122_v27 = vadd.f32 %v2121_v26, %v2120_v25  ;;  %v938_v30 = vmul.f32 %v2119_v24, %v901_v28 }
 0x1a8   :  { %v939_v31 = vmul.f32 %v2122_v27, %v906_v29 }
 0x1aa   :  { %v955_v32 = vpack.c.bf16 %v939_v31, %v938_v30 }
 0x1ac   :  { %2264 = vmatmul.mubr.bf16.gmra.mrb[28].mxu1 %v955_v32 }
 0x20f   :  { %v2237_v34 = vpop.f32.mrb[0].mxu1 }
 0x210   :  { %v1543_v35 = vadd.f32 %v2237_v34, %v2790_v33  ;;  %v1407_v36 = vpop.f32.mrb[1].mxu1 }
 0x211   :  { %v1541_v37 = vadd.f32 %v2790_v33, %v1407_v36  ;;  %v2238_v38 = vpop.f32.mrb[2].mxu1 }
 0x212   :  { %v1544_v39 = vadd.f32 %v2238_v38, %v2790_v33  ;;  %v1410_v40 = vpop.f32.mrb[3].mxu1  ;;  %v1575_v42 = vmax.f32 %v1543_v35, 0.0 }
 0x213   :  { %v1542_v41 = vadd.f32 %v2790_v33, %v1410_v40  ;;  %v1573_v44 = vmax.f32 %v1541_v37, 0.0 }
 0x214   :  { %v1576_v43 = vmax.f32 %v1544_v39, 0.0 }
 0x215   :  { %v1574_v45 = vmax.f32 %v1542_v41, 0.0 }
 0x216   :  { %v1924_v46 = vpack.c.bf16 %v1576_v43, %v1575_v42 }
 0x217   :  { %v1919_v47 = vpack.c.bf16 %v1574_v45, %v1573_v44 }
 0x218   :  { %1996 = vst [vmem:[%s2879_s7 + $0x8] sm:$0xff] %v1924_v46  }
 0x219   :  { %1920 = vst [vmem:[%s2879_s7] sm:$0xff] %v1919_v47  }
 0x21f   :  { %v2241_v48 = vpop.f32.mrb[4].mxu1 }
 0x220   :  { %v1547_v49 = vadd.f32 %v2241_v48, %v2790_v33  ;;  %v1423_v50 = vpop.f32.mrb[5].mxu1 }
 0x221   :  { %v1545_v51 = vadd.f32 %v2790_v33, %v1423_v50  ;;  %v2242_v52 = vpop.f32.mrb[6].mxu1 }
 0x222   :  { %v1548_v53 = vadd.f32 %v2242_v52, %v2790_v33  ;;  %v1426_v54 = vpop.f32.mrb[7].mxu1  ;;  %v1579_v56 = vmax.f32 %v1547_v49, 0.0 }
 0x223   :  { %v1546_v55 = vadd.f32 %v2790_v33, %v1426_v54  ;;  %v1577_v58 = vmax.f32 %v1545_v51, 0.0 }
 0x224   :  { %v1580_v57 = vmax.f32 %v1548_v53, 0.0 }
 0x225   :  { %v1578_v59 = vmax.f32 %v1546_v55, 0.0 }
 0x226   :  { %v1934_v60 = vpack.c.bf16 %v1580_v57, %v1579_v56 }
 0x227   :  { %v1929_v61 = vpack.c.bf16 %v1578_v59, %v1577_v58 }
 0x228   :  { %1998 = vst [vmem:[%s2879_s7 + $0x18] sm:$0xff] %v1934_v60  }
 0x229   :  { %1997 = vst [vmem:[%s2879_s7 + $0x10] sm:$0xff] %v1929_v61  }
 0x22f   :  { %v2245_v62 = vpop.f32.mrb[8].mxu1 }
 0x230   :  { %v1551_v63 = vadd.f32 %v2245_v62, %v2790_v33  ;;  %v1439_v0 = vpop.f32.mrb[9].mxu1 }
 0x231   :  { %v1549_v1 = vadd.f32 %v2790_v33, %v1439_v0  ;;  %v2246_v2 = vpop.f32.mrb[10].mxu1 }
 0x232   :  { %v1552_v3 = vadd.f32 %v2246_v2, %v2790_v33  ;;  %v1442_v4 = vpop.f32.mrb[11].mxu1  ;;  %v1583_v6 = vmax.f32 %v1551_v63, 0.0 }
 0x233   :  { %v1550_v5 = vadd.f32 %v2790_v33, %v1442_v4  ;;  %v1581_v8 = vmax.f32 %v1549_v1, 0.0 }
 0x234   :  { %v1584_v7 = vmax.f32 %v1552_v3, 0.0 }
 0x235   :  { %v1582_v9 = vmax.f32 %v1550_v5, 0.0 }
 0x236   :  { %v1944_v10 = vpack.c.bf16 %v1584_v7, %v1583_v6 }
 0x237   :  { %v1939_v11 = vpack.c.bf16 %v1582_v9, %v1581_v8 }
 0x238   :  { %2000 = vst [vmem:[%s2879_s7 + $0x28] sm:$0xff] %v1944_v10  }
 0x239   :  { %1999 = vst [vmem:[%s2879_s7 + $0x20] sm:$0xff] %v1939_v11  }
 0x23f   :  { %v2249_v12 = vpop.f32.mrb[12].mxu1 }
 0x240   :  { %v1555_v13 = vadd.f32 %v2249_v12, %v2790_v33  ;;  %v1455_v14 = vpop.f32.mrb[13].mxu1 }
 0x241   :  { %v1553_v15 = vadd.f32 %v2790_v33, %v1455_v14  ;;  %v2250_v16 = vpop.f32.mrb[14].mxu1 }
 0x242   :  { %v1556_v17 = vadd.f32 %v2250_v16, %v2790_v33  ;;  %v1458_v18 = vpop.f32.mrb[15].mxu1  ;;  %v1587_v20 = vmax.f32 %v1555_v13, 0.0 }
 0x243   :  { %v1554_v19 = vadd.f32 %v2790_v33, %v1458_v18  ;;  %v1585_v22 = vmax.f32 %v1553_v15, 0.0 }
 0x244   :  { %v1588_v21 = vmax.f32 %v1556_v17, 0.0 }
 0x245   :  { %v1586_v23 = vmax.f32 %v1554_v19, 0.0 }
 0x246   :  { %v1954_v24 = vpack.c.bf16 %v1588_v21, %v1587_v20 }
 0x247   :  { %v1949_v25 = vpack.c.bf16 %v1586_v23, %v1585_v22 }
 0x248   :  { %2002 = vst [vmem:[%s2879_s7 + $0x38] sm:$0xff] %v1954_v24  }
 0x249   :  { %2001 = vst [vmem:[%s2879_s7 + $0x30] sm:$0xff] %v1949_v25  }
 0x24f   :  { %v2253_v26 = vpop.f32.mrb[16].mxu1 }
 0x250   :  { %v1559_v27 = vadd.f32 %v2253_v26, %v2790_v33  ;;  %v1471_v28 = vpop.f32.mrb[17].mxu1 }
 0x251   :  { %v1557_v29 = vadd.f32 %v2790_v33, %v1471_v28  ;;  %v2254_v30 = vpop.f32.mrb[18].mxu1 }
 0x252   :  { %v1560_v31 = vadd.f32 %v2254_v30, %v2790_v33  ;;  %v1474_v32 = vpop.f32.mrb[19].mxu1  ;;  %v1591_v35 = vmax.f32 %v1559_v27, 0.0 }
 0x253   :  { %v1558_v34 = vadd.f32 %v2790_v33, %v1474_v32  ;;  %v1589_v37 = vmax.f32 %v1557_v29, 0.0 }
 0x254   :  { %v1592_v36 = vmax.f32 %v1560_v31, 0.0 }
 0x255   :  { %v1590_v38 = vmax.f32 %v1558_v34, 0.0 }
 0x256   :  { %v1964_v39 = vpack.c.bf16 %v1592_v36, %v1591_v35 }
 0x257   :  { %v1959_v40 = vpack.c.bf16 %v1590_v38, %v1589_v37 }
 0x258   :  { %2004 = vst [vmem:[%s2879_s7 + $0x48] sm:$0xff] %v1964_v39  }
 0x259   :  { %2003 = vst [vmem:[%s2879_s7 + $0x40] sm:$0xff] %v1959_v40  }
 0x25f   :  { %v2257_v41 = vpop.f32.mrb[20].mxu1 }
 0x260   :  { %v1563_v42 = vadd.f32 %v2257_v41, %v2790_v33  ;;  %v1487_v43 = vpop.f32.mrb[21].mxu1 }
 0x261   :  { %v1561_v44 = vadd.f32 %v2790_v33, %v1487_v43  ;;  %v2258_v45 = vpop.f32.mrb[22].mxu1 }
 0x262   :  { %v1564_v46 = vadd.f32 %v2258_v45, %v2790_v33  ;;  %v1490_v47 = vpop.f32.mrb[23].mxu1  ;;  %v1595_v49 = vmax.f32 %v1563_v42, 0.0 }
 0x263   :  { %v1562_v48 = vadd.f32 %v2790_v33, %v1490_v47  ;;  %v1593_v51 = vmax.f32 %v1561_v44, 0.0 }
 0x264   :  { %v1596_v50 = vmax.f32 %v1564_v46, 0.0 }
 0x265   :  { %v1594_v52 = vmax.f32 %v1562_v48, 0.0 }
 0x266   :  { %v1974_v53 = vpack.c.bf16 %v1596_v50, %v1595_v49 }
 0x267   :  { %v1969_v54 = vpack.c.bf16 %v1594_v52, %v1593_v51 }
 0x268   :  { %2006 = vst [vmem:[%s2879_s7 + $0x58] sm:$0xff] %v1974_v53  }
 0x269   :  { %2005 = vst [vmem:[%s2879_s7 + $0x50] sm:$0xff] %v1969_v54  }
 0x26f   :  { %v2261_v55 = vpop.f32.mrb[24].mxu1 }
 0x270   :  { %v1567_v56 = vadd.f32 %v2261_v55, %v2790_v33  ;;  %v1503_v57 = vpop.f32.mrb[25].mxu1 }
 0x271   :  { %v1565_v58 = vadd.f32 %v2790_v33, %v1503_v57  ;;  %v2262_v59 = vpop.f32.mrb[26].mxu1 }
 0x272   :  { %v1568_v60 = vadd.f32 %v2262_v59, %v2790_v33  ;;  %v1506_v61 = vpop.f32.mrb[27].mxu1  ;;  %v1599_v63 = vmax.f32 %v1567_v56, 0.0 }
 0x273   :  { %v1566_v62 = vadd.f32 %v2790_v33, %v1506_v61  ;;  %v1597_v1 = vmax.f32 %v1565_v58, 0.0 }
 0x274   :  { %v1600_v0 = vmax.f32 %v1568_v60, 0.0 }
 0x275   :  { %v1598_v2 = vmax.f32 %v1566_v62, 0.0 }
 0x276   :  { %v1984_v3 = vpack.c.bf16 %v1600_v0, %v1599_v63 }
 0x277   :  { %v1979_v4 = vpack.c.bf16 %v1598_v2, %v1597_v1 }
 0x278   :  { %2008 = vst [vmem:[%s2879_s7 + $0x68] sm:$0xff] %v1984_v3  }
 0x279   :  { %2007 = vst [vmem:[%s2879_s7 + $0x60] sm:$0xff] %v1979_v4  }
 0x27f   :  { %v2265_v5 = vpop.f32.mrb[28].mxu1 }
 0x280   :  { %v1571_v6 = vadd.f32 %v2265_v5, %v2790_v33  ;;  %v1519_v7 = vpop.f32.mrb[29].mxu1 }
 0x281   :  { %v1569_v8 = vadd.f32 %v2790_v33, %v1519_v7  ;;  %v2266_v9 = vpop.f32.mrb[30].mxu1 }
 0x282   :  { %v1572_v10 = vadd.f32 %v2266_v9, %v2790_v33  ;;  %v1522_v11 = vpop.f32.mrb[31].mxu1  ;;  %v1603_v13 = vmax.f32 %v1571_v6, 0.0 }
 0x283   :  { %v1570_v12 = vadd.f32 %v2790_v33, %v1522_v11  ;;  %v1601_v15 = vmax.f32 %v1569_v8, 0.0 }
 0x284   :  { %v1604_v14 = vmax.f32 %v1572_v10, 0.0 }
 0x285   :  { %v1602_v16 = vmax.f32 %v1570_v12, 0.0 }
 0x286   :  { %v1994_v17 = vpack.c.bf16 %v1604_v14, %v1603_v13 }
 0x287   :  { %v1989_v18 = vpack.c.bf16 %v1602_v16, %v1601_v15 }
 0x288   :  { %2010 = vst [vmem:[%s2879_s7 + $0x78] sm:$0xff] %v1994_v17  }
 0x289   :  { %2009 = vst [vmem:[%s2879_s7 + $0x70] sm:$0xff] %v1989_v18  }
 0x28a   :  { %1769 = vsyncpa [#allocation4], 1 }
 0x28b   :  { %1770 = vsyncpa [#allocation6], 1 }

// kernel: model_forward.7
= control target key start
LH: loop header
LB: loop body
LE: loop exit
PB: predicated region body
PF: predicated region fallthrough
CT: control target
= control target key end

     0   :  { %v2324_v1 = vmov 0   ;;  %s2798_s1 = inlined_call_operand.vmem [shape: bf16[256,128], index: 1, kind: input, shape index: {}]   ;;  %s2799_s0 = inlined_call_operand.vmem [shape: bf16[256,256], index: 0, kind: input, shape index: {}]   ;;  %s2800_s3 = inlined_call_operand.vmem [shape: f32[256,1], index: 3, kind: input, shape index: {}]   ;;  %s2801_s5 = inlined_call_operand.vmem [shape: bf16[128,128], index: 5, kind: input, shape index: {}]   ;;  %s2802_s2 = inlined_call_operand.vmem [shape: bf16[256,128], index: 2, kind: input, shape index: {}]   ;;  %s2803_s4 = inlined_call_operand.vmem [shape: bf16[128,128], index: 4, kind: input, shape index: {}]   ;;  %s2804_s6 = inlined_call_operand.vmem [shape: f32[1,128], index: 6, kind: input, shape index: {}]   ;;  %s2805_s7 = inlined_call_operand.vmem [shape: bf16[128,256], index: 7, kind: output, shape index: {}]  }
   0x1   :  { %v2228_v0 = vld [vmem:[%s2798_s1 + $0x40] sm:$0xff]   ;;  %2114 = vset.pattern.permute.xlu0 %v2324_v1  ;;  %2115 = vset.pattern.permute.xlu1 %v2324_v1  ;;  %v2230_v3 = vld [vmem:[%s2798_s1 + $0x48] sm:$0xff]   ;;  %v2232_v5 = vld [vmem:[%s2798_s1 + $0x50] sm:$0xff]  }
   0x2   :  { %v2229_v2 = vld [vmem:[%s2798_s1] sm:$0xff]   ;;  %1825 = vmatprep.subr.bf16.mxu0 %v2228_v0  ;;  %v2231_v4 = vld [vmem:[%s2798_s1 + $0x8] sm:$0xff]   ;;  %v2233_v6 = vld [vmem:[%s2798_s1 + $0x10] sm:$0xff]  }
   0x3   :  { %1826 = vmatpush3.bf16.msra.mxu0 %v2229_v2  ;;  %v2234_v7 = vld [vmem:[%s2798_s1 + $0x58] sm:$0xff]   ;;  %v2236_v9 = vld [vmem:[%s2798_s1 + $0x60] sm:$0xff]   ;;  %v2238_v11 = vld [vmem:[%s2798_s1 + $0x68] sm:$0xff]  }
   0x4   :  { %1827 = vmatprep.subr.bf16.mxu0 %v2230_v3  ;;  %v2235_v8 = vld [vmem:[%s2798_s1 + $0x18] sm:$0xff]   ;;  %v2237_v10 = vld [vmem:[%s2798_s1 + $0x20] sm:$0xff]   ;;  %v2239_v13 = vld [vmem:[%s2798_s1 + $0x28] sm:$0xff]  }
   0x5   :  { %v2246_v12 = vld [vmem:[%s2799_s0 + $0x4] ss:$8 sps:$4 sm:$0xff]   ;;  %v2240_v14 = vld [vmem:[%s2798_s1 + $0x70] sm:$0xff]   ;;  %v2242_v16 = vld [vmem:[%s2798_s1 + $0x78] sm:$0xff]  }
   0x6   :  { %447 = vmatprep.mubr.bf16.mxu0 %v2246_v12  ;;  %v2241_v15 = vld [vmem:[%s2798_s1 + $0x30] sm:$0xff]   ;;  %v2243_v17 = vld [vmem:[%s2798_s1 + $0x38] sm:$0xff]   ;;  %v675_v18 = vld [vmem:[%s2800_s3] sm:$0xff] }
   0x7   :  { %1828 = vmatpush3.bf16.msra.mxu0 %v2231_v4  ;;  %709 = vperm.xlu0 %2114, %v675_v18   ;;  %v677_v19 = vld [vmem:[%s2800_s3 + $0x10] sm:$0xff]  ;;  %v676_v20 = vld [vmem:[%s2800_s3 + $0x8] sm:$0xff]  ;;  %v678_v22 = vld [vmem:[%s2800_s3 + $0x18] sm:$0xff] }
   0x8   :  { %1829 = vmatprep.subr.bf16.mxu0 %v2232_v5  ;;  %719 = vperm.xlu1 %2115, %v677_v19   ;;  %v2244_v21 = vld [vmem:[%s2799_s0] ss:$8 sps:$4 sm:$0xff]   ;;  %v2247_v23 = vld [vmem:[%s2799_s0 + $0x14] ss:$8 sps:$4 sm:$0xff]   ;;  %v2249_v27 = vld [vmem:[%s2799_s0 + $0x10] ss:$8 sps:$4 sm:$0xff]  }
   0x9   :  { %v679_v24 = vld [vmem:[%s2800_s3 + $0x20] sm:$0xff]  ;;  %v680_v25 = vld [vmem:[%s2800_s3 + $0x28] sm:$0xff]  ;;  %v681_v26 = vld [vmem:[%s2800_s3 + $0x30] sm:$0xff] }
   0xa   :  { %v682_v28 = vld [vmem:[%s2800_s3 + $0x38] sm:$0xff]  ;;  %v2250_v29 = vld [vmem:[%s2799_s0 + $0x24] ss:$8 sps:$4 sm:$0xff]   ;;  %v685_v32 = vld [vmem:[%s2800_s3 + $0x50] sm:$0xff] }
   0xb   :  { %1830 = vmatpush3.bf16.msra.mxu0 %v2233_v6  ;;  %714 = vperm.xlu0 %2114, %v676_v20   ;;  %v683_v30 = vld [vmem:[%s2800_s3 + $0x40] sm:$0xff]  ;;  %v684_v31 = vld [vmem:[%s2800_s3 + $0x48] sm:$0xff]  ;;  %v686_v34 = vld [vmem:[%s2800_s3 + $0x58] sm:$0xff] }
   0xc   :  { %1831 = vmatprep.subr.bf16.mxu0 %v2234_v7  ;;  %724 = vperm.xlu1 %2115, %v678_v22   ;;  %v2252_v33 = vld [vmem:[%s2799_s0 + $0x20] ss:$8 sps:$4 sm:$0xff]   ;;  %v2253_v35 = vld [vmem:[%s2799_s0 + $0x34] ss:$8 sps:$4 sm:$0xff]   ;;  %v2255_v40 = vld [vmem:[%s2799_s0 + $0x30] ss:$8 sps:$4 sm:$0xff]  }
   0xd   :  { %v687_v36 = vld [vmem:[%s2800_s3 + $0x60] sm:$0xff]  ;;  %v2293_v38 = vld [vmem:[%s2801_s5 + $0x8] sm:$0xff]   ;;  %v2294_v41 = vld [vmem:[%s2801_s5 + $0x10] sm:$0xff]  }
   0xe   :  { %v2292_v37 = vld [vmem:[%s2801_s5] sm:$0xff]   ;;  %v688_v39 = vld [vmem:[%s2800_s3 + $0x68] sm:$0xff]  ;;  %v689_v43 = vld [vmem:[%s2800_s3 + $0x70] sm:$0xff] }
   0xf   :  { %1832 = vmatpush3.bf16.msra.mxu0 %v2235_v8  ;;  %729 = vperm.xlu0 %2114, %v679_v24   ;;  %v2256_v42 = vld [vmem:[%s2799_s0 + $0x44] ss:$8 sps:$4 sm:$0xff]   ;;  %v690_v44 = vld [vmem:[%s2800_s3 + $0x78] sm:$0xff]  ;;  %v2258_v49 = vld [vmem:[%s2799_s0 + $0x40] ss:$8 sps:$4 sm:$0xff]  }
  0x10   :  { %1833 = vmatprep.subr.bf16.mxu0 %v2236_v9  ;;  %734 = vperm.xlu1 %2115, %v680_v25   ;;  %v2295_v45 = vld [vmem:[%s2801_s5 + $0x18] sm:$0xff]   ;;  %v2300_v46 = vld [vmem:[%s2802_s2] sm:$0xff]   ;;  %v692_v48 = vld [vmem:[%s2800_s3 + $0x88] sm:$0xff] }
  0x11   :  { %1985 = vmatprep.subr.bf16.mxu1 %v2292_v37  ;;  %v691_v47 = vld [vmem:[%s2800_s3 + $0x80] sm:$0xff]  ;;  %2001 = vmatprep.mubr.bf16.mxu1 %v2300_v46  ;;  %v693_v51 = vld [vmem:[%s2800_s3 + $0x90] sm:$0xff]  ;;  %v694_v52 = vld [vmem:[%s2800_s3 + $0x98] sm:$0xff] }
  0x12   :  { %1986 = vmatpush3.bf16.msra.mxu1 %v2292_v37  ;;  %v2296_v50 = vld [vmem:[%s2801_s5 + $0x20] sm:$0xff]   ;;  %v2259_v53 = vld [vmem:[%s2799_s0 + $0x54] ss:$8 sps:$4 sm:$0xff]   ;;  %v2297_v54 = vld [vmem:[%s2801_s5 + $0x28] sm:$0xff]  }
  0x13   :  { %1834 = vmatpush3.bf16.msra.mxu0 %v2237_v10  ;;  %739 = vperm.xlu0 %2114, %v681_v26   ;;  %v695_v55 = vld [vmem:[%s2800_s3 + $0xa0] sm:$0xff]  ;;  %v696_v56 = vld [vmem:[%s2800_s3 + $0xa8] sm:$0xff]  ;;  %v2261_v57 = vld [vmem:[%s2799_s0 + $0x50] ss:$8 sps:$4 sm:$0xff]  }
  0x14   :  { %1835 = vmatprep.subr.bf16.mxu0 %v2238_v11  ;;  %744 = vperm.xlu1 %2115, %v682_v28   ;;  %v2298_v58 = vld [vmem:[%s2801_s5 + $0x30] sm:$0xff]   ;;  %v2262_v59 = vld [vmem:[%s2799_s0 + $0x64] ss:$8 sps:$4 sm:$0xff]   ;;  %v698_v61 = vld [vmem:[%s2800_s3 + $0xb8] sm:$0xff] }
  0x15   :  { %1987 = vmatprep.subr.bf16.mxu1 %v2293_v38  ;;  %v697_v60 = vld [vmem:[%s2800_s3 + $0xb0] sm:$0xff]  ;;  %v699_v62 = vld [vmem:[%s2800_s3 + $0xc0] sm:$0xff]  ;;  %v2299_v63 = vld [vmem:[%s2801_s5 + $0x38] sm:$0xff]  }
  0x16   :  { %1988 = vmatpush3.bf16.msra.mxu1 %v2293_v38  ;;  %v700_v0 = vld [vmem:[%s2800_s3 + $0xc8] sm:$0xff]  ;;  %v2309_v1 = vld [vmem:[%s2803_s4] sm:$0xff]   ;;  %v701_v2 = vld [vmem:[%s2800_s3 + $0xd0] sm:$0xff] }
  0x17   :  { %1836 = vmatpush3.bf16.msra.mxu0 %v2239_v13  ;;  %749 = vperm.xlu0 %2114, %v683_v30   ;;  %v2264_v3 = vld [vmem:[%s2799_s0 + $0x60] ss:$8 sps:$4 sm:$0xff]   ;;  %v702_v4 = vld [vmem:[%s2800_s3 + $0xd8] sm:$0xff]  ;;  %v2302_v7 = vld [vmem:[%s2802_s2 + $0x10] sm:$0xff]  }
  0x18   :  { %1837 = vmatprep.subr.bf16.mxu0 %v2240_v14  ;;  %754 = vperm.xlu1 %2115, %v684_v31   ;;  %v2301_v5 = vld [vmem:[%s2802_s2 + $0x8] sm:$0xff]   ;;  %v2265_v6 = vld [vmem:[%s2799_s0 + $0x74] ss:$8 sps:$4 sm:$0xff]   ;;  %v703_v8 = vld [vmem:[%s2800_s3 + $0xe0] sm:$0xff] }
  0x19   :  { %1989 = vmatprep.subr.bf16.mxu1 %v2294_v41  ;;  %v2311_v9 = vld [vmem:[%s2803_s4 + $0x8] sm:$0xff]   ;;  %v705_v11 = vld [vmem:[%s2800_s3 + $0xf0] sm:$0xff]  ;;  %v706_v14 = vld [vmem:[%s2800_s3 + $0xf8] sm:$0xff] }
  0x1a   :  { %1990 = vmatpush3.bf16.msra.mxu1 %v2294_v41  ;;  %v704_v10 = vld [vmem:[%s2800_s3 + $0xe8] sm:$0xff]  ;;  %v2314_v12 = vld [vmem:[%s2803_s4 + $0x10] sm:$0xff]   ;;  %v2315_v18 = vld [vmem:[%s2803_s4 + $0x18] sm:$0xff]  }
  0x1b   :  { %1838 = vmatpush3.bf16.msra.mxu0 %v2241_v15  ;;  %759 = vperm.xlu0 %2114, %v685_v32   ;;  %v2267_v13 = vld [vmem:[%s2799_s0 + $0x70] ss:$8 sps:$4 sm:$0xff]   ;;  %v2270_v19 = vld [vmem:[%s2799_s0 + $0x80] ss:$8 sps:$4 sm:$0xff]   ;;  %v2274_v25 = vld [vmem:[%s2799_s0 + $0xa4] ss:$8 sps:$4 sm:$0xff]  }
  0x1c   :  { %1839 = vmatprep.subr.bf16.mxu0 %v2242_v16  ;;  %764 = vperm.xlu1 %2115, %v686_v34   ;;  %v2303_v15 = vld [vmem:[%s2802_s2 + $0x18] sm:$0xff]   ;;  %v2268_v16 = vld [vmem:[%s2799_s0 + $0x84] ss:$8 sps:$4 sm:$0xff]   ;;  %v2306_v22 = vld [vmem:[%s2802_s2 + $0x30] sm:$0xff]  }
  0x1d   :  { %1991 = vmatprep.subr.bf16.mxu1 %v2295_v45  ;;  %v2305_v20 = vld [vmem:[%s2802_s2 + $0x28] sm:$0xff]   ;;  %v2307_v24 = vld [vmem:[%s2802_s2 + $0x38] sm:$0xff]   ;;  %v2308_v26 = vld [vmem:[%s2802_s2 + $0x40] sm:$0xff]  }
  0x1e   :  { %1992 = vmatpush3.bf16.msra.mxu1 %v2295_v45  ;;  %v2310_v28 = vld [vmem:[%s2802_s2 + $0x48] sm:$0xff]   ;;  %v2312_v30 = vld [vmem:[%s2802_s2 + $0x50] sm:$0xff]   ;;  %v2318_v31 = vld [vmem:[%s2803_s4 + $0x20] sm:$0xff]  }
  0x1f   :  { %1840 = vmatpush3.bf16.msra.mxu0 %v2243_v17  ;;  %769 = vperm.xlu0 %2114, %v687_v36   ;;  %v2304_v17 = vld [vmem:[%s2802_s2 + $0x20] sm:$0xff]   ;;  %v2279_v32 = vld [vmem:[%s2799_s0 + $0xb0] ss:$8 sps:$4 sm:$0xff]   ;;  %v2319_v36 = vld [vmem:[%s2803_s4 + $0x28] sm:$0xff]  }
  0x20   :  { %774 = vperm.xlu1 %2115, %v688_v39   ;;  %1993 = vmatprep.subr.bf16.mxu1 %v2296_v50  ;;  %v2280_v34 = vld [vmem:[%s2799_s0 + $0xc4] ss:$8 sps:$4 sm:$0xff]   ;;  %v2322_v37 = vld [vmem:[%s2803_s4 + $0x30] sm:$0xff]   ;;  %v2282_v38 = vld [vmem:[%s2799_s0 + $0xc0] ss:$8 sps:$4 sm:$0xff]  }
  0x21   :  { %v2317_v39 = vld [vmem:[%s2802_s2 + $0x68] sm:$0xff]   ;;  %v2320_v41 = vld [vmem:[%s2802_s2 + $0x70] sm:$0xff]  }
  0x22   :  { %448 = vmatmul.mubr.bf16.vlgmr.msra.gmra.mrb[0].mxu0 %v2244_v21  ;;  %1994 = vmatpush3.bf16.msra.mxu1 %v2296_v50  ;;  %v2271_v21 = vld [vmem:[%s2799_s0 + $0x94] ss:$8 sps:$4 sm:$0xff]   ;;  %v2286_v45 = vld [vmem:[%s2799_s0 + $0xe4] ss:$8 sps:$4 sm:$0xff]   ;;  %v2288_v46 = vld [vmem:[%s2799_s0 + $0xe0] ss:$8 sps:$4 sm:$0xff]  }
  0x23   :  { %455 = vmatprep.mubr.bf16.mxu0 %v2247_v23  ;;  %779 = vperm.xlu0 %2114, %v689_v43   ;;  %v2273_v23 = vld [vmem:[%s2799_s0 + $0x90] ss:$8 sps:$4 sm:$0xff]  }
  0x24   :  { %784 = vperm.xlu1 %2115, %v690_v44   ;;  %1995 = vmatprep.subr.bf16.mxu1 %v2297_v54  ;;  %v2285_v43 = vld [vmem:[%s2799_s0 + $0xd0] ss:$8 sps:$4 sm:$0xff]  }
  0x25   :  { %v2321_v44 = vld [vmem:[%s2802_s2 + $0x78] sm:$0xff]  }
  0x26   :  { %1996 = vmatpush3.bf16.msra.mxu1 %v2297_v54 }
  0x27   :  { %789 = vperm.xlu0 %2114, %v691_v47   ;;  %1997 = vmatprep.subr.bf16.mxu1 %v2298_v58  ;;  %v2289_v47 = vld [vmem:[%s2799_s0 + $0xf4] ss:$8 sps:$4 sm:$0xff]  }
  0x28   :  { %794 = vperm.xlu1 %2115, %v692_v48   ;;  %v2291_v48 = vld [vmem:[%s2799_s0 + $0xf0] ss:$8 sps:$4 sm:$0xff]  }
  0x2a   :  { %456 = vmatmul.mubr.bf16.gmra.mrb[4].mxu0 %v2249_v27  ;;  %1998 = vmatpush3.bf16.msra.mxu1 %v2298_v58  ;;  %v2276_v27 = vld [vmem:[%s2799_s0 + $0xa0] ss:$8 sps:$4 sm:$0xff]  }
  0x2b   :  { %463 = vmatprep.mubr.bf16.mxu0 %v2250_v29  ;;  %799 = vperm.xlu0 %2114, %v693_v51   ;;  %v2277_v29 = vld [vmem:[%s2799_s0 + $0xb4] ss:$8 sps:$4 sm:$0xff]  }
  0x2c   :  { %804 = vperm.xlu1 %2115, %v694_v52   ;;  %1999 = vmatprep.subr.bf16.mxu1 %v2299_v63 }
  0x2e   :  { %2000 = vmatpush3.bf16.msra.mxu1 %v2299_v63 }
  0x2f   :  { %809 = vperm.xlu0 %2114, %v695_v55   ;;  %2033 = vmatprep.subr.bf16.mxu1 %v2309_v1 }
  0x30   :  { %814 = vperm.xlu1 %2115, %v696_v56  }
  0x31   :  { %2002 = vmatmul.mubr.bf16.vlgmr.msra.gmra.mrb[0].mxu1 %v2301_v5 }
  0x32   :  { %464 = vmatmul.mubr.bf16.gmra.mrb[8].mxu0 %v2252_v33  ;;  %2005 = vmatprep.mubr.bf16.mxu1 %v2302_v7  ;;  %v2313_v33 = vld [vmem:[%s2802_s2 + $0x58] sm:$0xff]  }
  0x33   :  { %471 = vmatprep.mubr.bf16.mxu0 %v2253_v35  ;;  %819 = vperm.xlu0 %2114, %v697_v60   ;;  %v2316_v35 = vld [vmem:[%s2802_s2 + $0x60] sm:$0xff]  }
  0x34   :  { %824 = vperm.xlu1 %2115, %v698_v61   ;;  %2034 = vmatpush3.bf16.msra.mxu1 %v2309_v1 }
  0x35   :  { %2035 = vmatprep.subr.bf16.mxu1 %v2311_v9 }
  0x37   :  { %829 = vperm.xlu0 %2114, %v699_v62  }
  0x38   :  { %834 = vperm.xlu1 %2115, %v700_v0   ;;  %2036 = vmatpush3.bf16.msra.mxu1 %v2311_v9 }
  0x39   :  { %2037 = vmatprep.subr.bf16.mxu1 %v2314_v12  ;;  %2006 = vmatmul.mubr.bf16.gmra.mrb[4].mxu1 %v2303_v15 }
  0x3a   :  { %472 = vmatmul.mubr.bf16.gmra.mrb[12].mxu0 %v2255_v40  ;;  %2009 = vmatprep.mubr.bf16.mxu1 %v2304_v17  ;;  %v2283_v40 = vld [vmem:[%s2799_s0 + $0xd4] ss:$8 sps:$4 sm:$0xff]  }
  0x3b   :  { %479 = vmatprep.mubr.bf16.mxu0 %v2256_v42  ;;  %839 = vperm.xlu0 %2114, %v701_v2   ;;  %v2323_v42 = vld [vmem:[%s2803_s4 + $0x38] sm:$0xff]  }
  0x3c   :  { %844 = vperm.xlu1 %2115, %v702_v4   ;;  %2038 = vmatpush3.bf16.msra.mxu1 %v2314_v12 }
  0x3d   :  { %2039 = vmatprep.subr.bf16.mxu1 %v2315_v18 }
  0x3f   :  { %849 = vperm.xlu0 %2114, %v703_v8  }
  0x40   :  { %854 = vperm.xlu1 %2115, %v704_v10   ;;  %2040 = vmatpush3.bf16.msra.mxu1 %v2315_v18 }
  0x41   :  { %2010 = vmatmul.mubr.bf16.gmra.mrb[8].mxu1 %v2305_v20  ;;  %2041 = vmatprep.subr.bf16.mxu1 %v2318_v31 }
  0x42   :  { %480 = vmatmul.mubr.bf16.gmra.mrb[16].mxu0 %v2258_v49  ;;  %2013 = vmatprep.mubr.bf16.mxu1 %v2306_v22 }
  0x43   :  { %487 = vmatprep.mubr.bf16.mxu0 %v2259_v53  ;;  %859 = vperm.xlu0 %2114, %v705_v11  }
  0x44   :  { %864 = vperm.xlu1 %2115, %v706_v14   ;;  %2042 = vmatpush3.bf16.msra.mxu1 %v2318_v31 }
  0x45   :  { %2043 = vmatprep.subr.bf16.mxu1 %v2319_v36 }
  0x48   :  { %2044 = vmatpush3.bf16.msra.mxu1 %v2319_v36 }
  0x49   :  { %2014 = vmatmul.mubr.bf16.gmra.mrb[12].mxu1 %v2307_v24  ;;  %2045 = vmatprep.subr.bf16.mxu1 %v2322_v37 }
  0x4a   :  { %488 = vmatmul.mubr.bf16.gmra.mrb[20].mxu0 %v2261_v57  ;;  %2017 = vmatprep.mubr.bf16.mxu1 %v2308_v26 }
  0x4b   :  { %495 = vmatprep.mubr.bf16.mxu0 %v2262_v59 }
  0x4c   :  { %2046 = vmatpush3.bf16.msra.mxu1 %v2322_v37 }
  0x4d   :  { %2047 = vmatprep.subr.bf16.mxu1 %v2323_v42 }
  0x50   :  { %2048 = vmatpush3.bf16.msra.mxu1 %v2323_v42 }
  0x51   :  { %2018 = vmatmul.mubr.bf16.gmra.mrb[16].mxu1 %v2310_v28 }
  0x52   :  { %496 = vmatmul.mubr.bf16.gmra.mrb[24].mxu0 %v2264_v3  ;;  %2021 = vmatprep.mubr.bf16.mxu1 %v2312_v30 }
  0x53   :  { %503 = vmatprep.mubr.bf16.mxu0 %v2265_v6 }
  0x59   :  { %2022 = vmatmul.mubr.bf16.gmra.mrb[20].mxu1 %v2313_v33 }
  0x5a   :  { %504 = vmatmul.mubr.bf16.gmra.mrb[28].mxu0 %v2267_v13  ;;  %2025 = vmatprep.mubr.bf16.mxu1 %v2316_v35 }
  0x5b   :  { %511 = vmatprep.mubr.bf16.mxu0 %v2268_v16 }
  0x61   :  { %2026 = vmatmul.mubr.bf16.gmra.mrb[24].mxu1 %v2317_v39 }
  0x62   :  { %512 = vmatmul.mubr.bf16.gmra.mrb[32].mxu0 %v2270_v19  ;;  %2029 = vmatprep.mubr.bf16.mxu1 %v2320_v41 }
  0x63   :  { %519 = vmatprep.mubr.bf16.mxu0 %v2271_v21 }
  0x69   :  { %2030 = vmatmul.mubr.bf16.gmra.mrb[28].mxu1 %v2321_v44 }
  0x6a   :  { %520 = vmatmul.mubr.bf16.gmra.mrb[36].mxu0 %v2273_v23 }
  0x6b   :  { %527 = vmatprep.mubr.bf16.mxu0 %v2274_v25 }
  0x72   :  { %528 = vmatmul.mubr.bf16.gmra.mrb[40].mxu0 %v2276_v27 }
  0x73   :  { %535 = vmatprep.mubr.bf16.mxu0 %v2277_v29 }
  0x7a   :  { %536 = vmatmul.mubr.bf16.gmra.mrb[44].mxu0 %v2279_v32 }
  0x7b   :  { %543 = vmatprep.mubr.bf16.mxu0 %v2280_v34 }
  0x82   :  { %544 = vmatmul.mubr.bf16.gmra.mrb[48].mxu0 %v2282_v38 }
  0x83   :  { %551 = vmatprep.mubr.bf16.mxu0 %v2283_v40 }
  0x86   :  { %v710_v49 = vpop.permute.xlu0 %709 }
  0x87   :  { %v720_v59 = vpop.permute.xlu1 %719 }
  0x8a   :  { %552 = vmatmul.mubr.bf16.gmra.mrb[52].mxu0 %v2285_v43  ;;  %v715_v56 = vpop.permute.xlu0 %714 }
  0x8b   :  { %559 = vmatprep.mubr.bf16.mxu0 %v2286_v45  ;;  %v725_v3 = vpop.permute.xlu1 %724 }
  0x8e   :  { %v730_v13 = vpop.permute.xlu0 %729 }
  0x8f   :  { %v735_v14 = vpop.permute.xlu1 %734 }
  0x92   :  { %560 = vmatmul.mubr.bf16.gmra.mrb[56].mxu0 %v2288_v46  ;;  %v740_v24 = vpop.permute.xlu0 %739 }
  0x93   :  { %567 = vmatprep.mubr.bf16.mxu0 %v2289_v47  ;;  %v745_v25 = vpop.permute.xlu1 %744 }
  0x96   :  { %v750_v35 = vpop.permute.xlu0 %749 }
  0x97   :  { %v755_v36 = vpop.permute.xlu1 %754 }
  0x9a   :  { %568 = vmatmul.mubr.bf16.gmra.mrb[60].mxu0 %v2291_v48  ;;  %v760_v46 = vpop.permute.xlu0 %759 }
  0x9b   :  { %v765_v47 = vpop.permute.xlu1 %764 }
  0xf5   :  { %v1841_v50 = vpop.f32.mrb[0].mxu0 }
  0xf6   :  { %v1842_v51 = vpop.f32.mrb[1].mxu0 }
  0xf7   :  { %v1843_v52 = vadd.f32 %v1842_v51, %v1841_v50  ;;  %v1844_v53 = vpop.f32.mrb[2].mxu0 }
  0xf8   :  { %v1845_v54 = vpop.f32.mrb[3].mxu0 }
  0xf9   :  { %v1846_v55 = vadd.f32 %v1845_v54, %v1844_v53  ;;  %v867_v57 = vmul.f32 %v1843_v52, %v710_v49 }
  0xfb   :  { %v868_v58 = vmul.f32 %v1846_v55, %v715_v56 }
  0xfd   :  { %v1847_v60 = vpop.f32.mrb[4].mxu0  ;;  %v899_v61 = vpack.c.bf16 %v868_v58, %v867_v57  ;;  %v770_v57 = vpop.permute.xlu0 %769 }
  0xfe   :  { %v1848_v62 = vpop.f32.mrb[5].mxu0  ;;  %v775_v58 = vpop.permute.xlu1 %774 }
  0xff   :  { %v1849_v63 = vadd.f32 %v1848_v62, %v1847_v60  ;;  %v1850_v0 = vpop.f32.mrb[6].mxu0  ;;  %2049 = vmatprep.mubr.bf16.mxu1 %v899_v61 }
 0x100   :  { %v1851_v1 = vpop.f32.mrb[7].mxu0 }
 0x101   :  { %v1852_v2 = vadd.f32 %v1851_v1, %v1850_v0  ;;  %v869_v4 = vmul.f32 %v1849_v63, %v720_v59 }
 0x103   :  { %v870_v5 = vmul.f32 %v1852_v2, %v725_v3 }
 0x105   :  { %v900_v6 = vpack.c.bf16 %v870_v5, %v869_v4  ;;  %v1853_v7 = vpop.f32.mrb[8].mxu0  ;;  %v780_v4 = vpop.permute.xlu0 %779 }
 0x106   :  { %v1854_v8 = vpop.f32.mrb[9].mxu0  ;;  %v785_v5 = vpop.permute.xlu1 %784 }
 0x107   :  { %v1855_v9 = vadd.f32 %v1854_v8, %v1853_v7  ;;  %v1856_v10 = vpop.f32.mrb[10].mxu0  ;;  %2050 = vmatmul.mubr.bf16.vlgmr.msra.gmra.mrb[0].mxu1 %v900_v6 }
 0x108   :  { %v1857_v11 = vpop.f32.mrb[11].mxu0 }
 0x109   :  { %v1858_v12 = vadd.f32 %v1857_v11, %v1856_v10  ;;  %v871_v15 = vmul.f32 %v1855_v9, %v730_v13 }
 0x10b   :  { %v872_v16 = vmul.f32 %v1858_v12, %v735_v14 }
 0x10d   :  { %v1859_v17 = vpop.f32.mrb[12].mxu0  ;;  %v901_v18 = vpack.c.bf16 %v872_v16, %v871_v15  ;;  %v790_v15 = vpop.permute.xlu0 %789 }
 0x10e   :  { %v1860_v19 = vpop.f32.mrb[13].mxu0  ;;  %v795_v16 = vpop.permute.xlu1 %794 }
 0x10f   :  { %v1861_v20 = vadd.f32 %v1860_v19, %v1859_v17  ;;  %v1862_v21 = vpop.f32.mrb[14].mxu0  ;;  %2053 = vmatprep.mubr.bf16.mxu1 %v901_v18 }
 0x110   :  { %v1863_v22 = vpop.f32.mrb[15].mxu0 }
 0x111   :  { %v1864_v23 = vadd.f32 %v1863_v22, %v1862_v21  ;;  %v873_v26 = vmul.f32 %v1861_v20, %v740_v24 }
 0x113   :  { %v874_v27 = vmul.f32 %v1864_v23, %v745_v25 }
 0x115   :  { %v1865_v28 = vpop.f32.mrb[16].mxu0  ;;  %v902_v29 = vpack.c.bf16 %v874_v27, %v873_v26  ;;  %v800_v26 = vpop.permute.xlu0 %799 }
 0x116   :  { %v1866_v30 = vpop.f32.mrb[17].mxu0  ;;  %v805_v27 = vpop.permute.xlu1 %804 }
 0x117   :  { %v1867_v31 = vadd.f32 %v1866_v30, %v1865_v28  ;;  %v1868_v32 = vpop.f32.mrb[18].mxu0  ;;  %2054 = vmatmul.mubr.bf16.gmra.mrb[4].mxu1 %v902_v29 }
 0x118   :  { %v1869_v33 = vpop.f32.mrb[19].mxu0 }
 0x119   :  { %v1870_v34 = vadd.f32 %v1869_v33, %v1868_v32  ;;  %v875_v37 = vmul.f32 %v1867_v31, %v750_v35 }
 0x11b   :  { %v876_v38 = vmul.f32 %v1870_v34, %v755_v36 }
 0x11d   :  { %v1871_v39 = vpop.f32.mrb[20].mxu0  ;;  %v903_v40 = vpack.c.bf16 %v876_v38, %v875_v37  ;;  %v810_v37 = vpop.permute.xlu0 %809 }
 0x11e   :  { %v1872_v41 = vpop.f32.mrb[21].mxu0  ;;  %v815_v38 = vpop.permute.xlu1 %814 }
 0x11f   :  { %v1873_v42 = vadd.f32 %v1872_v41, %v1871_v39  ;;  %v1874_v43 = vpop.f32.mrb[22].mxu0  ;;  %2057 = vmatprep.mubr.bf16.mxu1 %v903_v40 }
 0x120   :  { %v1875_v44 = vpop.f32.mrb[23].mxu0 }
 0x121   :  { %v1876_v45 = vadd.f32 %v1875_v44, %v1874_v43  ;;  %v877_v48 = vmul.f32 %v1873_v42, %v760_v46 }
 0x123   :  { %v878_v49 = vmul.f32 %v1876_v45, %v765_v47 }
 0x125   :  { %v1877_v50 = vpop.f32.mrb[24].mxu0  ;;  %v904_v51 = vpack.c.bf16 %v878_v49, %v877_v48  ;;  %v820_v48 = vpop.permute.xlu0 %819 }
 0x126   :  { %v1878_v52 = vpop.f32.mrb[25].mxu0  ;;  %v825_v49 = vpop.permute.xlu1 %824 }
 0x127   :  { %v1879_v53 = vadd.f32 %v1878_v52, %v1877_v50  ;;  %v1880_v54 = vpop.f32.mrb[26].mxu0  ;;  %2058 = vmatmul.mubr.bf16.gmra.mrb[8].mxu1 %v904_v51 }
 0x128   :  { %v1881_v55 = vpop.f32.mrb[27].mxu0 }
 0x129   :  { %v1882_v56 = vadd.f32 %v1881_v55, %v1880_v54  ;;  %v879_v59 = vmul.f32 %v1879_v53, %v770_v57 }
 0x12b   :  { %v880_v60 = vmul.f32 %v1882_v56, %v775_v58 }
 0x12d   :  { %v1883_v61 = vpop.f32.mrb[28].mxu0  ;;  %v905_v62 = vpack.c.bf16 %v880_v60, %v879_v59  ;;  %v830_v59 = vpop.permute.xlu0 %829 }
 0x12e   :  { %v1884_v63 = vpop.f32.mrb[29].mxu0  ;;  %v835_v60 = vpop.permute.xlu1 %834 }
 0x12f   :  { %v1885_v0 = vadd.f32 %v1884_v63, %v1883_v61  ;;  %v1886_v1 = vpop.f32.mrb[30].mxu0  ;;  %2061 = vmatprep.mubr.bf16.mxu1 %v905_v62 }
 0x130   :  { %v1887_v2 = vpop.f32.mrb[31].mxu0 }
 0x131   :  { %v1888_v3 = vadd.f32 %v1887_v2, %v1886_v1  ;;  %v881_v6 = vmul.f32 %v1885_v0, %v780_v4 }
 0x133   :  { %v882_v7 = vmul.f32 %v1888_v3, %v785_v5 }
 0x135   :  { %v1889_v8 = vpop.f32.mrb[32].mxu0  ;;  %v906_v9 = vpack.c.bf16 %v882_v7, %v881_v6  ;;  %v840_v6 = vpop.permute.xlu0 %839 }
 0x136   :  { %v1890_v10 = vpop.f32.mrb[33].mxu0  ;;  %v845_v7 = vpop.permute.xlu1 %844 }
 0x137   :  { %v1891_v11 = vadd.f32 %v1890_v10, %v1889_v8  ;;  %v1892_v12 = vpop.f32.mrb[34].mxu0  ;;  %2062 = vmatmul.mubr.bf16.gmra.mrb[12].mxu1 %v906_v9 }
 0x138   :  { %v1893_v13 = vpop.f32.mrb[35].mxu0 }
 0x139   :  { %v1894_v14 = vadd.f32 %v1893_v13, %v1892_v12  ;;  %v883_v17 = vmul.f32 %v1891_v11, %v790_v15 }
 0x13b   :  { %v884_v18 = vmul.f32 %v1894_v14, %v795_v16 }
 0x13d   :  { %v1895_v19 = vpop.f32.mrb[36].mxu0  ;;  %v907_v20 = vpack.c.bf16 %v884_v18, %v883_v17  ;;  %v850_v17 = vpop.permute.xlu0 %849 }
 0x13e   :  { %v1896_v21 = vpop.f32.mrb[37].mxu0  ;;  %v855_v18 = vpop.permute.xlu1 %854 }
 0x13f   :  { %v1897_v22 = vadd.f32 %v1896_v21, %v1895_v19  ;;  %v1898_v23 = vpop.f32.mrb[38].mxu0  ;;  %2065 = vmatprep.mubr.bf16.mxu1 %v907_v20 }
 0x140   :  { %v1899_v24 = vpop.f32.mrb[39].mxu0 }
 0x141   :  { %v1900_v25 = vadd.f32 %v1899_v24, %v1898_v23  ;;  %v885_v28 = vmul.f32 %v1897_v22, %v800_v26 }
 0x143   :  { %v886_v29 = vmul.f32 %v1900_v25, %v805_v27 }
 0x145   :  { %v1901_v30 = vpop.f32.mrb[40].mxu0  ;;  %v908_v31 = vpack.c.bf16 %v886_v29, %v885_v28  ;;  %v860_v28 = vpop.permute.xlu0 %859 }
 0x146   :  { %v1902_v32 = vpop.f32.mrb[41].mxu0  ;;  %v865_v29 = vpop.permute.xlu1 %864 }
 0x147   :  { %v1903_v33 = vadd.f32 %v1902_v32, %v1901_v30  ;;  %v1904_v34 = vpop.f32.mrb[42].mxu0  ;;  %2066 = vmatmul.mubr.bf16.gmra.mrb[16].mxu1 %v908_v31 }
 0x148   :  { %v1905_v35 = vpop.f32.mrb[43].mxu0 }
 0x149   :  { %v1906_v36 = vadd.f32 %v1905_v35, %v1904_v34  ;;  %v887_v39 = vmul.f32 %v1903_v33, %v810_v37 }
 0x14b   :  { %v888_v40 = vmul.f32 %v1906_v36, %v815_v38 }
 0x14d   :  { %v1907_v41 = vpop.f32.mrb[44].mxu0  ;;  %v909_v42 = vpack.c.bf16 %v888_v40, %v887_v39 }
 0x14e   :  { %v1908_v43 = vpop.f32.mrb[45].mxu0 }
 0x14f   :  { %v1909_v44 = vadd.f32 %v1908_v43, %v1907_v41  ;;  %v1910_v45 = vpop.f32.mrb[46].mxu0  ;;  %2069 = vmatprep.mubr.bf16.mxu1 %v909_v42 }
 0x150   :  { %v1911_v46 = vpop.f32.mrb[47].mxu0 }
 0x151   :  { %v1912_v47 = vadd.f32 %v1911_v46, %v1910_v45  ;;  %v889_v50 = vmul.f32 %v1909_v44, %v820_v48 }
 0x153   :  { %v890_v51 = vmul.f32 %v1912_v47, %v825_v49  ;;  %v2712_v49 = vld [vmem:[%s2804_s6] ss:$0 sm:$0xff] }
 0x155   :  { %v1913_v52 = vpop.f32.mrb[48].mxu0  ;;  %v910_v53 = vpack.c.bf16 %v890_v51, %v889_v50 }
 0x156   :  { %v1914_v54 = vpop.f32.mrb[49].mxu0 }
 0x157   :  { %v1915_v55 = vadd.f32 %v1914_v54, %v1913_v52  ;;  %v1916_v56 = vpop.f32.mrb[50].mxu0  ;;  %2070 = vmatmul.mubr.bf16.gmra.mrb[20].mxu1 %v910_v53 }
 0x158   :  { %v1917_v57 = vpop.f32.mrb[51].mxu0 }
 0x159   :  { %v1918_v58 = vadd.f32 %v1917_v57, %v1916_v56  ;;  %v891_v61 = vmul.f32 %v1915_v55, %v830_v59 }
 0x15b   :  { %v892_v62 = vmul.f32 %v1918_v58, %v835_v60 }
 0x15d   :  { %v1919_v63 = vpop.f32.mrb[52].mxu0  ;;  %v911_v0 = vpack.c.bf16 %v892_v62, %v891_v61 }
 0x15e   :  { %v1920_v1 = vpop.f32.mrb[53].mxu0 }
 0x15f   :  { %v1921_v2 = vadd.f32 %v1920_v1, %v1919_v63  ;;  %v1922_v3 = vpop.f32.mrb[54].mxu0  ;;  %2073 = vmatprep.mubr.bf16.mxu1 %v911_v0 }
 0x160   :  { %v1923_v4 = vpop.f32.mrb[55].mxu0 }
 0x161   :  { %v1924_v5 = vadd.f32 %v1923_v4, %v1922_v3  ;;  %v893_v8 = vmul.f32 %v1921_v2, %v840_v6 }
 0x163   :  { %v894_v9 = vmul.f32 %v1924_v5, %v845_v7 }
 0x165   :  { %v1925_v10 = vpop.f32.mrb[56].mxu0  ;;  %v912_v11 = vpack.c.bf16 %v894_v9, %v893_v8 }
 0x166   :  { %v1926_v12 = vpop.f32.mrb[57].mxu0 }
 0x167   :  { %v1927_v13 = vadd.f32 %v1926_v12, %v1925_v10  ;;  %v1928_v14 = vpop.f32.mrb[58].mxu0  ;;  %2074 = vmatmul.mubr.bf16.gmra.mrb[24].mxu1 %v912_v11 }
 0x168   :  { %v1929_v15 = vpop.f32.mrb[59].mxu0 }
 0x169   :  { %v1930_v16 = vadd.f32 %v1929_v15, %v1928_v14  ;;  %v895_v19 = vmul.f32 %v1927_v13, %v850_v17 }
 0x16b   :  { %v896_v20 = vmul.f32 %v1930_v16, %v855_v18 }
 0x16d   :  { %v1931_v21 = vpop.f32.mrb[60].mxu0  ;;  %v913_v22 = vpack.c.bf16 %v896_v20, %v895_v19 }
 0x16e   :  { %v1932_v23 = vpop.f32.mrb[61].mxu0 }
 0x16f   :  { %v1933_v24 = vadd.f32 %v1932_v23, %v1931_v21  ;;  %v1934_v25 = vpop.f32.mrb[62].mxu0  ;;  %2077 = vmatprep.mubr.bf16.mxu1 %v913_v22 }
 0x170   :  { %v1935_v26 = vpop.f32.mrb[63].mxu0 }
 0x171   :  { %v1936_v27 = vadd.f32 %v1935_v26, %v1934_v25  ;;  %v897_v30 = vmul.f32 %v1933_v24, %v860_v28 }
 0x173   :  { %v898_v31 = vmul.f32 %v1936_v27, %v865_v29 }
 0x175   :  { %v914_v32 = vpack.c.bf16 %v898_v31, %v897_v30 }
 0x177   :  { %2078 = vmatmul.mubr.bf16.gmra.mrb[28].mxu1 %v914_v32 }
 0x1da   :  { %v2051_v33 = vpop.f32.mrb[0].mxu1 }
 0x1db   :  { %v1366_v34 = vpop.f32.mrb[1].mxu1  ;;  %v1502_v51 = vadd.f32 %v2051_v33, %v2712_v49 }
 0x1dc   :  { %v2052_v35 = vpop.f32.mrb[2].mxu1  ;;  %v1500_v54 = vadd.f32 %v2712_v49, %v1366_v34 }
 0x1dd   :  { %v1369_v36 = vpop.f32.mrb[3].mxu1  ;;  %v1503_v57 = vadd.f32 %v2052_v35, %v2712_v49 }
 0x1de   :  { %v1501_v61 = vadd.f32 %v2712_v49, %v1369_v36 }
 0x1ea   :  { %v2055_v37 = vpop.f32.mrb[4].mxu1 }
 0x1eb   :  { %v1382_v38 = vpop.f32.mrb[5].mxu1  ;;  %v1506_v3 = vadd.f32 %v2055_v37, %v2712_v49 }
 0x1ec   :  { %v2056_v39 = vpop.f32.mrb[6].mxu1  ;;  %v1504_v6 = vadd.f32 %v2712_v49, %v1382_v38 }
 0x1ed   :  { %v1385_v40 = vpop.f32.mrb[7].mxu1  ;;  %v1507_v9 = vadd.f32 %v2056_v39, %v2712_v49 }
 0x1ee   :  { %v1505_v13 = vadd.f32 %v2712_v49, %v1385_v40 }
 0x1fa   :  { %v2059_v41 = vpop.f32.mrb[8].mxu1 }
 0x1fb   :  { %v1398_v42 = vpop.f32.mrb[9].mxu1  ;;  %v1510_v19 = vadd.f32 %v2059_v41, %v2712_v49 }
 0x1fc   :  { %v2060_v43 = vpop.f32.mrb[10].mxu1  ;;  %v1508_v22 = vadd.f32 %v2712_v49, %v1398_v42 }
 0x1fd   :  { %v1401_v44 = vpop.f32.mrb[11].mxu1  ;;  %v1511_v25 = vadd.f32 %v2060_v43, %v2712_v49 }
 0x1fe   :  { %v1509_v29 = vadd.f32 %v2712_v49, %v1401_v44 }
 0x20a   :  { %v2701_v45 = vpop.f32.mrb[12].mxu1 }
 0x20b   :  { %v2703_v46 = vpop.f32.mrb[13].mxu1  ;;  %v1514_v35 = vadd.f32 %v2701_v45, %v2712_v49 }
 0x20c   :  { %v2705_v47 = vpop.f32.mrb[14].mxu1  ;;  %v1512_v38 = vadd.f32 %v2712_v49, %v2703_v46 }
 0x20d   :  { %v2707_v48 = vpop.f32.mrb[15].mxu1  ;;  %v1515_v41 = vadd.f32 %v2705_v47, %v2712_v49 }
 0x20e   :  { %v1513_v45 = vadd.f32 %v2712_v49, %v2707_v48 }
 0x21a   :  { %v2067_v50 = vpop.f32.mrb[16].mxu1 }
 0x21b   :  { %v1518_v52 = vadd.f32 %v2067_v50, %v2712_v49  ;;  %v1430_v53 = vpop.f32.mrb[17].mxu1 }
 0x21c   :  { %v1516_v55 = vadd.f32 %v2712_v49, %v1430_v53  ;;  %v2068_v56 = vpop.f32.mrb[18].mxu1 }
 0x21d   :  { %v2120_v58 = vpack.i.bf16 %v1518_v52, %v1502_v51  ;;  %v1519_v59 = vadd.f32 %v2068_v56, %v2712_v49  ;;  %v1433_v60 = vpop.f32.mrb[19].mxu1 }
 0x21e   :  { %v2116_v62 = vpack.i.bf16 %v1516_v55, %v1500_v54  ;;  %v1517_v63 = vadd.f32 %v2712_v49, %v1433_v60 }
 0x21f   :  { %v2122_v0 = vpack.i.bf16 %v1519_v59, %v1503_v57 }
 0x220   :  { %v2118_v1 = vpack.i.bf16 %v1517_v63, %v1501_v61  ;;  %2117 = vxpose.xlu0.b32.start [1/16] %v2116_v62, 128 }
 0x224   :  { %2119 = vxpose.xlu0.b32.cont [2/16] %v2118_v1, 128 }
 0x228   :  { %2121 = vxpose.xlu0.b32.cont [3/16] %v2120_v58, 128 }
 0x22a   :  { %v2071_v2 = vpop.f32.mrb[20].mxu1 }
 0x22b   :  { %v1522_v4 = vadd.f32 %v2071_v2, %v2712_v49  ;;  %v1446_v5 = vpop.f32.mrb[21].mxu1 }
 0x22c   :  { %v1520_v7 = vadd.f32 %v2712_v49, %v1446_v5  ;;  %2123 = vxpose.xlu0.b32.cont [4/16] %v2122_v0, 128  ;;  %v2072_v8 = vpop.f32.mrb[22].mxu1 }
 0x22d   :  { %v2128_v10 = vpack.i.bf16 %v1522_v4, %v1506_v3  ;;  %v1523_v11 = vadd.f32 %v2072_v8, %v2712_v49  ;;  %v1449_v12 = vpop.f32.mrb[23].mxu1 }
 0x22e   :  { %v2124_v14 = vpack.i.bf16 %v1520_v7, %v1504_v6  ;;  %v1521_v15 = vadd.f32 %v2712_v49, %v1449_v12 }
 0x22f   :  { %v2130_v16 = vpack.i.bf16 %v1523_v11, %v1507_v9 }
 0x230   :  { %v2126_v17 = vpack.i.bf16 %v1521_v15, %v1505_v13  ;;  %2125 = vxpose.xlu0.b32.cont [5/16] %v2124_v14, 128 }
 0x234   :  { %2127 = vxpose.xlu0.b32.cont [6/16] %v2126_v17, 128 }
 0x238   :  { %2129 = vxpose.xlu0.b32.cont [7/16] %v2128_v10, 128 }
 0x23a   :  { %v2075_v18 = vpop.f32.mrb[24].mxu1 }
 0x23b   :  { %v1526_v20 = vadd.f32 %v2075_v18, %v2712_v49  ;;  %v1462_v21 = vpop.f32.mrb[25].mxu1 }
 0x23c   :  { %v1524_v23 = vadd.f32 %v2712_v49, %v1462_v21  ;;  %2131 = vxpose.xlu0.b32.cont [8/16] %v2130_v16, 128  ;;  %v2076_v24 = vpop.f32.mrb[26].mxu1 }
 0x23d   :  { %v2136_v26 = vpack.i.bf16 %v1526_v20, %v1510_v19  ;;  %v1527_v27 = vadd.f32 %v2076_v24, %v2712_v49  ;;  %v1465_v28 = vpop.f32.mrb[27].mxu1 }
 0x23e   :  { %v2132_v30 = vpack.i.bf16 %v1524_v23, %v1508_v22  ;;  %v1525_v31 = vadd.f32 %v2712_v49, %v1465_v28 }
 0x23f   :  { %v2138_v32 = vpack.i.bf16 %v1527_v27, %v1511_v25 }
 0x240   :  { %v2134_v33 = vpack.i.bf16 %v1525_v31, %v1509_v29  ;;  %2133 = vxpose.xlu0.b32.cont [9/16] %v2132_v30, 128 }
 0x244   :  { %2135 = vxpose.xlu0.b32.cont [10/16] %v2134_v33, 128 }
 0x248   :  { %2137 = vxpose.xlu0.b32.cont [11/16] %v2136_v26, 128 }
 0x24a   :  { %v2079_v34 = vpop.f32.mrb[28].mxu1 }
 0x24b   :  { %v1530_v36 = vadd.f32 %v2079_v34, %v2712_v49  ;;  %v1478_v37 = vpop.f32.mrb[29].mxu1 }
 0x24c   :  { %v1528_v39 = vadd.f32 %v2712_v49, %v1478_v37  ;;  %2139 = vxpose.xlu0.b32.cont [12/16] %v2138_v32, 128  ;;  %v2080_v40 = vpop.f32.mrb[30].mxu1 }
 0x24d   :  { %v2144_v42 = vpack.i.bf16 %v1530_v36, %v1514_v35  ;;  %v1531_v43 = vadd.f32 %v2080_v40, %v2712_v49  ;;  %v1481_v44 = vpop.f32.mrb[31].mxu1 }
 0x24e   :  { %v2140_v50 = vpack.i.bf16 %v1528_v39, %v1512_v38  ;;  %v1529_v51 = vadd.f32 %v2712_v49, %v1481_v44 }
 0x24f   :  { %v2146_v52 = vpack.i.bf16 %v1531_v43, %v1515_v41 }
 0x250   :  { %v2142_v53 = vpack.i.bf16 %v1529_v51, %v1513_v45  ;;  %2141 = vxpose.xlu0.b32.cont [13/16] %v2140_v50, 128 }
 0x254   :  { %2143 = vxpose.xlu0.b32.cont [14/16] %v2142_v53, 128 }
 0x258   :  { %2145 = vxpose.xlu0.b32.cont [15/16] %v2144_v42, 128 }
 0x25c   :  { %2147 = vxpose.xlu0.b32.end [16/16] %v2146_v52, 128 }
 0x2a0   :  { %v2148_v46 = vpop.trf.xlu0 }
 0x2a1   :  { %v2152_v54 = vunpack.i.h.bf16 %v2148_v46  ;;  %v2149_v55 = vunpack.i.l.bf16 %v2148_v46 }
 0x2a3   :  { %v1809_v47 = vpack.c.bf16 %v2152_v54, %v2149_v55 }
 0x2a4   :  { %v2153_v56 = vpop.trf.xlu0 }
 0x2a5   :  { %1692 = vst [vmem:[%s2805_s7] sm:$0xff] %v1809_v47  ;;  %v2157_v57 = vunpack.i.h.bf16 %v2153_v56  ;;  %v2154_v48 = vunpack.i.l.bf16 %v2153_v56 }
 0x2a7   :  { %v1810_v58 = vpack.c.bf16 %v2157_v57, %v2154_v48 }
 0x2a8   :  { %v2158_v59 = vpop.trf.xlu0 }
 0x2a9   :  { %1693 = vst [vmem:[%s2805_s7 + $0x8] sm:$0xff] %v1810_v58  ;;  %v2162_v49 = vunpack.i.h.bf16 %v2158_v59  ;;  %v2159_v60 = vunpack.i.l.bf16 %v2158_v59 }
 0x2ab   :  { %v1811_v61 = vpack.c.bf16 %v2162_v49, %v2159_v60 }
 0x2ac   :  { %v2163_v62 = vpop.trf.xlu0 }
 0x2ad   :  { %1694 = vst [vmem:[%s2805_s7 + $0x10] sm:$0xff] %v1811_v61  ;;  %v2167_v63 = vunpack.i.h.bf16 %v2163_v62  ;;  %v2164_v0 = vunpack.i.l.bf16 %v2163_v62 }
 0x2af   :  { %v1812_v1 = vpack.c.bf16 %v2167_v63, %v2164_v0 }
 0x2b0   :  { %v2168_v2 = vpop.trf.xlu0 }
 0x2b1   :  { %1695 = vst [vmem:[%s2805_s7 + $0x18] sm:$0xff] %v1812_v1  ;;  %v2172_v3 = vunpack.i.h.bf16 %v2168_v2  ;;  %v2169_v4 = vunpack.i.l.bf16 %v2168_v2 }
 0x2b3   :  { %v1813_v5 = vpack.c.bf16 %v2172_v3, %v2169_v4 }
 0x2b4   :  { %v2173_v6 = vpop.trf.xlu0 }
 0x2b5   :  { %1696 = vst [vmem:[%s2805_s7 + $0x20] sm:$0xff] %v1813_v5  ;;  %v2177_v7 = vunpack.i.h.bf16 %v2173_v6  ;;  %v2174_v8 = vunpack.i.l.bf16 %v2173_v6 }
 0x2b7   :  { %v1814_v9 = vpack.c.bf16 %v2177_v7, %v2174_v8 }
 0x2b8   :  { %v2178_v10 = vpop.trf.xlu0 }
 0x2b9   :  { %1697 = vst [vmem:[%s2805_s7 + $0x28] sm:$0xff] %v1814_v9  ;;  %v2182_v11 = vunpack.i.h.bf16 %v2178_v10  ;;  %v2179_v12 = vunpack.i.l.bf16 %v2178_v10 }
 0x2bb   :  { %v1815_v13 = vpack.c.bf16 %v2182_v11, %v2179_v12 }
 0x2bc   :  { %v2183_v14 = vpop.trf.xlu0 }
 0x2bd   :  { %1698 = vst [vmem:[%s2805_s7 + $0x30] sm:$0xff] %v1815_v13  ;;  %v2187_v15 = vunpack.i.h.bf16 %v2183_v14  ;;  %v2184_v16 = vunpack.i.l.bf16 %v2183_v14 }
 0x2bf   :  { %v1816_v17 = vpack.c.bf16 %v2187_v15, %v2184_v16 }
 0x2c0   :  { %v2188_v18 = vpop.trf.xlu0 }
 0x2c1   :  { %1699 = vst [vmem:[%s2805_s7 + $0x38] sm:$0xff] %v1816_v17  ;;  %v2192_v19 = vunpack.i.h.bf16 %v2188_v18  ;;  %v2189_v20 = vunpack.i.l.bf16 %v2188_v18 }
 0x2c3   :  { %v1817_v21 = vpack.c.bf16 %v2192_v19, %v2189_v20 }
 0x2c4   :  { %v2193_v22 = vpop.trf.xlu0 }
 0x2c5   :  { %1700 = vst [vmem:[%s2805_s7 + $0x40] sm:$0xff] %v1817_v21  ;;  %v2197_v23 = vunpack.i.h.bf16 %v2193_v22  ;;  %v2194_v24 = vunpack.i.l.bf16 %v2193_v22 }
 0x2c7   :  { %v1818_v25 = vpack.c.bf16 %v2197_v23, %v2194_v24 }
 0x2c8   :  { %v2198_v26 = vpop.trf.xlu0 }
 0x2c9   :  { %1701 = vst [vmem:[%s2805_s7 + $0x48] sm:$0xff] %v1818_v25  ;;  %v2202_v27 = vunpack.i.h.bf16 %v2198_v26  ;;  %v2199_v28 = vunpack.i.l.bf16 %v2198_v26 }
 0x2cb   :  { %v1819_v29 = vpack.c.bf16 %v2202_v27, %v2199_v28 }
 0x2cc   :  { %v2203_v30 = vpop.trf.xlu0 }
 0x2cd   :  { %1702 = vst [vmem:[%s2805_s7 + $0x50] sm:$0xff] %v1819_v29  ;;  %v2207_v31 = vunpack.i.h.bf16 %v2203_v30  ;;  %v2204_v32 = vunpack.i.l.bf16 %v2203_v30 }
 0x2cf   :  { %v1820_v33 = vpack.c.bf16 %v2207_v31, %v2204_v32 }
 0x2d0   :  { %v2208_v34 = vpop.trf.xlu0 }
 0x2d1   :  { %1703 = vst [vmem:[%s2805_s7 + $0x58] sm:$0xff] %v1820_v33  ;;  %v2212_v35 = vunpack.i.h.bf16 %v2208_v34  ;;  %v2209_v36 = vunpack.i.l.bf16 %v2208_v34 }
 0x2d3   :  { %v1821_v37 = vpack.c.bf16 %v2212_v35, %v2209_v36 }
 0x2d4   :  { %v2213_v38 = vpop.trf.xlu0 }
 0x2d5   :  { %1704 = vst [vmem:[%s2805_s7 + $0x60] sm:$0xff] %v1821_v37  ;;  %v2217_v39 = vunpack.i.h.bf16 %v2213_v38  ;;  %v2214_v40 = vunpack.i.l.bf16 %v2213_v38 }
 0x2d7   :  { %v1822_v41 = vpack.c.bf16 %v2217_v39, %v2214_v40 }
 0x2d8   :  { %v2218_v42 = vpop.trf.xlu0 }
 0x2d9   :  { %1705 = vst [vmem:[%s2805_s7 + $0x68] sm:$0xff] %v1822_v41  ;;  %v2222_v43 = vunpack.i.h.bf16 %v2218_v42  ;;  %v2219_v44 = vunpack.i.l.bf16 %v2218_v42 }
 0x2db   :  { %v1823_v45 = vpack.c.bf16 %v2222_v43, %v2219_v44 }
 0x2dc   :  { %v2223_v50 = vpop.trf.xlu0 }
 0x2dd   :  { %1706 = vst [vmem:[%s2805_s7 + $0x70] sm:$0xff] %v1823_v45  ;;  %v2227_v51 = vunpack.i.h.bf16 %v2223_v50  ;;  %v2224_v52 = vunpack.i.l.bf16 %v2223_v50 }
 0x2df   :  { %v1824_v53 = vpack.c.bf16 %v2227_v51, %v2224_v52 }
 0x2e1   :  { %1707 = vst [vmem:[%s2805_s7 + $0x78] sm:$0xff] %v1824_v53 }

// kernel: model_forward.6
= control target key start
LH: loop header
LB: loop body
LE: loop exit
PB: predicated region body
PF: predicated region fallthrough
CT: control target
= control target key end

     0   :  { %v2355_v1 = vmov 0   ;;  %s2817_s1 = inlined_call_operand.vmem [shape: bf16[256,128], index: 1, kind: input, shape index: {}]   ;;  %s2818_s0 = inlined_call_operand.vmem [shape: bf16[256,256], index: 0, kind: input, shape index: {}]   ;;  %s2819_s3 = inlined_call_operand.vmem [shape: f32[256,1], index: 3, kind: input, shape index: {}]   ;;  %s2820_s5 = inlined_call_operand.vmem [shape: bf16[128,128], index: 5, kind: input, shape index: {}]   ;;  %s2821_s2 = inlined_call_operand.vmem [shape: bf16[256,128], index: 2, kind: input, shape index: {}]   ;;  %s2822_s4 = inlined_call_operand.vmem [shape: bf16[128,128], index: 4, kind: input, shape index: {}]   ;;  %s2823_s6 = inlined_call_operand.vmem [shape: f32[1,128], index: 6, kind: input, shape index: {}]   ;;  %s2824_s7 = inlined_call_operand.vmem [shape: bf16[256,128], index: 7, kind: output, shape index: {}]  }
   0x1   :  { %v2259_v0 = vld [vmem:[%s2817_s1 + $0x40] sm:$0xff]   ;;  %2257 = vset.pattern.permute.xlu0 %v2355_v1  ;;  %2258 = vset.pattern.permute.xlu1 %v2355_v1  ;;  %v2261_v3 = vld [vmem:[%s2817_s1 + $0x48] sm:$0xff]   ;;  %v2263_v5 = vld [vmem:[%s2817_s1 + $0x50] sm:$0xff]  }
   0x2   :  { %v2260_v2 = vld [vmem:[%s2817_s1] sm:$0xff]   ;;  %1968 = vmatprep.subr.bf16.mxu0 %v2259_v0  ;;  %v2262_v4 = vld [vmem:[%s2817_s1 + $0x8] sm:$0xff]   ;;  %v2264_v6 = vld [vmem:[%s2817_s1 + $0x10] sm:$0xff]  }
   0x3   :  { %1969 = vmatpush3.bf16.msra.mxu0 %v2260_v2  ;;  %v2265_v7 = vld [vmem:[%s2817_s1 + $0x58] sm:$0xff]   ;;  %v2267_v9 = vld [vmem:[%s2817_s1 + $0x60] sm:$0xff]   ;;  %v2269_v11 = vld [vmem:[%s2817_s1 + $0x68] sm:$0xff]  }
   0x4   :  { %1970 = vmatprep.subr.bf16.mxu0 %v2261_v3  ;;  %v2266_v8 = vld [vmem:[%s2817_s1 + $0x18] sm:$0xff]   ;;  %v2268_v10 = vld [vmem:[%s2817_s1 + $0x20] sm:$0xff]   ;;  %v2270_v13 = vld [vmem:[%s2817_s1 + $0x28] sm:$0xff]  }
   0x5   :  { %v2277_v12 = vld [vmem:[%s2818_s0 + $0x4] ss:$8 sps:$4 sm:$0xff]   ;;  %v2271_v14 = vld [vmem:[%s2817_s1 + $0x70] sm:$0xff]   ;;  %v2273_v16 = vld [vmem:[%s2817_s1 + $0x78] sm:$0xff]  }
   0x6   :  { %447 = vmatprep.mubr.bf16.mxu0 %v2277_v12  ;;  %v2272_v15 = vld [vmem:[%s2817_s1 + $0x30] sm:$0xff]   ;;  %v2274_v17 = vld [vmem:[%s2817_s1 + $0x38] sm:$0xff]   ;;  %v2275_v18 = vld [vmem:[%s2818_s0] ss:$8 sps:$4 sm:$0xff]  }
   0x7   :  { %1971 = vmatpush3.bf16.msra.mxu0 %v2262_v4  ;;  %v675_v19 = vld [vmem:[%s2819_s3] sm:$0xff]  ;;  %v2278_v20 = vld [vmem:[%s2818_s0 + $0x14] ss:$8 sps:$4 sm:$0xff]   ;;  %v676_v22 = vld [vmem:[%s2819_s3 + $0x8] sm:$0xff] }
   0x8   :  { %1972 = vmatprep.subr.bf16.mxu0 %v2263_v5  ;;  %709 = vperm.xlu0 %2257, %v675_v19   ;;  %v677_v21 = vld [vmem:[%s2819_s3 + $0x10] sm:$0xff]  ;;  %v678_v23 = vld [vmem:[%s2819_s3 + $0x18] sm:$0xff]  ;;  %v679_v24 = vld [vmem:[%s2819_s3 + $0x20] sm:$0xff] }
   0x9   :  { %719 = vperm.xlu1 %2258, %v677_v21   ;;  %v2280_v25 = vld [vmem:[%s2818_s0 + $0x10] ss:$8 sps:$4 sm:$0xff]   ;;  %v680_v26 = vld [vmem:[%s2819_s3 + $0x28] sm:$0xff]  ;;  %v683_v30 = vld [vmem:[%s2819_s3 + $0x40] sm:$0xff] }
   0xa   :  { %v2281_v27 = vld [vmem:[%s2818_s0 + $0x24] ss:$8 sps:$4 sm:$0xff]   ;;  %v681_v28 = vld [vmem:[%s2819_s3 + $0x30] sm:$0xff]  ;;  %v682_v29 = vld [vmem:[%s2819_s3 + $0x38] sm:$0xff] }
   0xb   :  { %1973 = vmatpush3.bf16.msra.mxu0 %v2264_v6  ;;  %v2283_v31 = vld [vmem:[%s2818_s0 + $0x20] ss:$8 sps:$4 sm:$0xff]   ;;  %v2284_v34 = vld [vmem:[%s2818_s0 + $0x34] ss:$8 sps:$4 sm:$0xff]   ;;  %v2286_v39 = vld [vmem:[%s2818_s0 + $0x30] ss:$8 sps:$4 sm:$0xff]  }
   0xc   :  { %1974 = vmatprep.subr.bf16.mxu0 %v2265_v7  ;;  %714 = vperm.xlu0 %2257, %v676_v22   ;;  %v2323_v32 = vld [vmem:[%s2820_s5] sm:$0xff]   ;;  %v684_v33 = vld [vmem:[%s2819_s3 + $0x48] sm:$0xff]  ;;  %v685_v36 = vld [vmem:[%s2819_s3 + $0x50] sm:$0xff] }
   0xd   :  { %724 = vperm.xlu1 %2258, %v678_v23   ;;  %2128 = vmatprep.subr.bf16.mxu1 %v2323_v32  ;;  %v2324_v35 = vld [vmem:[%s2820_s5 + $0x8] sm:$0xff]   ;;  %v2325_v37 = vld [vmem:[%s2820_s5 + $0x10] sm:$0xff]   ;;  %v686_v38 = vld [vmem:[%s2819_s3 + $0x58] sm:$0xff] }
   0xe   :  { %2129 = vmatpush3.bf16.msra.mxu1 %v2323_v32  ;;  %v687_v40 = vld [vmem:[%s2819_s3 + $0x60] sm:$0xff]  ;;  %v2326_v42 = vld [vmem:[%s2820_s5 + $0x18] sm:$0xff]   ;;  %v688_v43 = vld [vmem:[%s2819_s3 + $0x68] sm:$0xff] }
   0xf   :  { %1975 = vmatpush3.bf16.msra.mxu0 %v2266_v8  ;;  %2130 = vmatprep.subr.bf16.mxu1 %v2324_v35  ;;  %v2287_v41 = vld [vmem:[%s2818_s0 + $0x44] ss:$8 sps:$4 sm:$0xff]   ;;  %v689_v44 = vld [vmem:[%s2819_s3 + $0x70] sm:$0xff]  ;;  %v690_v47 = vld [vmem:[%s2819_s3 + $0x78] sm:$0xff] }
  0x10   :  { %1976 = vmatprep.subr.bf16.mxu0 %v2267_v9  ;;  %729 = vperm.xlu0 %2257, %v679_v24   ;;  %v2331_v45 = vld [vmem:[%s2821_s2] sm:$0xff]   ;;  %v2328_v50 = vld [vmem:[%s2820_s5 + $0x28] sm:$0xff]   ;;  %v2290_v52 = vld [vmem:[%s2818_s0 + $0x54] ss:$8 sps:$4 sm:$0xff]  }
  0x11   :  { %734 = vperm.xlu1 %2258, %v680_v26   ;;  %v2327_v46 = vld [vmem:[%s2820_s5 + $0x20] sm:$0xff]   ;;  %2144 = vmatprep.mubr.bf16.mxu1 %v2331_v45  ;;  %v692_v51 = vld [vmem:[%s2819_s3 + $0x88] sm:$0xff]  ;;  %v693_v53 = vld [vmem:[%s2819_s3 + $0x90] sm:$0xff] }
  0x12   :  { %2131 = vmatpush3.bf16.msra.mxu1 %v2324_v35  ;;  %v2289_v48 = vld [vmem:[%s2818_s0 + $0x40] ss:$8 sps:$4 sm:$0xff]   ;;  %v2329_v54 = vld [vmem:[%s2820_s5 + $0x30] sm:$0xff]   ;;  %v694_v55 = vld [vmem:[%s2819_s3 + $0x98] sm:$0xff] }
  0x13   :  { %1977 = vmatpush3.bf16.msra.mxu0 %v2268_v10  ;;  %2132 = vmatprep.subr.bf16.mxu1 %v2325_v37  ;;  %v691_v49 = vld [vmem:[%s2819_s3 + $0x80] sm:$0xff]  ;;  %v2292_v57 = vld [vmem:[%s2818_s0 + $0x50] ss:$8 sps:$4 sm:$0xff]   ;;  %v696_v58 = vld [vmem:[%s2819_s3 + $0xa8] sm:$0xff] }
  0x14   :  { %1978 = vmatprep.subr.bf16.mxu0 %v2269_v11  ;;  %739 = vperm.xlu0 %2257, %v681_v28   ;;  %v695_v56 = vld [vmem:[%s2819_s3 + $0xa0] sm:$0xff]  ;;  %v2330_v60 = vld [vmem:[%s2820_s5 + $0x38] sm:$0xff]   ;;  %v697_v61 = vld [vmem:[%s2819_s3 + $0xb0] sm:$0xff] }
  0x15   :  { %744 = vperm.xlu1 %2258, %v682_v29   ;;  %v2293_v59 = vld [vmem:[%s2818_s0 + $0x64] ss:$8 sps:$4 sm:$0xff]   ;;  %v698_v63 = vld [vmem:[%s2819_s3 + $0xb8] sm:$0xff]  ;;  %v2333_v2 = vld [vmem:[%s2821_s2 + $0x10] sm:$0xff]  }
  0x16   :  { %2133 = vmatpush3.bf16.msra.mxu1 %v2325_v37  ;;  %v2341_v62 = vld [vmem:[%s2822_s4] sm:$0xff]   ;;  %v2332_v0 = vld [vmem:[%s2821_s2 + $0x8] sm:$0xff]   ;;  %v2296_v6 = vld [vmem:[%s2818_s0 + $0x74] ss:$8 sps:$4 sm:$0xff]  }
  0x17   :  { %1979 = vmatpush3.bf16.msra.mxu0 %v2270_v13  ;;  %2134 = vmatprep.subr.bf16.mxu1 %v2326_v42  ;;  %v699_v1 = vld [vmem:[%s2819_s3 + $0xc0] sm:$0xff]  ;;  %v2342_v3 = vld [vmem:[%s2822_s4 + $0x8] sm:$0xff]   ;;  %v701_v7 = vld [vmem:[%s2819_s3 + $0xd0] sm:$0xff] }
  0x18   :  { %1980 = vmatprep.subr.bf16.mxu0 %v2271_v14  ;;  %749 = vperm.xlu0 %2257, %v683_v30   ;;  %v2295_v4 = vld [vmem:[%s2818_s0 + $0x60] ss:$8 sps:$4 sm:$0xff]   ;;  %v2345_v8 = vld [vmem:[%s2822_s4 + $0x10] sm:$0xff]   ;;  %v702_v9 = vld [vmem:[%s2819_s3 + $0xd8] sm:$0xff] }
  0x19   :  { %754 = vperm.xlu1 %2258, %v684_v33   ;;  %v700_v5 = vld [vmem:[%s2819_s3 + $0xc8] sm:$0xff]  ;;  %v2334_v10 = vld [vmem:[%s2821_s2 + $0x18] sm:$0xff]   ;;  %v703_v11 = vld [vmem:[%s2819_s3 + $0xe0] sm:$0xff] }
  0x1a   :  { %2135 = vmatpush3.bf16.msra.mxu1 %v2326_v42  ;;  %v2335_v12 = vld [vmem:[%s2821_s2 + $0x20] sm:$0xff]   ;;  %v2346_v13 = vld [vmem:[%s2822_s4 + $0x18] sm:$0xff]   ;;  %v2336_v19 = vld [vmem:[%s2821_s2 + $0x28] sm:$0xff]  }
  0x1b   :  { %1981 = vmatpush3.bf16.msra.mxu0 %v2272_v15  ;;  %2136 = vmatprep.subr.bf16.mxu1 %v2327_v46  ;;  %v2298_v14 = vld [vmem:[%s2818_s0 + $0x70] ss:$8 sps:$4 sm:$0xff]   ;;  %v704_v15 = vld [vmem:[%s2819_s3 + $0xe8] sm:$0xff]  ;;  %v2302_v22 = vld [vmem:[%s2818_s0 + $0x94] ss:$8 sps:$4 sm:$0xff]  }
  0x1c   :  { %1982 = vmatprep.subr.bf16.mxu0 %v2273_v16  ;;  %759 = vperm.xlu0 %2257, %v685_v36   ;;  %v2299_v16 = vld [vmem:[%s2818_s0 + $0x84] ss:$8 sps:$4 sm:$0xff]   ;;  %v2301_v21 = vld [vmem:[%s2818_s0 + $0x80] ss:$8 sps:$4 sm:$0xff]   ;;  %v2338_v23 = vld [vmem:[%s2821_s2 + $0x38] sm:$0xff]  }
  0x1d   :  { %764 = vperm.xlu1 %2258, %v686_v38   ;;  %v2339_v24 = vld [vmem:[%s2821_s2 + $0x40] sm:$0xff]   ;;  %v2343_v28 = vld [vmem:[%s2821_s2 + $0x50] sm:$0xff]   ;;  %v2350_v36 = vld [vmem:[%s2822_s4 + $0x28] sm:$0xff]  }
  0x1e   :  { %2137 = vmatpush3.bf16.msra.mxu1 %v2327_v46  ;;  %v2305_v26 = vld [vmem:[%s2818_s0 + $0xa4] ss:$8 sps:$4 sm:$0xff]   ;;  %v2307_v29 = vld [vmem:[%s2818_s0 + $0xa0] ss:$8 sps:$4 sm:$0xff]   ;;  %v2308_v30 = vld [vmem:[%s2818_s0 + $0xb4] ss:$8 sps:$4 sm:$0xff]  }
  0x1f   :  { %1983 = vmatpush3.bf16.msra.mxu0 %v2274_v17  ;;  %2138 = vmatprep.subr.bf16.mxu1 %v2328_v50  ;;  %v705_v17 = vld [vmem:[%s2819_s3 + $0xf0] sm:$0xff]  ;;  %v2347_v32 = vld [vmem:[%s2821_s2 + $0x60] sm:$0xff]   ;;  %v2348_v37 = vld [vmem:[%s2821_s2 + $0x68] sm:$0xff]  }
  0x20   :  { %769 = vperm.xlu0 %2257, %v687_v40   ;;  %v2349_v33 = vld [vmem:[%s2822_s4 + $0x20] sm:$0xff]   ;;  %v2351_v38 = vld [vmem:[%s2821_s2 + $0x70] sm:$0xff]   ;;  %v2354_v42 = vld [vmem:[%s2822_s4 + $0x38] sm:$0xff]  }
  0x21   :  { %774 = vperm.xlu1 %2258, %v688_v43   ;;  %v2311_v35 = vld [vmem:[%s2818_s0 + $0xc4] ss:$8 sps:$4 sm:$0xff]   ;;  %v2313_v40 = vld [vmem:[%s2818_s0 + $0xc0] ss:$8 sps:$4 sm:$0xff]   ;;  %v2352_v43 = vld [vmem:[%s2821_s2 + $0x78] sm:$0xff]  }
  0x22   :  { %448 = vmatmul.mubr.bf16.vlgmr.msra.gmra.mrb[0].mxu0 %v2275_v18  ;;  %2139 = vmatpush3.bf16.msra.mxu1 %v2328_v50  ;;  %v706_v18 = vld [vmem:[%s2819_s3 + $0xf8] sm:$0xff]  ;;  %v2317_v45 = vld [vmem:[%s2818_s0 + $0xe4] ss:$8 sps:$4 sm:$0xff]   ;;  %v2319_v46 = vld [vmem:[%s2818_s0 + $0xe0] ss:$8 sps:$4 sm:$0xff]  }
  0x23   :  { %455 = vmatprep.mubr.bf16.mxu0 %v2278_v20  ;;  %2140 = vmatprep.subr.bf16.mxu1 %v2329_v54  ;;  %v2337_v20 = vld [vmem:[%s2821_s2 + $0x30] sm:$0xff]  }
  0x24   :  { %779 = vperm.xlu0 %2257, %v689_v44   ;;  %v2316_v44 = vld [vmem:[%s2818_s0 + $0xd0] ss:$8 sps:$4 sm:$0xff]  }
  0x25   :  { %784 = vperm.xlu1 %2258, %v690_v47   ;;  %v2320_v47 = vld [vmem:[%s2818_s0 + $0xf4] ss:$8 sps:$4 sm:$0xff]  }
  0x26   :  { %2141 = vmatpush3.bf16.msra.mxu1 %v2329_v54 }
  0x27   :  { %2142 = vmatprep.subr.bf16.mxu1 %v2330_v60 }
  0x28   :  { %789 = vperm.xlu0 %2257, %v691_v49  }
  0x29   :  { %794 = vperm.xlu1 %2258, %v692_v51  }
  0x2a   :  { %456 = vmatmul.mubr.bf16.gmra.mrb[4].mxu0 %v2280_v25  ;;  %2143 = vmatpush3.bf16.msra.mxu1 %v2330_v60  ;;  %v2304_v25 = vld [vmem:[%s2818_s0 + $0x90] ss:$8 sps:$4 sm:$0xff]  }
  0x2b   :  { %463 = vmatprep.mubr.bf16.mxu0 %v2281_v27  ;;  %2176 = vmatprep.subr.bf16.mxu1 %v2341_v62  ;;  %v2340_v27 = vld [vmem:[%s2821_s2 + $0x48] sm:$0xff]  }
  0x2c   :  { %799 = vperm.xlu0 %2257, %v693_v53  }
  0x2d   :  { %804 = vperm.xlu1 %2258, %v694_v55   ;;  %2145 = vmatmul.mubr.bf16.vlgmr.msra.gmra.mrb[0].mxu1 %v2332_v0 }
  0x2e   :  { %2148 = vmatprep.mubr.bf16.mxu1 %v2333_v2  ;;  %2177 = vmatpush3.bf16.msra.mxu1 %v2341_v62 }
  0x2f   :  { %2178 = vmatprep.subr.bf16.mxu1 %v2342_v3 }
  0x30   :  { %809 = vperm.xlu0 %2257, %v695_v56  }
  0x31   :  { %814 = vperm.xlu1 %2258, %v696_v58  }
  0x32   :  { %464 = vmatmul.mubr.bf16.gmra.mrb[8].mxu0 %v2283_v31  ;;  %2179 = vmatpush3.bf16.msra.mxu1 %v2342_v3  ;;  %v2344_v31 = vld [vmem:[%s2821_s2 + $0x58] sm:$0xff]  }
  0x33   :  { %471 = vmatprep.mubr.bf16.mxu0 %v2284_v34  ;;  %2180 = vmatprep.subr.bf16.mxu1 %v2345_v8  ;;  %v2310_v34 = vld [vmem:[%s2818_s0 + $0xb0] ss:$8 sps:$4 sm:$0xff]  }
  0x34   :  { %819 = vperm.xlu0 %2257, %v697_v61  }
  0x35   :  { %824 = vperm.xlu1 %2258, %v698_v63   ;;  %2149 = vmatmul.mubr.bf16.gmra.mrb[4].mxu1 %v2334_v10 }
  0x36   :  { %2152 = vmatprep.mubr.bf16.mxu1 %v2335_v12  ;;  %2181 = vmatpush3.bf16.msra.mxu1 %v2345_v8 }
  0x37   :  { %2182 = vmatprep.subr.bf16.mxu1 %v2346_v13 }
  0x38   :  { %829 = vperm.xlu0 %2257, %v699_v1  }
  0x39   :  { %834 = vperm.xlu1 %2258, %v700_v5  }
  0x3a   :  { %472 = vmatmul.mubr.bf16.gmra.mrb[12].mxu0 %v2286_v39  ;;  %2183 = vmatpush3.bf16.msra.mxu1 %v2346_v13  ;;  %v2353_v39 = vld [vmem:[%s2822_s4 + $0x30] sm:$0xff]  }
  0x3b   :  { %479 = vmatprep.mubr.bf16.mxu0 %v2287_v41  ;;  %2184 = vmatprep.subr.bf16.mxu1 %v2349_v33  ;;  %v2314_v41 = vld [vmem:[%s2818_s0 + $0xd4] ss:$8 sps:$4 sm:$0xff]  }
  0x3c   :  { %839 = vperm.xlu0 %2257, %v701_v7  }
  0x3d   :  { %844 = vperm.xlu1 %2258, %v702_v9   ;;  %2153 = vmatmul.mubr.bf16.gmra.mrb[8].mxu1 %v2336_v19 }
  0x3e   :  { %2156 = vmatprep.mubr.bf16.mxu1 %v2337_v20  ;;  %2185 = vmatpush3.bf16.msra.mxu1 %v2349_v33 }
  0x3f   :  { %2186 = vmatprep.subr.bf16.mxu1 %v2350_v36 }
  0x40   :  { %849 = vperm.xlu0 %2257, %v703_v11  }
  0x41   :  { %854 = vperm.xlu1 %2258, %v704_v15  }
  0x42   :  { %480 = vmatmul.mubr.bf16.gmra.mrb[16].mxu0 %v2289_v48  ;;  %2187 = vmatpush3.bf16.msra.mxu1 %v2350_v36  ;;  %v2322_v48 = vld [vmem:[%s2818_s0 + $0xf0] ss:$8 sps:$4 sm:$0xff]  }
  0x43   :  { %487 = vmatprep.mubr.bf16.mxu0 %v2290_v52  ;;  %2188 = vmatprep.subr.bf16.mxu1 %v2353_v39 }
  0x44   :  { %859 = vperm.xlu0 %2257, %v705_v17  }
  0x45   :  { %864 = vperm.xlu1 %2258, %v706_v18   ;;  %2157 = vmatmul.mubr.bf16.gmra.mrb[12].mxu1 %v2338_v23 }
  0x46   :  { %2160 = vmatprep.mubr.bf16.mxu1 %v2339_v24  ;;  %2189 = vmatpush3.bf16.msra.mxu1 %v2353_v39 }
  0x47   :  { %2190 = vmatprep.subr.bf16.mxu1 %v2354_v42 }
  0x4a   :  { %488 = vmatmul.mubr.bf16.gmra.mrb[20].mxu0 %v2292_v57  ;;  %2191 = vmatpush3.bf16.msra.mxu1 %v2354_v42 }
  0x4b   :  { %495 = vmatprep.mubr.bf16.mxu0 %v2293_v59 }
  0x4d   :  { %2161 = vmatmul.mubr.bf16.gmra.mrb[16].mxu1 %v2340_v27 }
  0x4e   :  { %2164 = vmatprep.mubr.bf16.mxu1 %v2343_v28 }
  0x52   :  { %496 = vmatmul.mubr.bf16.gmra.mrb[24].mxu0 %v2295_v4 }
  0x53   :  { %503 = vmatprep.mubr.bf16.mxu0 %v2296_v6 }
  0x55   :  { %2165 = vmatmul.mubr.bf16.gmra.mrb[20].mxu1 %v2344_v31 }
  0x56   :  { %2168 = vmatprep.mubr.bf16.mxu1 %v2347_v32 }
  0x5a   :  { %504 = vmatmul.mubr.bf16.gmra.mrb[28].mxu0 %v2298_v14 }
  0x5b   :  { %511 = vmatprep.mubr.bf16.mxu0 %v2299_v16 }
  0x5d   :  { %2169 = vmatmul.mubr.bf16.gmra.mrb[24].mxu1 %v2348_v37 }
  0x5e   :  { %2172 = vmatprep.mubr.bf16.mxu1 %v2351_v38 }
  0x62   :  { %512 = vmatmul.mubr.bf16.gmra.mrb[32].mxu0 %v2301_v21 }
  0x63   :  { %519 = vmatprep.mubr.bf16.mxu0 %v2302_v22 }
  0x65   :  { %2173 = vmatmul.mubr.bf16.gmra.mrb[28].mxu1 %v2352_v43 }
  0x6a   :  { %520 = vmatmul.mubr.bf16.gmra.mrb[36].mxu0 %v2304_v25 }
  0x6b   :  { %527 = vmatprep.mubr.bf16.mxu0 %v2305_v26 }
  0x72   :  { %528 = vmatmul.mubr.bf16.gmra.mrb[40].mxu0 %v2307_v29 }
  0x73   :  { %535 = vmatprep.mubr.bf16.mxu0 %v2308_v30 }
  0x7a   :  { %536 = vmatmul.mubr.bf16.gmra.mrb[44].mxu0 %v2310_v34 }
  0x7b   :  { %543 = vmatprep.mubr.bf16.mxu0 %v2311_v35 }
  0x82   :  { %544 = vmatmul.mubr.bf16.gmra.mrb[48].mxu0 %v2313_v40 }
  0x83   :  { %551 = vmatprep.mubr.bf16.mxu0 %v2314_v41 }
  0x87   :  { %v710_v49 = vpop.permute.xlu0 %709 }
  0x88   :  { %v720_v59 = vpop.permute.xlu1 %719 }
  0x8a   :  { %552 = vmatmul.mubr.bf16.gmra.mrb[52].mxu0 %v2316_v44 }
  0x8b   :  { %559 = vmatprep.mubr.bf16.mxu0 %v2317_v45  ;;  %v715_v55 = vpop.permute.xlu0 %714 }
  0x8c   :  { %v725_v3 = vpop.permute.xlu1 %724 }
  0x8f   :  { %v730_v13 = vpop.permute.xlu0 %729 }
  0x90   :  { %v735_v14 = vpop.permute.xlu1 %734 }
  0x92   :  { %560 = vmatmul.mubr.bf16.gmra.mrb[56].mxu0 %v2319_v46 }
  0x93   :  { %567 = vmatprep.mubr.bf16.mxu0 %v2320_v47  ;;  %v740_v24 = vpop.permute.xlu0 %739 }
  0x94   :  { %v745_v25 = vpop.permute.xlu1 %744 }
  0x97   :  { %v750_v35 = vpop.permute.xlu0 %749 }
  0x98   :  { %v755_v36 = vpop.permute.xlu1 %754 }
  0x9a   :  { %568 = vmatmul.mubr.bf16.gmra.mrb[60].mxu0 %v2322_v48 }
  0x9b   :  { %v760_v46 = vpop.permute.xlu0 %759 }
  0x9c   :  { %v765_v47 = vpop.permute.xlu1 %764 }
  0xf5   :  { %v1984_v50 = vpop.f32.mrb[0].mxu0 }
  0xf6   :  { %v1985_v51 = vpop.f32.mrb[1].mxu0 }
  0xf7   :  { %v1986_v52 = vadd.f32 %v1985_v51, %v1984_v50  ;;  %v1987_v53 = vpop.f32.mrb[2].mxu0 }
  0xf8   :  { %v1988_v54 = vpop.f32.mrb[3].mxu0 }
  0xf9   :  { %v1989_v56 = vadd.f32 %v1988_v54, %v1987_v53  ;;  %v867_v57 = vmul.f32 %v1986_v52, %v710_v49 }
  0xfb   :  { %v868_v58 = vmul.f32 %v1989_v56, %v715_v55 }
  0xfd   :  { %v899_v60 = vpack.c.bf16 %v868_v58, %v867_v57  ;;  %v1990_v61 = vpop.f32.mrb[4].mxu0  ;;  %v770_v57 = vpop.permute.xlu0 %769 }
  0xfe   :  { %v1991_v62 = vpop.f32.mrb[5].mxu0  ;;  %v775_v58 = vpop.permute.xlu1 %774 }
  0xff   :  { %v1992_v63 = vadd.f32 %v1991_v62, %v1990_v61  ;;  %v1993_v0 = vpop.f32.mrb[6].mxu0  ;;  %2192 = vmatprep.mubr.bf16.mxu1 %v899_v60 }
 0x100   :  { %v1994_v1 = vpop.f32.mrb[7].mxu0 }
 0x101   :  { %v1995_v2 = vadd.f32 %v1994_v1, %v1993_v0  ;;  %v869_v4 = vmul.f32 %v1992_v63, %v720_v59 }
 0x103   :  { %v870_v5 = vmul.f32 %v1995_v2, %v725_v3 }
 0x105   :  { %v900_v6 = vpack.c.bf16 %v870_v5, %v869_v4  ;;  %v1996_v7 = vpop.f32.mrb[8].mxu0  ;;  %v780_v4 = vpop.permute.xlu0 %779 }
 0x106   :  { %v1997_v8 = vpop.f32.mrb[9].mxu0  ;;  %v785_v5 = vpop.permute.xlu1 %784 }
 0x107   :  { %v1998_v9 = vadd.f32 %v1997_v8, %v1996_v7  ;;  %v1999_v10 = vpop.f32.mrb[10].mxu0  ;;  %2193 = vmatmul.mubr.bf16.vlgmr.msra.gmra.mrb[0].mxu1 %v900_v6 }
 0x108   :  { %v2000_v11 = vpop.f32.mrb[11].mxu0 }
 0x109   :  { %v2001_v12 = vadd.f32 %v2000_v11, %v1999_v10  ;;  %v871_v15 = vmul.f32 %v1998_v9, %v730_v13 }
 0x10b   :  { %v872_v16 = vmul.f32 %v2001_v12, %v735_v14 }
 0x10d   :  { %v2002_v17 = vpop.f32.mrb[12].mxu0  ;;  %v901_v18 = vpack.c.bf16 %v872_v16, %v871_v15  ;;  %v790_v15 = vpop.permute.xlu0 %789 }
 0x10e   :  { %v2003_v19 = vpop.f32.mrb[13].mxu0  ;;  %v795_v16 = vpop.permute.xlu1 %794 }
 0x10f   :  { %v2004_v20 = vadd.f32 %v2003_v19, %v2002_v17  ;;  %v2005_v21 = vpop.f32.mrb[14].mxu0  ;;  %2196 = vmatprep.mubr.bf16.mxu1 %v901_v18 }
 0x110   :  { %v2006_v22 = vpop.f32.mrb[15].mxu0 }
 0x111   :  { %v2007_v23 = vadd.f32 %v2006_v22, %v2005_v21  ;;  %v873_v26 = vmul.f32 %v2004_v20, %v740_v24 }
 0x113   :  { %v874_v27 = vmul.f32 %v2007_v23, %v745_v25 }
 0x115   :  { %v2008_v28 = vpop.f32.mrb[16].mxu0  ;;  %v902_v29 = vpack.c.bf16 %v874_v27, %v873_v26  ;;  %v800_v26 = vpop.permute.xlu0 %799 }
 0x116   :  { %v2009_v30 = vpop.f32.mrb[17].mxu0  ;;  %v805_v27 = vpop.permute.xlu1 %804 }
 0x117   :  { %v2010_v31 = vadd.f32 %v2009_v30, %v2008_v28  ;;  %v2011_v32 = vpop.f32.mrb[18].mxu0  ;;  %2197 = vmatmul.mubr.bf16.gmra.mrb[4].mxu1 %v902_v29 }
 0x118   :  { %v2012_v33 = vpop.f32.mrb[19].mxu0 }
 0x119   :  { %v2013_v34 = vadd.f32 %v2012_v33, %v2011_v32  ;;  %v875_v37 = vmul.f32 %v2010_v31, %v750_v35 }
 0x11b   :  { %v876_v38 = vmul.f32 %v2013_v34, %v755_v36 }
 0x11d   :  { %v2014_v39 = vpop.f32.mrb[20].mxu0  ;;  %v903_v40 = vpack.c.bf16 %v876_v38, %v875_v37  ;;  %v810_v37 = vpop.permute.xlu0 %809 }
 0x11e   :  { %v2015_v41 = vpop.f32.mrb[21].mxu0  ;;  %v815_v38 = vpop.permute.xlu1 %814 }
 0x11f   :  { %v2016_v42 = vadd.f32 %v2015_v41, %v2014_v39  ;;  %v2017_v43 = vpop.f32.mrb[22].mxu0  ;;  %2200 = vmatprep.mubr.bf16.mxu1 %v903_v40 }
 0x120   :  { %v2018_v44 = vpop.f32.mrb[23].mxu0 }
 0x121   :  { %v2019_v45 = vadd.f32 %v2018_v44, %v2017_v43  ;;  %v877_v48 = vmul.f32 %v2016_v42, %v760_v46 }
 0x123   :  { %v878_v49 = vmul.f32 %v2019_v45, %v765_v47 }
 0x125   :  { %v2020_v50 = vpop.f32.mrb[24].mxu0  ;;  %v904_v51 = vpack.c.bf16 %v878_v49, %v877_v48  ;;  %v820_v48 = vpop.permute.xlu0 %819 }
 0x126   :  { %v2021_v52 = vpop.f32.mrb[25].mxu0  ;;  %v825_v49 = vpop.permute.xlu1 %824 }
 0x127   :  { %v2022_v53 = vadd.f32 %v2021_v52, %v2020_v50  ;;  %v2023_v54 = vpop.f32.mrb[26].mxu0  ;;  %2201 = vmatmul.mubr.bf16.gmra.mrb[8].mxu1 %v904_v51 }
 0x128   :  { %v2024_v55 = vpop.f32.mrb[27].mxu0 }
 0x129   :  { %v2025_v56 = vadd.f32 %v2024_v55, %v2023_v54  ;;  %v879_v59 = vmul.f32 %v2022_v53, %v770_v57 }
 0x12b   :  { %v880_v60 = vmul.f32 %v2025_v56, %v775_v58 }
 0x12d   :  { %v2026_v61 = vpop.f32.mrb[28].mxu0  ;;  %v905_v62 = vpack.c.bf16 %v880_v60, %v879_v59  ;;  %v830_v59 = vpop.permute.xlu0 %829 }
 0x12e   :  { %v2027_v63 = vpop.f32.mrb[29].mxu0  ;;  %v835_v60 = vpop.permute.xlu1 %834 }
 0x12f   :  { %v2028_v0 = vadd.f32 %v2027_v63, %v2026_v61  ;;  %v2029_v1 = vpop.f32.mrb[30].mxu0  ;;  %2204 = vmatprep.mubr.bf16.mxu1 %v905_v62 }
 0x130   :  { %v2030_v2 = vpop.f32.mrb[31].mxu0 }
 0x131   :  { %v2031_v3 = vadd.f32 %v2030_v2, %v2029_v1  ;;  %v881_v6 = vmul.f32 %v2028_v0, %v780_v4 }
 0x133   :  { %v882_v7 = vmul.f32 %v2031_v3, %v785_v5 }
 0x135   :  { %v2032_v8 = vpop.f32.mrb[32].mxu0  ;;  %v906_v9 = vpack.c.bf16 %v882_v7, %v881_v6  ;;  %v840_v6 = vpop.permute.xlu0 %839 }
 0x136   :  { %v2033_v10 = vpop.f32.mrb[33].mxu0  ;;  %v845_v7 = vpop.permute.xlu1 %844 }
 0x137   :  { %v2034_v11 = vadd.f32 %v2033_v10, %v2032_v8  ;;  %v2035_v12 = vpop.f32.mrb[34].mxu0  ;;  %2205 = vmatmul.mubr.bf16.gmra.mrb[12].mxu1 %v906_v9 }
 0x138   :  { %v2036_v13 = vpop.f32.mrb[35].mxu0 }
 0x139   :  { %v2037_v14 = vadd.f32 %v2036_v13, %v2035_v12  ;;  %v883_v17 = vmul.f32 %v2034_v11, %v790_v15 }
 0x13b   :  { %v884_v18 = vmul.f32 %v2037_v14, %v795_v16 }
 0x13d   :  { %v2038_v19 = vpop.f32.mrb[36].mxu0  ;;  %v907_v20 = vpack.c.bf16 %v884_v18, %v883_v17  ;;  %v850_v17 = vpop.permute.xlu0 %849 }
 0x13e   :  { %v2039_v21 = vpop.f32.mrb[37].mxu0  ;;  %v855_v18 = vpop.permute.xlu1 %854 }
 0x13f   :  { %v2040_v22 = vadd.f32 %v2039_v21, %v2038_v19  ;;  %v2041_v23 = vpop.f32.mrb[38].mxu0  ;;  %2208 = vmatprep.mubr.bf16.mxu1 %v907_v20 }
 0x140   :  { %v2042_v24 = vpop.f32.mrb[39].mxu0 }
 0x141   :  { %v2043_v25 = vadd.f32 %v2042_v24, %v2041_v23  ;;  %v885_v28 = vmul.f32 %v2040_v22, %v800_v26 }
 0x143   :  { %v886_v29 = vmul.f32 %v2043_v25, %v805_v27 }
 0x145   :  { %v2044_v30 = vpop.f32.mrb[40].mxu0  ;;  %v908_v31 = vpack.c.bf16 %v886_v29, %v885_v28  ;;  %v860_v28 = vpop.permute.xlu0 %859 }
 0x146   :  { %v2045_v32 = vpop.f32.mrb[41].mxu0  ;;  %v865_v29 = vpop.permute.xlu1 %864 }
 0x147   :  { %v2046_v33 = vadd.f32 %v2045_v32, %v2044_v30  ;;  %v2047_v34 = vpop.f32.mrb[42].mxu0  ;;  %2209 = vmatmul.mubr.bf16.gmra.mrb[16].mxu1 %v908_v31 }
 0x148   :  { %v2048_v35 = vpop.f32.mrb[43].mxu0 }
 0x149   :  { %v2049_v36 = vadd.f32 %v2048_v35, %v2047_v34  ;;  %v887_v39 = vmul.f32 %v2046_v33, %v810_v37  ;;  %v2735_v33 = vld [vmem:[%s2823_s6] ss:$0 sm:$0xff] }
 0x14b   :  { %v888_v40 = vmul.f32 %v2049_v36, %v815_v38 }
 0x14d   :  { %v2050_v41 = vpop.f32.mrb[44].mxu0  ;;  %v909_v42 = vpack.c.bf16 %v888_v40, %v887_v39 }
 0x14e   :  { %v2051_v43 = vpop.f32.mrb[45].mxu0 }
 0x14f   :  { %v2052_v44 = vadd.f32 %v2051_v43, %v2050_v41  ;;  %v2053_v45 = vpop.f32.mrb[46].mxu0  ;;  %2212 = vmatprep.mubr.bf16.mxu1 %v909_v42 }
 0x150   :  { %v2054_v46 = vpop.f32.mrb[47].mxu0 }
 0x151   :  { %v2055_v47 = vadd.f32 %v2054_v46, %v2053_v45  ;;  %v889_v50 = vmul.f32 %v2052_v44, %v820_v48 }
 0x153   :  { %v890_v51 = vmul.f32 %v2055_v47, %v825_v49 }
 0x155   :  { %v2056_v52 = vpop.f32.mrb[48].mxu0  ;;  %v910_v53 = vpack.c.bf16 %v890_v51, %v889_v50 }
 0x156   :  { %v2057_v54 = vpop.f32.mrb[49].mxu0 }
 0x157   :  { %v2058_v55 = vadd.f32 %v2057_v54, %v2056_v52  ;;  %v2059_v56 = vpop.f32.mrb[50].mxu0  ;;  %2213 = vmatmul.mubr.bf16.gmra.mrb[20].mxu1 %v910_v53 }
 0x158   :  { %v2060_v57 = vpop.f32.mrb[51].mxu0 }
 0x159   :  { %v2061_v58 = vadd.f32 %v2060_v57, %v2059_v56  ;;  %v891_v61 = vmul.f32 %v2058_v55, %v830_v59 }
 0x15b   :  { %v892_v62 = vmul.f32 %v2061_v58, %v835_v60 }
 0x15d   :  { %v2062_v63 = vpop.f32.mrb[52].mxu0  ;;  %v911_v0 = vpack.c.bf16 %v892_v62, %v891_v61 }
 0x15e   :  { %v2063_v1 = vpop.f32.mrb[53].mxu0 }
 0x15f   :  { %v2064_v2 = vadd.f32 %v2063_v1, %v2062_v63  ;;  %v2065_v3 = vpop.f32.mrb[54].mxu0  ;;  %2216 = vmatprep.mubr.bf16.mxu1 %v911_v0 }
 0x160   :  { %v2066_v4 = vpop.f32.mrb[55].mxu0 }
 0x161   :  { %v2067_v5 = vadd.f32 %v2066_v4, %v2065_v3  ;;  %v893_v8 = vmul.f32 %v2064_v2, %v840_v6 }
 0x163   :  { %v894_v9 = vmul.f32 %v2067_v5, %v845_v7 }
 0x165   :  { %v2068_v10 = vpop.f32.mrb[56].mxu0  ;;  %v912_v11 = vpack.c.bf16 %v894_v9, %v893_v8 }
 0x166   :  { %v2069_v12 = vpop.f32.mrb[57].mxu0 }
 0x167   :  { %v2070_v13 = vadd.f32 %v2069_v12, %v2068_v10  ;;  %v2071_v14 = vpop.f32.mrb[58].mxu0  ;;  %2217 = vmatmul.mubr.bf16.gmra.mrb[24].mxu1 %v912_v11 }
 0x168   :  { %v2072_v15 = vpop.f32.mrb[59].mxu0 }
 0x169   :  { %v2073_v16 = vadd.f32 %v2072_v15, %v2071_v14  ;;  %v895_v19 = vmul.f32 %v2070_v13, %v850_v17 }
 0x16b   :  { %v896_v20 = vmul.f32 %v2073_v16, %v855_v18 }
 0x16d   :  { %v2074_v21 = vpop.f32.mrb[60].mxu0  ;;  %v913_v22 = vpack.c.bf16 %v896_v20, %v895_v19 }
 0x16e   :  { %v2075_v23 = vpop.f32.mrb[61].mxu0 }
 0x16f   :  { %v2076_v24 = vadd.f32 %v2075_v23, %v2074_v21  ;;  %v2077_v25 = vpop.f32.mrb[62].mxu0  ;;  %2220 = vmatprep.mubr.bf16.mxu1 %v913_v22 }
 0x170   :  { %v2078_v26 = vpop.f32.mrb[63].mxu0 }
 0x171   :  { %v2079_v27 = vadd.f32 %v2078_v26, %v2077_v25  ;;  %v897_v30 = vmul.f32 %v2076_v24, %v860_v28 }
 0x173   :  { %v898_v31 = vmul.f32 %v2079_v27, %v865_v29 }
 0x175   :  { %v914_v32 = vpack.c.bf16 %v898_v31, %v897_v30 }
 0x177   :  { %2221 = vmatmul.mubr.bf16.gmra.mrb[28].mxu1 %v914_v32 }
 0x1da   :  { %v2194_v34 = vpop.f32.mrb[0].mxu1 }
 0x1db   :  { %v1502_v35 = vadd.f32 %v2194_v34, %v2735_v33  ;;  %v1366_v36 = vpop.f32.mrb[1].mxu1 }
 0x1dc   :  { %v1500_v37 = vadd.f32 %v2735_v33, %v1366_v36  ;;  %v2195_v38 = vpop.f32.mrb[2].mxu1 }
 0x1dd   :  { %v1503_v39 = vadd.f32 %v2195_v38, %v2735_v33  ;;  %v1369_v40 = vpop.f32.mrb[3].mxu1  ;;  %v1534_v42 = vmax.f32 %v1502_v35, 0.0 }
 0x1de   :  { %v1501_v41 = vadd.f32 %v2735_v33, %v1369_v40  ;;  %v1532_v44 = vmax.f32 %v1500_v37, 0.0 }
 0x1df   :  { %v1535_v43 = vmax.f32 %v1503_v39, 0.0 }
 0x1e0   :  { %v1533_v45 = vmax.f32 %v1501_v41, 0.0 }
 0x1e1   :  { %v1881_v46 = vpack.c.bf16 %v1535_v43, %v1534_v42 }
 0x1e2   :  { %v1876_v47 = vpack.c.bf16 %v1533_v45, %v1532_v44 }
 0x1e3   :  { %1953 = vst [vmem:[%s2824_s7 + $0x8] sm:$0xff] %v1881_v46  }
 0x1e4   :  { %1877 = vst [vmem:[%s2824_s7] sm:$0xff] %v1876_v47  }
 0x1ea   :  { %v2198_v48 = vpop.f32.mrb[4].mxu1 }
 0x1eb   :  { %v1506_v49 = vadd.f32 %v2198_v48, %v2735_v33  ;;  %v1382_v50 = vpop.f32.mrb[5].mxu1 }
 0x1ec   :  { %v1504_v51 = vadd.f32 %v2735_v33, %v1382_v50  ;;  %v2199_v52 = vpop.f32.mrb[6].mxu1 }
 0x1ed   :  { %v1507_v53 = vadd.f32 %v2199_v52, %v2735_v33  ;;  %v1385_v54 = vpop.f32.mrb[7].mxu1  ;;  %v1538_v56 = vmax.f32 %v1506_v49, 0.0 }
 0x1ee   :  { %v1505_v55 = vadd.f32 %v2735_v33, %v1385_v54  ;;  %v1536_v58 = vmax.f32 %v1504_v51, 0.0 }
 0x1ef   :  { %v1539_v57 = vmax.f32 %v1507_v53, 0.0 }
 0x1f0   :  { %v1537_v59 = vmax.f32 %v1505_v55, 0.0 }
 0x1f1   :  { %v1891_v60 = vpack.c.bf16 %v1539_v57, %v1538_v56 }
 0x1f2   :  { %v1886_v61 = vpack.c.bf16 %v1537_v59, %v1536_v58 }
 0x1f3   :  { %1955 = vst [vmem:[%s2824_s7 + $0x18] sm:$0xff] %v1891_v60  }
 0x1f4   :  { %1954 = vst [vmem:[%s2824_s7 + $0x10] sm:$0xff] %v1886_v61  }
 0x1fa   :  { %v2202_v62 = vpop.f32.mrb[8].mxu1 }
 0x1fb   :  { %v1510_v63 = vadd.f32 %v2202_v62, %v2735_v33  ;;  %v1398_v0 = vpop.f32.mrb[9].mxu1 }
 0x1fc   :  { %v1508_v1 = vadd.f32 %v2735_v33, %v1398_v0  ;;  %v2203_v2 = vpop.f32.mrb[10].mxu1 }
 0x1fd   :  { %v1511_v3 = vadd.f32 %v2203_v2, %v2735_v33  ;;  %v1401_v4 = vpop.f32.mrb[11].mxu1  ;;  %v1542_v6 = vmax.f32 %v1510_v63, 0.0 }
 0x1fe   :  { %v1509_v5 = vadd.f32 %v2735_v33, %v1401_v4  ;;  %v1540_v8 = vmax.f32 %v1508_v1, 0.0 }
 0x1ff   :  { %v1543_v7 = vmax.f32 %v1511_v3, 0.0 }
 0x200   :  { %v1541_v9 = vmax.f32 %v1509_v5, 0.0 }
 0x201   :  { %v1901_v10 = vpack.c.bf16 %v1543_v7, %v1542_v6 }
 0x202   :  { %v1896_v11 = vpack.c.bf16 %v1541_v9, %v1540_v8 }
 0x203   :  { %1957 = vst [vmem:[%s2824_s7 + $0x28] sm:$0xff] %v1901_v10  }
 0x204   :  { %1956 = vst [vmem:[%s2824_s7 + $0x20] sm:$0xff] %v1896_v11  }
 0x20a   :  { %v2206_v12 = vpop.f32.mrb[12].mxu1 }
 0x20b   :  { %v1514_v13 = vadd.f32 %v2206_v12, %v2735_v33  ;;  %v1414_v14 = vpop.f32.mrb[13].mxu1 }
 0x20c   :  { %v1512_v15 = vadd.f32 %v2735_v33, %v1414_v14  ;;  %v2207_v16 = vpop.f32.mrb[14].mxu1 }
 0x20d   :  { %v1515_v17 = vadd.f32 %v2207_v16, %v2735_v33  ;;  %v1417_v18 = vpop.f32.mrb[15].mxu1  ;;  %v1546_v20 = vmax.f32 %v1514_v13, 0.0 }
 0x20e   :  { %v1513_v19 = vadd.f32 %v2735_v33, %v1417_v18  ;;  %v1544_v22 = vmax.f32 %v1512_v15, 0.0 }
 0x20f   :  { %v1547_v21 = vmax.f32 %v1515_v17, 0.0 }
 0x210   :  { %v1545_v23 = vmax.f32 %v1513_v19, 0.0 }
 0x211   :  { %v1911_v24 = vpack.c.bf16 %v1547_v21, %v1546_v20 }
 0x212   :  { %v1906_v25 = vpack.c.bf16 %v1545_v23, %v1544_v22 }
 0x213   :  { %1959 = vst [vmem:[%s2824_s7 + $0x38] sm:$0xff] %v1911_v24  }
 0x214   :  { %1958 = vst [vmem:[%s2824_s7 + $0x30] sm:$0xff] %v1906_v25  }
 0x21a   :  { %v2210_v26 = vpop.f32.mrb[16].mxu1 }
 0x21b   :  { %v1518_v27 = vadd.f32 %v2210_v26, %v2735_v33  ;;  %v1430_v28 = vpop.f32.mrb[17].mxu1 }
 0x21c   :  { %v1516_v29 = vadd.f32 %v2735_v33, %v1430_v28  ;;  %v2211_v30 = vpop.f32.mrb[18].mxu1 }
 0x21d   :  { %v1519_v31 = vadd.f32 %v2211_v30, %v2735_v33  ;;  %v1433_v32 = vpop.f32.mrb[19].mxu1  ;;  %v1550_v35 = vmax.f32 %v1518_v27, 0.0 }
 0x21e   :  { %v1517_v34 = vadd.f32 %v2735_v33, %v1433_v32  ;;  %v1548_v37 = vmax.f32 %v1516_v29, 0.0 }
 0x21f   :  { %v1551_v36 = vmax.f32 %v1519_v31, 0.0 }
 0x220   :  { %v1549_v38 = vmax.f32 %v1517_v34, 0.0 }
 0x221   :  { %v1921_v39 = vpack.c.bf16 %v1551_v36, %v1550_v35 }
 0x222   :  { %v1916_v40 = vpack.c.bf16 %v1549_v38, %v1548_v37 }
 0x223   :  { %1961 = vst [vmem:[%s2824_s7 + $0x48] sm:$0xff] %v1921_v39  }
 0x224   :  { %1960 = vst [vmem:[%s2824_s7 + $0x40] sm:$0xff] %v1916_v40  }
 0x22a   :  { %v2214_v41 = vpop.f32.mrb[20].mxu1 }
 0x22b   :  { %v1522_v42 = vadd.f32 %v2214_v41, %v2735_v33  ;;  %v1446_v43 = vpop.f32.mrb[21].mxu1 }
 0x22c   :  { %v1520_v44 = vadd.f32 %v2735_v33, %v1446_v43  ;;  %v2215_v45 = vpop.f32.mrb[22].mxu1 }
 0x22d   :  { %v1523_v46 = vadd.f32 %v2215_v45, %v2735_v33  ;;  %v1449_v47 = vpop.f32.mrb[23].mxu1  ;;  %v1554_v49 = vmax.f32 %v1522_v42, 0.0 }
 0x22e   :  { %v1521_v48 = vadd.f32 %v2735_v33, %v1449_v47  ;;  %v1552_v51 = vmax.f32 %v1520_v44, 0.0 }
 0x22f   :  { %v1555_v50 = vmax.f32 %v1523_v46, 0.0 }
 0x230   :  { %v1553_v52 = vmax.f32 %v1521_v48, 0.0 }
 0x231   :  { %v1931_v53 = vpack.c.bf16 %v1555_v50, %v1554_v49 }
 0x232   :  { %v1926_v54 = vpack.c.bf16 %v1553_v52, %v1552_v51 }
 0x233   :  { %1963 = vst [vmem:[%s2824_s7 + $0x58] sm:$0xff] %v1931_v53  }
 0x234   :  { %1962 = vst [vmem:[%s2824_s7 + $0x50] sm:$0xff] %v1926_v54  }
 0x23a   :  { %v2218_v55 = vpop.f32.mrb[24].mxu1 }
 0x23b   :  { %v1526_v56 = vadd.f32 %v2218_v55, %v2735_v33  ;;  %v1462_v57 = vpop.f32.mrb[25].mxu1 }
 0x23c   :  { %v1524_v58 = vadd.f32 %v2735_v33, %v1462_v57  ;;  %v2219_v59 = vpop.f32.mrb[26].mxu1 }
 0x23d   :  { %v1527_v60 = vadd.f32 %v2219_v59, %v2735_v33  ;;  %v1465_v61 = vpop.f32.mrb[27].mxu1  ;;  %v1558_v63 = vmax.f32 %v1526_v56, 0.0 }
 0x23e   :  { %v1525_v62 = vadd.f32 %v2735_v33, %v1465_v61  ;;  %v1556_v1 = vmax.f32 %v1524_v58, 0.0 }
 0x23f   :  { %v1559_v0 = vmax.f32 %v1527_v60, 0.0 }
 0x240   :  { %v1557_v2 = vmax.f32 %v1525_v62, 0.0 }
 0x241   :  { %v1941_v3 = vpack.c.bf16 %v1559_v0, %v1558_v63 }
 0x242   :  { %v1936_v4 = vpack.c.bf16 %v1557_v2, %v1556_v1 }
 0x243   :  { %1965 = vst [vmem:[%s2824_s7 + $0x68] sm:$0xff] %v1941_v3  }
 0x244   :  { %1964 = vst [vmem:[%s2824_s7 + $0x60] sm:$0xff] %v1936_v4  }
 0x24a   :  { %v2222_v5 = vpop.f32.mrb[28].mxu1 }
 0x24b   :  { %v1530_v6 = vadd.f32 %v2222_v5, %v2735_v33  ;;  %v1478_v7 = vpop.f32.mrb[29].mxu1 }
 0x24c   :  { %v1528_v8 = vadd.f32 %v2735_v33, %v1478_v7  ;;  %v2223_v9 = vpop.f32.mrb[30].mxu1 }
 0x24d   :  { %v1531_v10 = vadd.f32 %v2223_v9, %v2735_v33  ;;  %v1481_v11 = vpop.f32.mrb[31].mxu1  ;;  %v1562_v13 = vmax.f32 %v1530_v6, 0.0 }
 0x24e   :  { %v1529_v12 = vadd.f32 %v2735_v33, %v1481_v11  ;;  %v1560_v15 = vmax.f32 %v1528_v8, 0.0 }
 0x24f   :  { %v1563_v14 = vmax.f32 %v1531_v10, 0.0 }
 0x250   :  { %v1561_v16 = vmax.f32 %v1529_v12, 0.0 }
 0x251   :  { %v1951_v17 = vpack.c.bf16 %v1563_v14, %v1562_v13 }
 0x252   :  { %v1946_v18 = vpack.c.bf16 %v1561_v16, %v1560_v15 }
 0x253   :  { %1967 = vst [vmem:[%s2824_s7 + $0x78] sm:$0xff] %v1951_v17  }
 0x254   :  { %1966 = vst [vmem:[%s2824_s7 + $0x70] sm:$0xff] %v1946_v18  }

// kernel: model_forward.9
= control target key start
LH: loop header
LB: loop body
LE: loop exit
PB: predicated region body
PF: predicated region fallthrough
CT: control target
= control target key end

     0   :  { %v2829_v1 = vmov 0   ;;  %s3575_s1 = inlined_call_operand.vmem [shape: bf16[128,512], index: 1, kind: input, shape index: {}]   ;;  %s3576_s3 = inlined_call_operand.vmem [shape: bf16[128,128], index: 3, kind: input, shape index: {}]   ;;  %s3577_s0 = inlined_call_operand.vmem [shape: bf16[128,512], index: 0, kind: input, shape index: {}]   ;;  %s3578_s4 = inlined_call_operand.vmem [shape: f32[128,1], index: 4, kind: input, shape index: {}]   ;;  %s3579_s10 = inlined_call_operand.<no memory space> [shape: f32[1,1], index: 10, kind: input, shape index: {}]   ;;  %s3580_s2 = inlined_call_operand.vmem [shape: bf16[128,128], index: 2, kind: input, shape index: {}]   ;;  %s3581_s6 = inlined_call_operand.vmem [shape: f32[128,1], index: 6, kind: input, shape index: {}]   ;;  %s3582_s8 = inlined_call_operand.vmem [shape: f32[128,1], index: 8, kind: input, shape index: {}]   ;;  %s3583_s9 = inlined_call_operand.vmem [shape: f32[128,1], index: 9, kind: input, shape index: {}]   ;;  %s3584_s5 = inlined_call_operand.vmem [shape: bf16[128,128], index: 5, kind: input, shape index: {}]   ;;  %s3585_s7 = inlined_call_operand.vmem [shape: bf16[128,128], index: 7, kind: input, shape index: {}]   ;;  %s3586_s11 = inlined_call_operand.vmem [shape: f32[1,512], index: 11, kind: output, shape index: {}]  }
   0x1   :  { %v2685_v0 = vld [vmem:[%s3575_s1 + $0x4] ss:$16 sps:$4 sm:$0xff]   ;;  %377 = vmatprep.mubr.bf16.mxu0 %v2829_v1  ;;  %490 = vmatprep.mubr.bf16.mxu1 %v2829_v1  ;;  %v2687_v2 = vld [vmem:[%s3575_s1 + $0xc] ss:$16 sps:$4 sm:$0xff]   ;;  %v2689_v3 = vld [vmem:[%s3575_s1] ss:$16 sps:$4 sm:$0xff]   ;;  %v16_v44 = vstv %s3579_s10 }
   0x2   :  { %2683 = vset.pattern.permute.xlu0 %v2829_v1  ;;  %2684 = vset.pattern.permute.xlu1 %v2829_v1  ;;  %v2690_v4 = vld [vmem:[%s3575_s1 + $0x8] ss:$16 sps:$4 sm:$0xff]   ;;  %v2691_v5 = vld [vmem:[%s3575_s1 + $0x24] ss:$16 sps:$4 sm:$0xff]   ;;  %v2693_v6 = vld [vmem:[%s3575_s1 + $0x2c] ss:$16 sps:$4 sm:$0xff]  }
   0x3   :  { %345 = vmatprep.subr.bf16.mxu0 %v2685_v0  ;;  %458 = vmatprep.subr.bf16.mxu1 %v2687_v2  ;;  %v2695_v7 = vld [vmem:[%s3575_s1 + $0x20] ss:$16 sps:$4 sm:$0xff]   ;;  %v2696_v8 = vld [vmem:[%s3575_s1 + $0x28] ss:$16 sps:$4 sm:$0xff]   ;;  %v2697_v9 = vld [vmem:[%s3575_s1 + $0x44] ss:$16 sps:$4 sm:$0xff]  }
   0x4   :  { %346 = vmatpush1.bf16.msra.mxu0 %v2689_v3  ;;  %459 = vmatpush1.bf16.msra.mxu1 %v2690_v4  ;;  %v2699_v10 = vld [vmem:[%s3575_s1 + $0x4c] ss:$16 sps:$4 sm:$0xff]   ;;  %v2701_v11 = vld [vmem:[%s3575_s1 + $0x40] ss:$16 sps:$4 sm:$0xff]   ;;  %v2702_v12 = vld [vmem:[%s3575_s1 + $0x48] ss:$16 sps:$4 sm:$0xff]  }
   0x5   :  { %347 = vmatprep.subr.bf16.mxu0 %v2691_v5  ;;  %460 = vmatprep.subr.bf16.mxu1 %v2693_v6  ;;  %v2703_v13 = vld [vmem:[%s3575_s1 + $0x64] ss:$16 sps:$4 sm:$0xff]   ;;  %v2705_v14 = vld [vmem:[%s3575_s1 + $0x6c] ss:$16 sps:$4 sm:$0xff]   ;;  %v2707_v15 = vld [vmem:[%s3575_s1 + $0x60] ss:$16 sps:$4 sm:$0xff]  }
   0x6   :  { %v2708_v16 = vld [vmem:[%s3575_s1 + $0x68] ss:$16 sps:$4 sm:$0xff]   ;;  %v2709_v17 = vld [vmem:[%s3575_s1 + $0x84] ss:$16 sps:$4 sm:$0xff]   ;;  %v2711_v18 = vld [vmem:[%s3575_s1 + $0x8c] ss:$16 sps:$4 sm:$0xff]  }
   0x7   :  { %v2713_v19 = vld [vmem:[%s3575_s1 + $0x80] ss:$16 sps:$4 sm:$0xff]   ;;  %v2714_v20 = vld [vmem:[%s3575_s1 + $0x88] ss:$16 sps:$4 sm:$0xff]   ;;  %v2715_v21 = vld [vmem:[%s3575_s1 + $0xa4] ss:$16 sps:$4 sm:$0xff]  }
   0x8   :  { %348 = vmatpush1.bf16.msra.mxu0 %v2695_v7  ;;  %461 = vmatpush1.bf16.msra.mxu1 %v2696_v8  ;;  %v2717_v22 = vld [vmem:[%s3575_s1 + $0xac] ss:$16 sps:$4 sm:$0xff]   ;;  %v2719_v23 = vld [vmem:[%s3575_s1 + $0xa0] ss:$16 sps:$4 sm:$0xff]   ;;  %v2720_v24 = vld [vmem:[%s3575_s1 + $0xa8] ss:$16 sps:$4 sm:$0xff]  }
   0x9   :  { %349 = vmatprep.subr.bf16.mxu0 %v2697_v9  ;;  %462 = vmatprep.subr.bf16.mxu1 %v2699_v10  ;;  %v2721_v25 = vld [vmem:[%s3575_s1 + $0xc4] ss:$16 sps:$4 sm:$0xff]   ;;  %v2723_v26 = vld [vmem:[%s3575_s1 + $0xcc] ss:$16 sps:$4 sm:$0xff]   ;;  %v2725_v27 = vld [vmem:[%s3575_s1 + $0xc0] ss:$16 sps:$4 sm:$0xff]  }
   0xa   :  { %v2726_v28 = vld [vmem:[%s3575_s1 + $0xc8] ss:$16 sps:$4 sm:$0xff]   ;;  %v2727_v29 = vld [vmem:[%s3575_s1 + $0xe4] ss:$16 sps:$4 sm:$0xff]   ;;  %v2729_v30 = vld [vmem:[%s3575_s1 + $0xec] ss:$16 sps:$4 sm:$0xff]  }
   0xb   :  { %v2731_v31 = vld [vmem:[%s3575_s1 + $0xe0] ss:$16 sps:$4 sm:$0xff]   ;;  %v2732_v32 = vld [vmem:[%s3575_s1 + $0xe8] ss:$16 sps:$4 sm:$0xff]   ;;  %v2736_v33 = vld [vmem:[%s3577_s0 + $0x4] ss:$16 sps:$4 sm:$0xff]  }
   0xc   :  { %350 = vmatpush1.bf16.msra.mxu0 %v2701_v11  ;;  %463 = vmatpush1.bf16.msra.mxu1 %v2702_v12  ;;  %v2739_v34 = vld [vmem:[%s3577_s0 + $0xc] ss:$16 sps:$4 sm:$0xff]   ;;  %v1005_v35 = vld [vmem:[%s3578_s4] sm:$0xff]  ;;  %v2737_v38 = vld [vmem:[%s3577_s0 + $0x8] ss:$16 sps:$4 sm:$0xff]  }
   0xd   :  { %351 = vmatprep.subr.bf16.mxu0 %v2703_v13  ;;  %464 = vmatprep.subr.bf16.mxu1 %v2705_v14  ;;  %v2733_v36 = vld [vmem:[%s3576_s3] sm:$0xff]   ;;  %v1006_v39 = vld [vmem:[%s3578_s4 + $0x8] sm:$0xff]  ;;  %17 = vst [vmem:[#allocation2] sm:$0x1] %v16_v44  ;;  %v1007_v48 = vld [vmem:[%s3578_s4 + $0x10] sm:$0xff] }
   0xe   :  { %1023 = vperm.xlu0 %2683, %v1005_v35   ;;  %v2734_v37 = vld [vmem:[%s3577_s0] ss:$16 sps:$4 sm:$0xff]   ;;  %v2743_v40 = vld [vmem:[%s3577_s0 + $0x24] ss:$16 sps:$4 sm:$0xff]   ;;  %v2746_v41 = vld [vmem:[%s3577_s0 + $0x2c] ss:$16 sps:$4 sm:$0xff]   ;;  %1033 = vperm.xlu1 %2684, %v1007_v48  }
   0xf   :  { %v2741_v42 = vld [vmem:[%s3577_s0 + $0x20] ss:$16 sps:$4 sm:$0xff]   ;;  %v2744_v43 = vld [vmem:[%s3577_s0 + $0x28] ss:$16 sps:$4 sm:$0xff]   ;;  %v2750_v45 = vld [vmem:[%s3577_s0 + $0x44] ss:$16 sps:$4 sm:$0xff]  }
  0x10   :  { %352 = vmatpush1.bf16.msra.mxu0 %v2707_v15  ;;  %465 = vmatpush1.bf16.msra.mxu1 %v2708_v16  ;;  %v1009_v46 = vld [vmem:[%s3578_s4 + $0x20] sm:$0xff]  ;;  %v2753_v47 = vld [vmem:[%s3577_s0 + $0x4c] ss:$16 sps:$4 sm:$0xff]   ;;  %v2751_v51 = vld [vmem:[%s3577_s0 + $0x48] ss:$16 sps:$4 sm:$0xff]  }
  0x11   :  { %353 = vmatprep.subr.bf16.mxu0 %v2709_v17  ;;  %466 = vmatprep.subr.bf16.mxu1 %v2711_v18  ;;  %v2740_v49 = vld [vmem:[%s3576_s3 + $0x8] sm:$0xff]   ;;  %v2748_v50 = vld [vmem:[%s3577_s0 + $0x40] ss:$16 sps:$4 sm:$0xff]   ;;  %v2757_v52 = vld [vmem:[%s3577_s0 + $0x64] ss:$16 sps:$4 sm:$0xff]  }
  0x12   :  { %1028 = vperm.xlu0 %2683, %v1006_v39   ;;  %v2760_v53 = vld [vmem:[%s3577_s0 + $0x6c] ss:$16 sps:$4 sm:$0xff]   ;;  %v1011_v54 = vld [vmem:[%s3578_s4 + $0x30] sm:$0xff]  ;;  %v2758_v57 = vld [vmem:[%s3577_s0 + $0x68] ss:$16 sps:$4 sm:$0xff]  }
  0x13   :  { %v1008_v55 = vld [vmem:[%s3578_s4 + $0x18] sm:$0xff]  ;;  %v2755_v56 = vld [vmem:[%s3577_s0 + $0x60] ss:$16 sps:$4 sm:$0xff]   ;;  %v2764_v58 = vld [vmem:[%s3577_s0 + $0x84] ss:$16 sps:$4 sm:$0xff]  }
  0x14   :  { %354 = vmatpush1.bf16.msra.mxu0 %v2713_v19  ;;  %467 = vmatpush1.bf16.msra.mxu1 %v2714_v20  ;;  %v2767_v59 = vld [vmem:[%s3577_s0 + $0x8c] ss:$16 sps:$4 sm:$0xff]   ;;  %v2747_v60 = vld [vmem:[%s3576_s3 + $0x10] sm:$0xff]   ;;  %v1013_v61 = vld [vmem:[%s3578_s4 + $0x40] sm:$0xff] }
  0x15   :  { %355 = vmatprep.subr.bf16.mxu0 %v2715_v21  ;;  %468 = vmatprep.subr.bf16.mxu1 %v2717_v22  ;;  %v2762_v62 = vld [vmem:[%s3577_s0 + $0x80] ss:$16 sps:$4 sm:$0xff]   ;;  %v2765_v63 = vld [vmem:[%s3577_s0 + $0x88] ss:$16 sps:$4 sm:$0xff]   ;;  %v2771_v2 = vld [vmem:[%s3577_s0 + $0xa4] ss:$16 sps:$4 sm:$0xff]  }
  0x16   :  { %1043 = vperm.xlu0 %2683, %v1009_v46   ;;  %1038 = vperm.xlu1 %2684, %v1008_v55   ;;  %v1010_v0 = vld [vmem:[%s3578_s4 + $0x28] sm:$0xff]  ;;  %v1015_v4 = vld [vmem:[%s3578_s4 + $0x50] sm:$0xff]  ;;  %v2754_v7 = vld [vmem:[%s3576_s3 + $0x18] sm:$0xff]  }
  0x17   :  { %v2774_v3 = vld [vmem:[%s3577_s0 + $0xac] ss:$16 sps:$4 sm:$0xff]   ;;  %v2769_v5 = vld [vmem:[%s3577_s0 + $0xa0] ss:$16 sps:$4 sm:$0xff]   ;;  %v2772_v6 = vld [vmem:[%s3577_s0 + $0xa8] ss:$16 sps:$4 sm:$0xff]  }
  0x18   :  { %356 = vmatpush1.bf16.msra.mxu0 %v2719_v23  ;;  %469 = vmatpush1.bf16.msra.mxu1 %v2720_v24  ;;  %v1012_v8 = vld [vmem:[%s3578_s4 + $0x38] sm:$0xff]  ;;  %v1017_v9 = vld [vmem:[%s3578_s4 + $0x60] sm:$0xff]  ;;  %v1014_v11 = vld [vmem:[%s3578_s4 + $0x48] sm:$0xff] }
  0x19   :  { %357 = vmatprep.subr.bf16.mxu0 %v2721_v25  ;;  %470 = vmatprep.subr.bf16.mxu1 %v2723_v26  ;;  %v2778_v10 = vld [vmem:[%s3577_s0 + $0xc4] ss:$16 sps:$4 sm:$0xff]   ;;  %v2781_v12 = vld [vmem:[%s3577_s0 + $0xcc] ss:$16 sps:$4 sm:$0xff]   ;;  %v2776_v13 = vld [vmem:[%s3577_s0 + $0xc0] ss:$16 sps:$4 sm:$0xff]  }
  0x1a   :  { %1053 = vperm.xlu0 %2683, %v1011_v54   ;;  %1048 = vperm.xlu1 %2684, %v1010_v0   ;;  %v2779_v14 = vld [vmem:[%s3577_s0 + $0xc8] ss:$16 sps:$4 sm:$0xff]   ;;  %v2785_v15 = vld [vmem:[%s3577_s0 + $0xe4] ss:$16 sps:$4 sm:$0xff]   ;;  %v2788_v16 = vld [vmem:[%s3577_s0 + $0xec] ss:$16 sps:$4 sm:$0xff]  }
  0x1b   :  { %v1019_v17 = vld [vmem:[%s3578_s4 + $0x70] sm:$0xff]  ;;  %v2761_v18 = vld [vmem:[%s3576_s3 + $0x20] sm:$0xff]   ;;  %v1016_v19 = vld [vmem:[%s3578_s4 + $0x58] sm:$0xff] }
  0x1c   :  { %358 = vmatpush1.bf16.msra.mxu0 %v2725_v27  ;;  %471 = vmatpush1.bf16.msra.mxu1 %v2726_v28  ;;  %v2783_v20 = vld [vmem:[%s3577_s0 + $0xe0] ss:$16 sps:$4 sm:$0xff]   ;;  %v2786_v22 = vld [vmem:[%s3577_s0 + $0xe8] ss:$16 sps:$4 sm:$0xff]  }
  0x1d   :  { %359 = vmatprep.subr.bf16.mxu0 %v2727_v29  ;;  %472 = vmatprep.subr.bf16.mxu1 %v2729_v30  ;;  %v1277_v21 = vld [vmem:[%s3581_s6] sm:$0xff]  ;;  %v1018_v23 = vld [vmem:[%s3578_s4 + $0x68] sm:$0xff]  ;;  %v1279_v24 = vld [vmem:[%s3581_s6 + $0x10] sm:$0xff] }
  0x1e   :  { %1063 = vperm.xlu0 %2683, %v1013_v61   ;;  %1058 = vperm.xlu1 %2684, %v1012_v8   ;;  %v2768_v25 = vld [vmem:[%s3576_s3 + $0x28] sm:$0xff]   ;;  %v1020_v26 = vld [vmem:[%s3578_s4 + $0x78] sm:$0xff]  ;;  %v1281_v27 = vld [vmem:[%s3581_s6 + $0x20] sm:$0xff] }
  0x1f   :  { %v1278_v28 = vld [vmem:[%s3581_s6 + $0x8] sm:$0xff]  ;;  %v1283_v29 = vld [vmem:[%s3581_s6 + $0x30] sm:$0xff]  ;;  %v2782_v35 = vld [vmem:[%s3576_s3 + $0x38] sm:$0xff]  }
  0x20   :  { %360 = vmatpush1.bf16.msra.mxu0 %v2731_v31  ;;  %473 = vmatpush1.bf16.msra.mxu1 %v2732_v32  ;;  %v2775_v30 = vld [vmem:[%s3576_s3 + $0x30] sm:$0xff]   ;;  %v1280_v31 = vld [vmem:[%s3581_s6 + $0x18] sm:$0xff]  ;;  %v1285_v32 = vld [vmem:[%s3581_s6 + $0x40] sm:$0xff] }
  0x21   :  { %779 = vmatprep.subr.bf16.mxu0 %v2736_v33  ;;  %892 = vmatprep.subr.bf16.mxu1 %v2739_v34  ;;  %v1282_v33 = vld [vmem:[%s3581_s6 + $0x28] sm:$0xff]  ;;  %v1287_v34 = vld [vmem:[%s3581_s6 + $0x50] sm:$0xff]  ;;  %v1292_v46 = vld [vmem:[%s3581_s6 + $0x78] sm:$0xff] }
  0x22   :  { %1073 = vperm.xlu0 %2683, %v1015_v4   ;;  %1068 = vperm.xlu1 %2684, %v1014_v11   ;;  %v1291_v39 = vld [vmem:[%s3581_s6 + $0x70] sm:$0xff]  ;;  %v1760_v48 = vld [vmem:[%s3582_s8 + $0x8] sm:$0xff]  ;;  %v2792_v55 = vld [vmem:[%s3580_s2 + $0x18] sm:$0xff]  }
  0x23   :  { %378 = vmatmul.mubr.bf16.vlgmr.msra.gmra.mrb[0].mxu0 %v2733_v36  ;;  %491 = vmatmul.mubr.bf16.vlgmr.msra.gmra.mrb[0].mxu1 %v2733_v36  ;;  %v1284_v36 = vld [vmem:[%s3581_s6 + $0x38] sm:$0xff]  ;;  %v1761_v44 = vld [vmem:[%s3582_s8 + $0x10] sm:$0xff]  ;;  %v2197_v61 = vld [vmem:[%s3583_s9 + $0x20] sm:$0xff] }
  0x24   :  { %780 = vmatpush1.bf16.msra.mxu0 %v2734_v37  ;;  %893 = vmatpush1.bf16.msra.mxu1 %v2737_v38  ;;  %v1289_v37 = vld [vmem:[%s3581_s6 + $0x60] sm:$0xff]  ;;  %v1286_v38 = vld [vmem:[%s3581_s6 + $0x48] sm:$0xff]  ;;  %v1765_v54 = vld [vmem:[%s3582_s8 + $0x30] sm:$0xff] }
  0x25   :  { %387 = vmatprep.mubr.bf16.mxu0 %v2829_v1  ;;  %500 = vmatprep.mubr.bf16.mxu1 %v2829_v1  ;;  %v1769_v0 = vld [vmem:[%s3582_s8 + $0x50] sm:$0xff]  ;;  %v1770_v4 = vld [vmem:[%s3582_s8 + $0x58] sm:$0xff]  ;;  %v2201_v8 = vld [vmem:[%s3583_s9 + $0x40] sm:$0xff] }
  0x26   :  { %781 = vmatprep.subr.bf16.mxu0 %v2743_v40  ;;  %894 = vmatprep.subr.bf16.mxu1 %v2746_v41  ;;  %v2789_v40 = vld [vmem:[%s3580_s2] sm:$0xff]   ;;  %v1288_v41 = vld [vmem:[%s3581_s6 + $0x58] sm:$0xff]  ;;  %v1773_v11 = vld [vmem:[%s3582_s8 + $0x70] sm:$0xff] }
  0x27   :  { %1083 = vperm.xlu0 %2683, %v1017_v9   ;;  %1078 = vperm.xlu1 %2684, %v1016_v19   ;;  %v1772_v9 = vld [vmem:[%s3582_s8 + $0x68] sm:$0xff] }
  0x28   :  { %782 = vmatpush1.bf16.msra.mxu0 %v2741_v42  ;;  %895 = vmatpush1.bf16.msra.mxu1 %v2744_v43  ;;  %v1759_v42 = vld [vmem:[%s3582_s8] sm:$0xff]  ;;  %v1290_v43 = vld [vmem:[%s3581_s6 + $0x68] sm:$0xff] }
  0x29   :  { %783 = vmatprep.subr.bf16.mxu0 %v2750_v45  ;;  %896 = vmatprep.subr.bf16.mxu1 %v2753_v47  ;;  %v2790_v45 = vld [vmem:[%s3580_s2 + $0x8] sm:$0xff]   ;;  %v2193_v47 = vld [vmem:[%s3583_s9] sm:$0xff] }
  0x2a   :  { %v2206_v19 = vld [vmem:[%s3583_s9 + $0x68] sm:$0xff] }
  0x2b   :  { %388 = vmatmul.mubr.bf16.gmra.mrb[4].mxu0 %v2740_v49  ;;  %501 = vmatmul.mubr.bf16.gmra.mrb[4].mxu1 %v2740_v49  ;;  %v1763_v49 = vld [vmem:[%s3582_s8 + $0x20] sm:$0xff] }
  0x2c   :  { %397 = vmatprep.mubr.bf16.mxu0 %v2829_v1  ;;  %510 = vmatprep.mubr.bf16.mxu1 %v2829_v1 }
  0x2d   :  { %784 = vmatpush1.bf16.msra.mxu0 %v2748_v50  ;;  %897 = vmatpush1.bf16.msra.mxu1 %v2751_v51  ;;  %v2791_v50 = vld [vmem:[%s3580_s2 + $0x10] sm:$0xff]   ;;  %v1762_v51 = vld [vmem:[%s3582_s8 + $0x18] sm:$0xff] }
  0x2e   :  { %785 = vmatprep.subr.bf16.mxu0 %v2757_v52  ;;  %898 = vmatprep.subr.bf16.mxu1 %v2760_v53  ;;  %v1764_v52 = vld [vmem:[%s3582_s8 + $0x28] sm:$0xff] }
  0x2f   :  { %1093 = vperm.xlu0 %2683, %v1019_v17   ;;  %1088 = vperm.xlu1 %2684, %v1018_v23   ;;  %v2194_v53 = vld [vmem:[%s3583_s9 + $0x8] sm:$0xff]  ;;  %v2205_v17 = vld [vmem:[%s3583_s9 + $0x60] sm:$0xff] }
  0x31   :  { %786 = vmatpush1.bf16.msra.mxu0 %v2755_v56  ;;  %899 = vmatpush1.bf16.msra.mxu1 %v2758_v57  ;;  %v2195_v56 = vld [vmem:[%s3583_s9 + $0x10] sm:$0xff]  ;;  %v1766_v57 = vld [vmem:[%s3582_s8 + $0x38] sm:$0xff] }
  0x32   :  { %787 = vmatprep.subr.bf16.mxu0 %v2764_v58  ;;  %900 = vmatprep.subr.bf16.mxu1 %v2767_v59  ;;  %v2196_v58 = vld [vmem:[%s3583_s9 + $0x18] sm:$0xff]  ;;  %v1767_v59 = vld [vmem:[%s3582_s8 + $0x40] sm:$0xff] }
  0x33   :  { %398 = vmatmul.mubr.bf16.gmra.mrb[8].mxu0 %v2747_v60  ;;  %511 = vmatmul.mubr.bf16.gmra.mrb[8].mxu1 %v2747_v60  ;;  %v2793_v60 = vld [vmem:[%s3580_s2 + $0x20] sm:$0xff]  }
  0x34   :  { %407 = vmatprep.mubr.bf16.mxu0 %v2829_v1  ;;  %520 = vmatprep.mubr.bf16.mxu1 %v2829_v1 }
  0x35   :  { %788 = vmatpush1.bf16.msra.mxu0 %v2762_v62  ;;  %901 = vmatpush1.bf16.msra.mxu1 %v2765_v63  ;;  %v1768_v62 = vld [vmem:[%s3582_s8 + $0x48] sm:$0xff] }
  0x36   :  { %789 = vmatprep.subr.bf16.mxu0 %v2771_v2  ;;  %902 = vmatprep.subr.bf16.mxu1 %v2774_v3  ;;  %v2198_v63 = vld [vmem:[%s3583_s9 + $0x28] sm:$0xff]  ;;  %v2199_v3 = vld [vmem:[%s3583_s9 + $0x30] sm:$0xff] }
  0x37   :  { %1295 = vperm.xlu0 %2683, %v1277_v21   ;;  %1098 = vperm.xlu1 %2684, %v1020_v26   ;;  %v2794_v2 = vld [vmem:[%s3580_s2 + $0x28] sm:$0xff]  }
  0x39   :  { %790 = vmatpush1.bf16.msra.mxu0 %v2769_v5  ;;  %903 = vmatpush1.bf16.msra.mxu1 %v2772_v6  ;;  %v2200_v5 = vld [vmem:[%s3583_s9 + $0x38] sm:$0xff]  ;;  %v1771_v6 = vld [vmem:[%s3582_s8 + $0x60] sm:$0xff] }
  0x3a   :  { %791 = vmatprep.subr.bf16.mxu0 %v2778_v10  ;;  %904 = vmatprep.subr.bf16.mxu1 %v2781_v12  ;;  %v2202_v10 = vld [vmem:[%s3583_s9 + $0x48] sm:$0xff]  ;;  %v2796_v12 = vld [vmem:[%s3580_s2 + $0x38] sm:$0xff]  }
  0x3b   :  { %408 = vmatmul.mubr.bf16.gmra.mrb[12].mxu0 %v2754_v7  ;;  %521 = vmatmul.mubr.bf16.gmra.mrb[12].mxu1 %v2754_v7  ;;  %v2795_v7 = vld [vmem:[%s3580_s2 + $0x30] sm:$0xff]  }
  0x3c   :  { %417 = vmatprep.mubr.bf16.mxu0 %v2829_v1  ;;  %530 = vmatprep.mubr.bf16.mxu1 %v2829_v1 }
  0x3d   :  { %792 = vmatpush1.bf16.msra.mxu0 %v2776_v13  ;;  %905 = vmatpush1.bf16.msra.mxu1 %v2779_v14  ;;  %v2203_v13 = vld [vmem:[%s3583_s9 + $0x50] sm:$0xff]  ;;  %v1774_v14 = vld [vmem:[%s3582_s8 + $0x78] sm:$0xff] }
  0x3e   :  { %793 = vmatprep.subr.bf16.mxu0 %v2785_v15  ;;  %906 = vmatprep.subr.bf16.mxu1 %v2788_v16  ;;  %v2204_v15 = vld [vmem:[%s3583_s9 + $0x58] sm:$0xff]  ;;  %v2207_v16 = vld [vmem:[%s3583_s9 + $0x70] sm:$0xff] }
  0x3f   :  { %1305 = vperm.xlu0 %2683, %v1279_v24   ;;  %1300 = vperm.xlu1 %2684, %v1278_v28  }
  0x41   :  { %794 = vmatpush1.bf16.msra.mxu0 %v2783_v20  ;;  %907 = vmatpush1.bf16.msra.mxu1 %v2786_v22  ;;  %v2208_v20 = vld [vmem:[%s3583_s9 + $0x78] sm:$0xff] }
  0x43   :  { %418 = vmatmul.mubr.bf16.gmra.mrb[16].mxu0 %v2761_v18  ;;  %531 = vmatmul.mubr.bf16.gmra.mrb[16].mxu1 %v2761_v18  ;;  %v2437_v18 = vld [vmem:[#allocation2] sm:$0x1] }
  0x44   :  { %427 = vmatprep.mubr.bf16.mxu0 %v2829_v1  ;;  %540 = vmatprep.mubr.bf16.mxu1 %v2829_v1 }
  0x45   :  { %1315 = vperm.xlu0 %2683, %v1281_v27   ;;  %1310 = vperm.xlu1 %2684, %v1280_v31  }
  0x49   :  { %1325 = vperm.xlu0 %2683, %v1283_v29   ;;  %1320 = vperm.xlu1 %2684, %v1282_v33  }
  0x4b   :  { %428 = vmatmul.mubr.bf16.gmra.mrb[20].mxu0 %v2768_v25  ;;  %541 = vmatmul.mubr.bf16.gmra.mrb[20].mxu1 %v2768_v25 }
  0x4c   :  { %437 = vmatprep.mubr.bf16.mxu0 %v2829_v1  ;;  %550 = vmatprep.mubr.bf16.mxu1 %v2829_v1 }
  0x4d   :  { %1335 = vperm.xlu0 %2683, %v1285_v32   ;;  %1330 = vperm.xlu1 %2684, %v1284_v36  }
  0x51   :  { %1345 = vperm.xlu0 %2683, %v1287_v34   ;;  %1340 = vperm.xlu1 %2684, %v1286_v38  }
  0x53   :  { %438 = vmatmul.mubr.bf16.gmra.mrb[24].mxu0 %v2775_v30  ;;  %551 = vmatmul.mubr.bf16.gmra.mrb[24].mxu1 %v2775_v30 }
  0x54   :  { %447 = vmatprep.mubr.bf16.mxu0 %v2829_v1  ;;  %560 = vmatprep.mubr.bf16.mxu1 %v2829_v1 }
  0x55   :  { %1355 = vperm.xlu0 %2683, %v1289_v37   ;;  %1350 = vperm.xlu1 %2684, %v1288_v41  }
  0x59   :  { %1365 = vperm.xlu0 %2683, %v1291_v39   ;;  %1360 = vperm.xlu1 %2684, %v1290_v43  }
  0x5b   :  { %448 = vmatmul.mubr.bf16.gmra.mrb[28].mxu0 %v2782_v35  ;;  %561 = vmatmul.mubr.bf16.gmra.mrb[28].mxu1 %v2782_v35 }
  0x5c   :  { %811 = vmatprep.mubr.bf16.mxu0 %v2829_v1  ;;  %924 = vmatprep.mubr.bf16.mxu1 %v2829_v1 }
  0x5d   :  { %1777 = vperm.xlu0 %2683, %v1759_v42   ;;  %1370 = vperm.xlu1 %2684, %v1292_v46  }
  0x61   :  { %1787 = vperm.xlu0 %2683, %v1761_v44   ;;  %1782 = vperm.xlu1 %2684, %v1760_v48  }
  0x63   :  { %812 = vmatmul.mubr.bf16.vlgmr.msra.gmra.mrb[0].mxu0 %v2789_v40  ;;  %925 = vmatmul.mubr.bf16.vlgmr.msra.gmra.mrb[0].mxu1 %v2789_v40 }
  0x64   :  { %821 = vmatprep.mubr.bf16.mxu0 %v2829_v1  ;;  %934 = vmatprep.mubr.bf16.mxu1 %v2829_v1 }
  0x65   :  { %2211 = vperm.xlu0 %2683, %v2193_v47   ;;  %1792 = vperm.xlu1 %2684, %v1762_v51  }
  0x69   :  { %1797 = vperm.xlu0 %2683, %v1763_v49   ;;  %2216 = vperm.xlu1 %2684, %v2194_v53  }
  0x6b   :  { %822 = vmatmul.mubr.bf16.gmra.mrb[4].mxu0 %v2790_v45  ;;  %935 = vmatmul.mubr.bf16.gmra.mrb[4].mxu1 %v2790_v45 }
  0x6c   :  { %831 = vmatprep.mubr.bf16.mxu0 %v2829_v1  ;;  %944 = vmatprep.mubr.bf16.mxu1 %v2829_v1 }
  0x6d   :  { %1802 = vperm.xlu0 %2683, %v1764_v52   ;;  %2221 = vperm.xlu1 %2684, %v2195_v56  }
  0x71   :  { %1807 = vperm.xlu0 %2683, %v1765_v54   ;;  %2226 = vperm.xlu1 %2684, %v2196_v58  }
  0x73   :  { %832 = vmatmul.mubr.bf16.gmra.mrb[8].mxu0 %v2791_v50  ;;  %945 = vmatmul.mubr.bf16.gmra.mrb[8].mxu1 %v2791_v50 }
  0x74   :  { %841 = vmatprep.mubr.bf16.mxu0 %v2829_v1  ;;  %954 = vmatprep.mubr.bf16.mxu1 %v2829_v1 }
  0x75   :  { %1812 = vperm.xlu0 %2683, %v1766_v57   ;;  %2231 = vperm.xlu1 %2684, %v2197_v61  }
  0x79   :  { %1817 = vperm.xlu0 %2683, %v1767_v59   ;;  %2236 = vperm.xlu1 %2684, %v2198_v63  }
  0x7b   :  { %842 = vmatmul.mubr.bf16.gmra.mrb[12].mxu0 %v2792_v55  ;;  %955 = vmatmul.mubr.bf16.gmra.mrb[12].mxu1 %v2792_v55 }
  0x7c   :  { %851 = vmatprep.mubr.bf16.mxu0 %v2829_v1  ;;  %964 = vmatprep.mubr.bf16.mxu1 %v2829_v1 }
  0x7d   :  { %1822 = vperm.xlu0 %2683, %v1768_v62   ;;  %2241 = vperm.xlu1 %2684, %v2199_v3  }
  0x81   :  { %1827 = vperm.xlu0 %2683, %v1769_v0   ;;  %2246 = vperm.xlu1 %2684, %v2200_v5  }
  0x83   :  { %852 = vmatmul.mubr.bf16.gmra.mrb[16].mxu0 %v2793_v60  ;;  %965 = vmatmul.mubr.bf16.gmra.mrb[16].mxu1 %v2793_v60 }
  0x84   :  { %861 = vmatprep.mubr.bf16.mxu0 %v2829_v1  ;;  %974 = vmatprep.mubr.bf16.mxu1 %v2829_v1 }
  0x85   :  { %1832 = vperm.xlu0 %2683, %v1770_v4   ;;  %2251 = vperm.xlu1 %2684, %v2201_v8  }
  0x89   :  { %1837 = vperm.xlu0 %2683, %v1771_v6   ;;  %2256 = vperm.xlu1 %2684, %v2202_v10  }
  0x8b   :  { %862 = vmatmul.mubr.bf16.gmra.mrb[20].mxu0 %v2794_v2  ;;  %975 = vmatmul.mubr.bf16.gmra.mrb[20].mxu1 %v2794_v2 }
  0x8c   :  { %871 = vmatprep.mubr.bf16.mxu0 %v2829_v1  ;;  %984 = vmatprep.mubr.bf16.mxu1 %v2829_v1 }
  0x8d   :  { %1842 = vperm.xlu0 %2683, %v1772_v9   ;;  %2261 = vperm.xlu1 %2684, %v2203_v13   ;;  %v1024_v21 = vpop.permute.xlu0 %1023  ;;  %v1034_v23 = vpop.permute.xlu1 %1033 }
  0x91   :  { %1847 = vperm.xlu0 %2683, %v1773_v11   ;;  %2266 = vperm.xlu1 %2684, %v2204_v15   ;;  %v1029_v22 = vpop.permute.xlu0 %1028 }
  0x93   :  { %872 = vmatmul.mubr.bf16.gmra.mrb[24].mxu0 %v2795_v7  ;;  %985 = vmatmul.mubr.bf16.gmra.mrb[24].mxu1 %v2795_v7 }
  0x94   :  { %881 = vmatprep.mubr.bf16.mxu0 %v2829_v1  ;;  %994 = vmatprep.mubr.bf16.mxu1 %v2829_v1 }
  0x95   :  { %1852 = vperm.xlu0 %2683, %v1774_v14   ;;  %2271 = vperm.xlu1 %2684, %v2205_v17   ;;  %v1039_v48 = vpop.permute.xlu1 %1038  ;;  %v1044_v14 = vpop.permute.xlu0 %1043 }
  0x99   :  { %2281 = vperm.xlu0 %2683, %v2207_v16   ;;  %2276 = vperm.xlu1 %2684, %v2206_v19   ;;  %v1049_v15 = vpop.permute.xlu1 %1048 }
  0x9b   :  { %882 = vmatmul.mubr.bf16.gmra.mrb[28].mxu0 %v2796_v12  ;;  %995 = vmatmul.mubr.bf16.gmra.mrb[28].mxu1 %v2796_v12 }
  0x9c   :  { %1453 = vmatprep.mubr.bf16.mxu0 %v2829_v1  ;;  %1566 = vmatprep.mubr.bf16.mxu1 %v2829_v1 }
  0x9d   :  { %2440 = vperm.xlu0 %2683, %v2437_v18   ;;  %2286 = vperm.xlu1 %2684, %v2208_v20  }
 0x136   :  { %v813_v24 = vpop.f32.mrb[0].mxu0  ;;  %v926_v25 = vpop.f32.mrb[0].mxu1 }
 0x137   :  { %v1101_v26 = vadd.f32 %v1024_v21, %v813_v24  ;;  %v1103_v27 = vadd.f32 %v1024_v21, %v926_v25  ;;  %v815_v28 = vpop.f32.mrb[1].mxu0  ;;  %v928_v29 = vpop.f32.mrb[1].mxu1 }
 0x138   :  { %v1102_v30 = vadd.f32 %v1024_v21, %v815_v28  ;;  %v1104_v31 = vadd.f32 %v1024_v21, %v928_v29  ;;  %v817_v32 = vpop.f32.mrb[2].mxu0  ;;  %v930_v33 = vpop.f32.mrb[2].mxu1 }
 0x139   :  { %v1105_v34 = vadd.f32 %v1029_v22, %v817_v32  ;;  %v1107_v35 = vadd.f32 %v1029_v22, %v930_v33  ;;  %v819_v36 = vpop.f32.mrb[3].mxu0  ;;  %v932_v37 = vpop.f32.mrb[3].mxu1  ;;  %v1165_v40 = vmax.f32 %v1101_v26, 0.0  ;;  %v1167_v41 = vmax.f32 %v1103_v27, 0.0 }
 0x13a   :  { %v1106_v38 = vadd.f32 %v1029_v22, %v819_v36  ;;  %v1108_v39 = vadd.f32 %v1029_v22, %v932_v37  ;;  %v1166_v44 = vmax.f32 %v1102_v30, 0.0  ;;  %v1168_v45 = vmax.f32 %v1104_v31, 0.0 }
 0x13b   :  { %v1169_v42 = vmax.f32 %v1105_v34, 0.0  ;;  %v1171_v43 = vmax.f32 %v1107_v35, 0.0 }
 0x13c   :  { %v1170_v46 = vmax.f32 %v1106_v38, 0.0  ;;  %v1172_v47 = vmax.f32 %v1108_v39, 0.0 }
 0x13d   :  { %v1229_v49 = vpack.c.bf16 %v1169_v42, %v1165_v40  ;;  %v1231_v50 = vpack.c.bf16 %v1171_v43, %v1167_v41 }
 0x13e   :  { %v1230_v51 = vpack.c.bf16 %v1170_v46, %v1166_v44  ;;  %v1232_v52 = vpack.c.bf16 %v1172_v47, %v1168_v45  ;;  %v823_v53 = vpop.f32.mrb[4].mxu0  ;;  %v936_v54 = vpop.f32.mrb[4].mxu1 }
 0x13f   :  { %v1109_v55 = vadd.f32 %v1034_v23, %v823_v53  ;;  %v1111_v56 = vadd.f32 %v1034_v23, %v936_v54  ;;  %v825_v57 = vpop.f32.mrb[5].mxu0  ;;  %v938_v58 = vpop.f32.mrb[5].mxu1 }
 0x140   :  { %v1110_v59 = vadd.f32 %v1034_v23, %v825_v57  ;;  %v1112_v60 = vadd.f32 %v1034_v23, %v938_v58  ;;  %v827_v61 = vpop.f32.mrb[6].mxu0  ;;  %v940_v62 = vpop.f32.mrb[6].mxu1  ;;  %1421 = vmatprep.subr.bf16.mxu0 %v1230_v51  ;;  %1534 = vmatprep.subr.bf16.mxu1 %v1232_v52 }
 0x141   :  { %v1113_v63 = vadd.f32 %v1039_v48, %v827_v61  ;;  %v1115_v0 = vadd.f32 %v1039_v48, %v940_v62  ;;  %v829_v2 = vpop.f32.mrb[7].mxu0  ;;  %v942_v3 = vpop.f32.mrb[7].mxu1  ;;  %1422 = vmatpush1.bf16.msra.mxu0 %v1229_v49  ;;  %1535 = vmatpush1.bf16.msra.mxu1 %v1231_v50  ;;  %v1173_v6 = vmax.f32 %v1109_v55, 0.0  ;;  %v1175_v7 = vmax.f32 %v1111_v56, 0.0 }
 0x142   :  { %v1114_v4 = vadd.f32 %v1039_v48, %v829_v2  ;;  %v1116_v5 = vadd.f32 %v1039_v48, %v942_v3  ;;  %v1174_v10 = vmax.f32 %v1110_v59, 0.0  ;;  %v1176_v11 = vmax.f32 %v1112_v60, 0.0  ;;  %v1054_v44 = vpop.permute.xlu0 %1053  ;;  %v1059_v45 = vpop.permute.xlu1 %1058 }
 0x143   :  { %v1177_v8 = vmax.f32 %v1113_v63, 0.0  ;;  %v1179_v9 = vmax.f32 %v1115_v0, 0.0 }
 0x144   :  { %v1178_v12 = vmax.f32 %v1114_v4, 0.0  ;;  %v1180_v13 = vmax.f32 %v1116_v5, 0.0 }
 0x145   :  { %v1233_v16 = vpack.c.bf16 %v1177_v8, %v1173_v6  ;;  %v1235_v17 = vpack.c.bf16 %v1179_v9, %v1175_v7 }
 0x146   :  { %v1234_v18 = vpack.c.bf16 %v1178_v12, %v1174_v10  ;;  %v1236_v19 = vpack.c.bf16 %v1180_v13, %v1176_v11  ;;  %v833_v20 = vpop.f32.mrb[8].mxu0  ;;  %v946_v21 = vpop.f32.mrb[8].mxu1 }
 0x147   :  { %v1117_v22 = vadd.f32 %v1044_v14, %v833_v20  ;;  %v1119_v23 = vadd.f32 %v1044_v14, %v946_v21  ;;  %v835_v24 = vpop.f32.mrb[9].mxu0  ;;  %v948_v25 = vpop.f32.mrb[9].mxu1 }
 0x148   :  { %v1118_v26 = vadd.f32 %v1044_v14, %v835_v24  ;;  %v1120_v27 = vadd.f32 %v1044_v14, %v948_v25  ;;  %v837_v28 = vpop.f32.mrb[10].mxu0  ;;  %v950_v29 = vpop.f32.mrb[10].mxu1  ;;  %1423 = vmatprep.subr.bf16.mxu0 %v1234_v18  ;;  %1536 = vmatprep.subr.bf16.mxu1 %v1236_v19 }
 0x149   :  { %v1121_v30 = vadd.f32 %v1049_v15, %v837_v28  ;;  %v1123_v31 = vadd.f32 %v1049_v15, %v950_v29  ;;  %v839_v32 = vpop.f32.mrb[11].mxu0  ;;  %v952_v33 = vpop.f32.mrb[11].mxu1  ;;  %1424 = vmatpush1.bf16.msra.mxu0 %v1233_v16  ;;  %1537 = vmatpush1.bf16.msra.mxu1 %v1235_v17  ;;  %v1181_v36 = vmax.f32 %v1117_v22, 0.0  ;;  %v1183_v37 = vmax.f32 %v1119_v23, 0.0 }
 0x14a   :  { %v1122_v34 = vadd.f32 %v1049_v15, %v839_v32  ;;  %v1124_v35 = vadd.f32 %v1049_v15, %v952_v33  ;;  %v1182_v40 = vmax.f32 %v1118_v26, 0.0  ;;  %v1184_v41 = vmax.f32 %v1120_v27, 0.0  ;;  %v1064_v11 = vpop.permute.xlu0 %1063  ;;  %v1069_v12 = vpop.permute.xlu1 %1068 }
 0x14b   :  { %v1185_v38 = vmax.f32 %v1121_v30, 0.0  ;;  %v1187_v39 = vmax.f32 %v1123_v31, 0.0 }
 0x14c   :  { %v1186_v42 = vmax.f32 %v1122_v34, 0.0  ;;  %v1188_v43 = vmax.f32 %v1124_v35, 0.0 }
 0x14d   :  { %v1237_v46 = vpack.c.bf16 %v1185_v38, %v1181_v36  ;;  %v1239_v47 = vpack.c.bf16 %v1187_v39, %v1183_v37 }
 0x14e   :  { %v1238_v48 = vpack.c.bf16 %v1186_v42, %v1182_v40  ;;  %v1240_v49 = vpack.c.bf16 %v1188_v43, %v1184_v41  ;;  %v843_v50 = vpop.f32.mrb[12].mxu0  ;;  %v956_v51 = vpop.f32.mrb[12].mxu1 }
 0x14f   :  { %v1125_v52 = vadd.f32 %v1054_v44, %v843_v50  ;;  %v1127_v53 = vadd.f32 %v1054_v44, %v956_v51  ;;  %v845_v54 = vpop.f32.mrb[13].mxu0  ;;  %v958_v55 = vpop.f32.mrb[13].mxu1 }
 0x150   :  { %v1126_v56 = vadd.f32 %v1054_v44, %v845_v54  ;;  %v1128_v57 = vadd.f32 %v1054_v44, %v958_v55  ;;  %v847_v58 = vpop.f32.mrb[14].mxu0  ;;  %v960_v59 = vpop.f32.mrb[14].mxu1  ;;  %1425 = vmatprep.subr.bf16.mxu0 %v1238_v48  ;;  %1538 = vmatprep.subr.bf16.mxu1 %v1240_v49 }
 0x151   :  { %v1129_v60 = vadd.f32 %v1059_v45, %v847_v58  ;;  %v1131_v61 = vadd.f32 %v1059_v45, %v960_v59  ;;  %v849_v62 = vpop.f32.mrb[15].mxu0  ;;  %v962_v63 = vpop.f32.mrb[15].mxu1  ;;  %1426 = vmatpush1.bf16.msra.mxu0 %v1237_v46  ;;  %1539 = vmatpush1.bf16.msra.mxu1 %v1239_v47  ;;  %v1189_v3 = vmax.f32 %v1125_v52, 0.0  ;;  %v1191_v4 = vmax.f32 %v1127_v53, 0.0 }
 0x152   :  { %v1130_v0 = vadd.f32 %v1059_v45, %v849_v62  ;;  %v1132_v2 = vadd.f32 %v1059_v45, %v962_v63  ;;  %v1190_v7 = vmax.f32 %v1126_v56, 0.0  ;;  %v1192_v8 = vmax.f32 %v1128_v57, 0.0  ;;  %v1074_v41 = vpop.permute.xlu0 %1073  ;;  %v1079_v42 = vpop.permute.xlu1 %1078 }
 0x153   :  { %v1193_v5 = vmax.f32 %v1129_v60, 0.0  ;;  %v1195_v6 = vmax.f32 %v1131_v61, 0.0 }
 0x154   :  { %v1194_v9 = vmax.f32 %v1130_v0, 0.0  ;;  %v1196_v10 = vmax.f32 %v1132_v2, 0.0 }
 0x155   :  { %v1241_v13 = vpack.c.bf16 %v1193_v5, %v1189_v3  ;;  %v1243_v14 = vpack.c.bf16 %v1195_v6, %v1191_v4 }
 0x156   :  { %v1242_v15 = vpack.c.bf16 %v1194_v9, %v1190_v7  ;;  %v1244_v16 = vpack.c.bf16 %v1196_v10, %v1192_v8  ;;  %v853_v17 = vpop.f32.mrb[16].mxu0  ;;  %v966_v18 = vpop.f32.mrb[16].mxu1 }
 0x157   :  { %v1133_v19 = vadd.f32 %v1064_v11, %v853_v17  ;;  %v1135_v20 = vadd.f32 %v1064_v11, %v966_v18  ;;  %v855_v21 = vpop.f32.mrb[17].mxu0  ;;  %v968_v22 = vpop.f32.mrb[17].mxu1 }
 0x158   :  { %v1134_v23 = vadd.f32 %v1064_v11, %v855_v21  ;;  %v1136_v24 = vadd.f32 %v1064_v11, %v968_v22  ;;  %v857_v25 = vpop.f32.mrb[18].mxu0  ;;  %v970_v26 = vpop.f32.mrb[18].mxu1  ;;  %1427 = vmatprep.subr.bf16.mxu0 %v1242_v15  ;;  %1540 = vmatprep.subr.bf16.mxu1 %v1244_v16 }
 0x159   :  { %v1137_v27 = vadd.f32 %v1069_v12, %v857_v25  ;;  %v1139_v28 = vadd.f32 %v1069_v12, %v970_v26  ;;  %v859_v29 = vpop.f32.mrb[19].mxu0  ;;  %v972_v30 = vpop.f32.mrb[19].mxu1  ;;  %1428 = vmatpush1.bf16.msra.mxu0 %v1241_v13  ;;  %1541 = vmatpush1.bf16.msra.mxu1 %v1243_v14  ;;  %v1197_v33 = vmax.f32 %v1133_v19, 0.0  ;;  %v1199_v34 = vmax.f32 %v1135_v20, 0.0 }
 0x15a   :  { %v1138_v31 = vadd.f32 %v1069_v12, %v859_v29  ;;  %v1140_v32 = vadd.f32 %v1069_v12, %v972_v30  ;;  %v1198_v37 = vmax.f32 %v1134_v23, 0.0  ;;  %v1200_v38 = vmax.f32 %v1136_v24, 0.0  ;;  %v1084_v8 = vpop.permute.xlu0 %1083  ;;  %v1089_v9 = vpop.permute.xlu1 %1088 }
 0x15b   :  { %v1201_v35 = vmax.f32 %v1137_v27, 0.0  ;;  %v1203_v36 = vmax.f32 %v1139_v28, 0.0 }
 0x15c   :  { %v1202_v39 = vmax.f32 %v1138_v31, 0.0  ;;  %v1204_v40 = vmax.f32 %v1140_v32, 0.0 }
 0x15d   :  { %v1245_v43 = vpack.c.bf16 %v1201_v35, %v1197_v33  ;;  %v1247_v44 = vpack.c.bf16 %v1203_v36, %v1199_v34 }
 0x15e   :  { %v1246_v45 = vpack.c.bf16 %v1202_v39, %v1198_v37  ;;  %v1248_v46 = vpack.c.bf16 %v1204_v40, %v1200_v38  ;;  %v863_v47 = vpop.f32.mrb[20].mxu0  ;;  %v976_v48 = vpop.f32.mrb[20].mxu1 }
 0x15f   :  { %v1141_v49 = vadd.f32 %v1074_v41, %v863_v47  ;;  %v1143_v50 = vadd.f32 %v1074_v41, %v976_v48  ;;  %v865_v51 = vpop.f32.mrb[21].mxu0  ;;  %v978_v52 = vpop.f32.mrb[21].mxu1 }
 0x160   :  { %v1142_v53 = vadd.f32 %v1074_v41, %v865_v51  ;;  %v1144_v54 = vadd.f32 %v1074_v41, %v978_v52  ;;  %v867_v55 = vpop.f32.mrb[22].mxu0  ;;  %v980_v56 = vpop.f32.mrb[22].mxu1  ;;  %1429 = vmatprep.subr.bf16.mxu0 %v1246_v45  ;;  %1542 = vmatprep.subr.bf16.mxu1 %v1248_v46 }
 0x161   :  { %v1145_v57 = vadd.f32 %v1079_v42, %v867_v55  ;;  %v1147_v58 = vadd.f32 %v1079_v42, %v980_v56  ;;  %v869_v59 = vpop.f32.mrb[23].mxu0  ;;  %v982_v60 = vpop.f32.mrb[23].mxu1  ;;  %1430 = vmatpush1.bf16.msra.mxu0 %v1245_v43  ;;  %1543 = vmatpush1.bf16.msra.mxu1 %v1247_v44  ;;  %v1205_v63 = vmax.f32 %v1141_v49, 0.0  ;;  %v1207_v0 = vmax.f32 %v1143_v50, 0.0 }
 0x162   :  { %v1146_v61 = vadd.f32 %v1079_v42, %v869_v59  ;;  %v1148_v62 = vadd.f32 %v1079_v42, %v982_v60  ;;  %v1206_v4 = vmax.f32 %v1142_v53, 0.0  ;;  %v1208_v5 = vmax.f32 %v1144_v54, 0.0  ;;  %v1094_v38 = vpop.permute.xlu0 %1093  ;;  %v1099_v39 = vpop.permute.xlu1 %1098 }
 0x163   :  { %v1209_v2 = vmax.f32 %v1145_v57, 0.0  ;;  %v1211_v3 = vmax.f32 %v1147_v58, 0.0 }
 0x164   :  { %v1210_v6 = vmax.f32 %v1146_v61, 0.0  ;;  %v1212_v7 = vmax.f32 %v1148_v62, 0.0 }
 0x165   :  { %v1249_v10 = vpack.c.bf16 %v1209_v2, %v1205_v63  ;;  %v1251_v11 = vpack.c.bf16 %v1211_v3, %v1207_v0 }
 0x166   :  { %v1250_v12 = vpack.c.bf16 %v1210_v6, %v1206_v4  ;;  %v1252_v13 = vpack.c.bf16 %v1212_v7, %v1208_v5  ;;  %v873_v14 = vpop.f32.mrb[24].mxu0  ;;  %v986_v15 = vpop.f32.mrb[24].mxu1 }
 0x167   :  { %v1149_v16 = vadd.f32 %v1084_v8, %v873_v14  ;;  %v1151_v17 = vadd.f32 %v1084_v8, %v986_v15  ;;  %v875_v18 = vpop.f32.mrb[25].mxu0  ;;  %v988_v19 = vpop.f32.mrb[25].mxu1  ;;  %v2802_v14 = vld [vmem:[%s3584_s5 + $0x28] sm:$0xff]   ;;  %v2803_v15 = vld [vmem:[%s3584_s5 + $0x30] sm:$0xff]  }
 0x168   :  { %v1150_v20 = vadd.f32 %v1084_v8, %v875_v18  ;;  %v1152_v21 = vadd.f32 %v1084_v8, %v988_v19  ;;  %v877_v22 = vpop.f32.mrb[26].mxu0  ;;  %v990_v23 = vpop.f32.mrb[26].mxu1  ;;  %1431 = vmatprep.subr.bf16.mxu0 %v1250_v12  ;;  %1544 = vmatprep.subr.bf16.mxu1 %v1252_v13  ;;  %v2800_v12 = vld [vmem:[%s3584_s5 + $0x18] sm:$0xff]   ;;  %v2801_v13 = vld [vmem:[%s3584_s5 + $0x20] sm:$0xff]  }
 0x169   :  { %v1153_v24 = vadd.f32 %v1089_v9, %v877_v22  ;;  %v1155_v25 = vadd.f32 %v1089_v9, %v990_v23  ;;  %v879_v26 = vpop.f32.mrb[27].mxu0  ;;  %v992_v27 = vpop.f32.mrb[27].mxu1  ;;  %1432 = vmatpush1.bf16.msra.mxu0 %v1249_v10  ;;  %1545 = vmatpush1.bf16.msra.mxu1 %v1251_v11  ;;  %v1213_v30 = vmax.f32 %v1149_v16, 0.0  ;;  %v1215_v31 = vmax.f32 %v1151_v17, 0.0  ;;  %v2798_v10 = vld [vmem:[%s3584_s5 + $0x8] sm:$0xff]   ;;  %v2799_v11 = vld [vmem:[%s3584_s5 + $0x10] sm:$0xff]  }
 0x16a   :  { %v1154_v28 = vadd.f32 %v1089_v9, %v879_v26  ;;  %v1156_v29 = vadd.f32 %v1089_v9, %v992_v27  ;;  %v1214_v34 = vmax.f32 %v1150_v20, 0.0  ;;  %v1216_v35 = vmax.f32 %v1152_v21, 0.0  ;;  %v2797_v9 = vld [vmem:[%s3584_s5] sm:$0xff]   ;;  %v2804_v16 = vld [vmem:[%s3584_s5 + $0x38] sm:$0xff]   ;;  %v1296_v17 = vpop.permute.xlu0 %1295  ;;  %v1301_v18 = vpop.permute.xlu1 %1300 }
 0x16b   :  { %v1217_v32 = vmax.f32 %v1153_v24, 0.0  ;;  %v1219_v33 = vmax.f32 %v1155_v25, 0.0 }
 0x16c   :  { %v1218_v36 = vmax.f32 %v1154_v28, 0.0  ;;  %v1220_v37 = vmax.f32 %v1156_v29, 0.0 }
 0x16d   :  { %v1253_v40 = vpack.c.bf16 %v1217_v32, %v1213_v30  ;;  %v1255_v41 = vpack.c.bf16 %v1219_v33, %v1215_v31 }
 0x16e   :  { %v1254_v42 = vpack.c.bf16 %v1218_v36, %v1214_v34  ;;  %v1256_v43 = vpack.c.bf16 %v1220_v37, %v1216_v35  ;;  %v883_v44 = vpop.f32.mrb[28].mxu0  ;;  %v996_v45 = vpop.f32.mrb[28].mxu1 }
 0x16f   :  { %v1157_v46 = vadd.f32 %v1094_v38, %v883_v44  ;;  %v1159_v47 = vadd.f32 %v1094_v38, %v996_v45  ;;  %v885_v48 = vpop.f32.mrb[29].mxu0  ;;  %v998_v49 = vpop.f32.mrb[29].mxu1 }
 0x170   :  { %v1158_v50 = vadd.f32 %v1094_v38, %v885_v48  ;;  %v1160_v51 = vadd.f32 %v1094_v38, %v998_v49  ;;  %v887_v52 = vpop.f32.mrb[30].mxu0  ;;  %v1000_v53 = vpop.f32.mrb[30].mxu1  ;;  %1433 = vmatprep.subr.bf16.mxu0 %v1254_v42  ;;  %1546 = vmatprep.subr.bf16.mxu1 %v1256_v43 }
 0x171   :  { %v1161_v54 = vadd.f32 %v1099_v39, %v887_v52  ;;  %v1163_v55 = vadd.f32 %v1099_v39, %v1000_v53  ;;  %v889_v56 = vpop.f32.mrb[31].mxu0  ;;  %v1002_v57 = vpop.f32.mrb[31].mxu1  ;;  %1434 = vmatpush1.bf16.msra.mxu0 %v1253_v40  ;;  %1547 = vmatpush1.bf16.msra.mxu1 %v1255_v41  ;;  %v1221_v60 = vmax.f32 %v1157_v46, 0.0  ;;  %v1223_v61 = vmax.f32 %v1159_v47, 0.0 }
 0x172   :  { %v1162_v58 = vadd.f32 %v1099_v39, %v889_v56  ;;  %v1164_v59 = vadd.f32 %v1099_v39, %v1002_v57  ;;  %v1222_v0 = vmax.f32 %v1158_v50, 0.0  ;;  %v1224_v2 = vmax.f32 %v1160_v51, 0.0  ;;  %v1306_v43 = vpop.permute.xlu0 %1305  ;;  %v1311_v44 = vpop.permute.xlu1 %1310 }
 0x173   :  { %v1225_v62 = vmax.f32 %v1161_v54, 0.0  ;;  %v1227_v63 = vmax.f32 %v1163_v55, 0.0 }
 0x174   :  { %v1226_v3 = vmax.f32 %v1162_v58, 0.0  ;;  %v1228_v4 = vmax.f32 %v1164_v59, 0.0 }
 0x175   :  { %v1257_v5 = vpack.c.bf16 %v1225_v62, %v1221_v60  ;;  %v1259_v6 = vpack.c.bf16 %v1227_v63, %v1223_v61 }
 0x176   :  { %v1258_v7 = vpack.c.bf16 %v1226_v3, %v1222_v0  ;;  %v1260_v8 = vpack.c.bf16 %v1228_v4, %v1224_v2 }
 0x178   :  { %1435 = vmatprep.subr.bf16.mxu0 %v1258_v7  ;;  %1548 = vmatprep.subr.bf16.mxu1 %v1260_v8 }
 0x179   :  { %1436 = vmatpush1.bf16.msra.mxu0 %v1257_v5  ;;  %1549 = vmatpush1.bf16.msra.mxu1 %v1259_v6 }
 0x17c   :  { %1454 = vmatmul.mubr.bf16.vlgmr.msra.gmra.mrb[32].mxu0 %v2797_v9  ;;  %1567 = vmatmul.mubr.bf16.vlgmr.msra.gmra.mrb[32].mxu1 %v2797_v9 }
 0x17d   :  { %1463 = vmatprep.mubr.bf16.mxu0 %v2829_v1  ;;  %1576 = vmatprep.mubr.bf16.mxu1 %v2829_v1 }
 0x184   :  { %1464 = vmatmul.mubr.bf16.gmra.mrb[36].mxu0 %v2798_v10  ;;  %1577 = vmatmul.mubr.bf16.gmra.mrb[36].mxu1 %v2798_v10  ;;  %v1316_v10 = vpop.permute.xlu0 %1315 }
 0x185   :  { %1473 = vmatprep.mubr.bf16.mxu0 %v2829_v1  ;;  %1586 = vmatprep.mubr.bf16.mxu1 %v2829_v1 }
 0x18c   :  { %1474 = vmatmul.mubr.bf16.gmra.mrb[40].mxu0 %v2799_v11  ;;  %1587 = vmatmul.mubr.bf16.gmra.mrb[40].mxu1 %v2799_v11  ;;  %v1321_v11 = vpop.permute.xlu1 %1320 }
 0x18d   :  { %1483 = vmatprep.mubr.bf16.mxu0 %v2829_v1  ;;  %1596 = vmatprep.mubr.bf16.mxu1 %v2829_v1 }
 0x194   :  { %1484 = vmatmul.mubr.bf16.gmra.mrb[44].mxu0 %v2800_v12  ;;  %1597 = vmatmul.mubr.bf16.gmra.mrb[44].mxu1 %v2800_v12 }
 0x195   :  { %1493 = vmatprep.mubr.bf16.mxu0 %v2829_v1  ;;  %1606 = vmatprep.mubr.bf16.mxu1 %v2829_v1 }
 0x19c   :  { %1494 = vmatmul.mubr.bf16.gmra.mrb[48].mxu0 %v2801_v13  ;;  %1607 = vmatmul.mubr.bf16.gmra.mrb[48].mxu1 %v2801_v13 }
 0x19d   :  { %1503 = vmatprep.mubr.bf16.mxu0 %v2829_v1  ;;  %1616 = vmatprep.mubr.bf16.mxu1 %v2829_v1 }
 0x1a4   :  { %1504 = vmatmul.mubr.bf16.gmra.mrb[52].mxu0 %v2802_v14  ;;  %1617 = vmatmul.mubr.bf16.gmra.mrb[52].mxu1 %v2802_v14 }
 0x1a5   :  { %1513 = vmatprep.mubr.bf16.mxu0 %v2829_v1  ;;  %1626 = vmatprep.mubr.bf16.mxu1 %v2829_v1 }
 0x1ac   :  { %1514 = vmatmul.mubr.bf16.gmra.mrb[56].mxu0 %v2803_v15  ;;  %1627 = vmatmul.mubr.bf16.gmra.mrb[56].mxu1 %v2803_v15 }
 0x1ad   :  { %1523 = vmatprep.mubr.bf16.mxu0 %v2829_v1  ;;  %1636 = vmatprep.mubr.bf16.mxu1 %v2829_v1 }
 0x1b4   :  { %1524 = vmatmul.mubr.bf16.gmra.mrb[60].mxu0 %v2804_v16  ;;  %1637 = vmatmul.mubr.bf16.gmra.mrb[60].mxu1 %v2804_v16 }
 0x1b5   :  { %1935 = vmatprep.mubr.bf16.mxu0 %v2829_v1  ;;  %2048 = vmatprep.mubr.bf16.mxu1 %v2829_v1 }
 0x24f   :  { %v1455_v19 = vpop.f32.mrb[32].mxu0  ;;  %v1568_v20 = vpop.f32.mrb[32].mxu1 }
 0x250   :  { %v1456_v21 = vadd.f32 %v1455_v19, %v1296_v17  ;;  %v1569_v22 = vadd.f32 %v1568_v20, %v1296_v17  ;;  %v1457_v23 = vpop.f32.mrb[33].mxu0  ;;  %v1570_v24 = vpop.f32.mrb[33].mxu1 }
 0x251   :  { %v1458_v25 = vadd.f32 %v1457_v23, %v1296_v17  ;;  %v1571_v26 = vadd.f32 %v1570_v24, %v1296_v17  ;;  %v1459_v27 = vpop.f32.mrb[34].mxu0  ;;  %v1572_v28 = vpop.f32.mrb[34].mxu1 }
 0x252   :  { %v1460_v29 = vadd.f32 %v1459_v27, %v1301_v18  ;;  %v1573_v30 = vadd.f32 %v1572_v28, %v1301_v18  ;;  %v1461_v31 = vpop.f32.mrb[35].mxu0  ;;  %v1574_v32 = vpop.f32.mrb[35].mxu1  ;;  %v1647_v35 = vmax.f32 %v1456_v21, 0.0  ;;  %v1649_v36 = vmax.f32 %v1569_v22, 0.0 }
 0x253   :  { %v1462_v33 = vadd.f32 %v1461_v31, %v1301_v18  ;;  %v1575_v34 = vadd.f32 %v1574_v32, %v1301_v18  ;;  %v1648_v39 = vmax.f32 %v1458_v25, 0.0  ;;  %v1650_v40 = vmax.f32 %v1571_v26, 0.0 }
 0x254   :  { %v1651_v37 = vmax.f32 %v1460_v29, 0.0  ;;  %v1653_v38 = vmax.f32 %v1573_v30, 0.0 }
 0x255   :  { %v1652_v41 = vmax.f32 %v1462_v33, 0.0  ;;  %v1654_v42 = vmax.f32 %v1575_v34, 0.0 }
 0x256   :  { %v1711_v45 = vpack.c.bf16 %v1651_v37, %v1647_v35  ;;  %v1713_v46 = vpack.c.bf16 %v1653_v38, %v1649_v36 }
 0x257   :  { %v1712_v47 = vpack.c.bf16 %v1652_v41, %v1648_v39  ;;  %v1714_v48 = vpack.c.bf16 %v1654_v42, %v1650_v40  ;;  %v1465_v49 = vpop.f32.mrb[36].mxu0  ;;  %v1578_v50 = vpop.f32.mrb[36].mxu1 }
 0x258   :  { %v1466_v51 = vadd.f32 %v1465_v49, %v1306_v43  ;;  %v1579_v52 = vadd.f32 %v1578_v50, %v1306_v43  ;;  %v1467_v53 = vpop.f32.mrb[37].mxu0  ;;  %v1580_v54 = vpop.f32.mrb[37].mxu1 }
 0x259   :  { %v1468_v55 = vadd.f32 %v1467_v53, %v1306_v43  ;;  %v1581_v56 = vadd.f32 %v1580_v54, %v1306_v43  ;;  %v1469_v57 = vpop.f32.mrb[38].mxu0  ;;  %v1582_v58 = vpop.f32.mrb[38].mxu1  ;;  %1903 = vmatprep.subr.bf16.mxu0 %v1712_v47  ;;  %2016 = vmatprep.subr.bf16.mxu1 %v1714_v48 }
 0x25a   :  { %v1470_v59 = vadd.f32 %v1469_v57, %v1311_v44  ;;  %v1583_v60 = vadd.f32 %v1582_v58, %v1311_v44  ;;  %v1471_v61 = vpop.f32.mrb[39].mxu0  ;;  %v1584_v62 = vpop.f32.mrb[39].mxu1  ;;  %1904 = vmatpush1.bf16.msra.mxu0 %v1711_v45  ;;  %2017 = vmatpush1.bf16.msra.mxu1 %v1713_v46  ;;  %v1655_v2 = vmax.f32 %v1466_v51, 0.0  ;;  %v1657_v3 = vmax.f32 %v1579_v52, 0.0 }
 0x25b   :  { %v1472_v63 = vadd.f32 %v1471_v61, %v1311_v44  ;;  %v1585_v0 = vadd.f32 %v1584_v62, %v1311_v44  ;;  %v1656_v6 = vmax.f32 %v1468_v55, 0.0  ;;  %v1658_v7 = vmax.f32 %v1581_v56, 0.0  ;;  %v1326_v40 = vpop.permute.xlu0 %1325  ;;  %v1331_v41 = vpop.permute.xlu1 %1330 }
 0x25c   :  { %v1659_v4 = vmax.f32 %v1470_v59, 0.0  ;;  %v1661_v5 = vmax.f32 %v1583_v60, 0.0 }
 0x25d   :  { %v1660_v8 = vmax.f32 %v1472_v63, 0.0  ;;  %v1662_v9 = vmax.f32 %v1585_v0, 0.0 }
 0x25e   :  { %v1715_v12 = vpack.c.bf16 %v1659_v4, %v1655_v2  ;;  %v1717_v13 = vpack.c.bf16 %v1661_v5, %v1657_v3 }
 0x25f   :  { %v1716_v14 = vpack.c.bf16 %v1660_v8, %v1656_v6  ;;  %v1718_v15 = vpack.c.bf16 %v1662_v9, %v1658_v7  ;;  %v1475_v16 = vpop.f32.mrb[40].mxu0  ;;  %v1588_v17 = vpop.f32.mrb[40].mxu1 }
 0x260   :  { %v1476_v18 = vadd.f32 %v1475_v16, %v1316_v10  ;;  %v1589_v19 = vadd.f32 %v1588_v17, %v1316_v10  ;;  %v1477_v20 = vpop.f32.mrb[41].mxu0  ;;  %v1590_v21 = vpop.f32.mrb[41].mxu1 }
 0x261   :  { %v1478_v22 = vadd.f32 %v1477_v20, %v1316_v10  ;;  %v1591_v23 = vadd.f32 %v1590_v21, %v1316_v10  ;;  %v1479_v24 = vpop.f32.mrb[42].mxu0  ;;  %v1592_v25 = vpop.f32.mrb[42].mxu1  ;;  %1905 = vmatprep.subr.bf16.mxu0 %v1716_v14  ;;  %2018 = vmatprep.subr.bf16.mxu1 %v1718_v15 }
 0x262   :  { %v1480_v26 = vadd.f32 %v1479_v24, %v1321_v11  ;;  %v1593_v27 = vadd.f32 %v1592_v25, %v1321_v11  ;;  %v1481_v28 = vpop.f32.mrb[43].mxu0  ;;  %v1594_v29 = vpop.f32.mrb[43].mxu1  ;;  %1906 = vmatpush1.bf16.msra.mxu0 %v1715_v12  ;;  %2019 = vmatpush1.bf16.msra.mxu1 %v1717_v13  ;;  %v1663_v32 = vmax.f32 %v1476_v18, 0.0  ;;  %v1665_v33 = vmax.f32 %v1589_v19, 0.0 }
 0x263   :  { %v1482_v30 = vadd.f32 %v1481_v28, %v1321_v11  ;;  %v1595_v31 = vadd.f32 %v1594_v29, %v1321_v11  ;;  %v1664_v36 = vmax.f32 %v1478_v22, 0.0  ;;  %v1666_v37 = vmax.f32 %v1591_v23, 0.0  ;;  %v1336_v7 = vpop.permute.xlu0 %1335  ;;  %v1341_v8 = vpop.permute.xlu1 %1340 }
 0x264   :  { %v1667_v34 = vmax.f32 %v1480_v26, 0.0  ;;  %v1669_v35 = vmax.f32 %v1593_v27, 0.0 }
 0x265   :  { %v1668_v38 = vmax.f32 %v1482_v30, 0.0  ;;  %v1670_v39 = vmax.f32 %v1595_v31, 0.0 }
 0x266   :  { %v1719_v42 = vpack.c.bf16 %v1667_v34, %v1663_v32  ;;  %v1721_v43 = vpack.c.bf16 %v1669_v35, %v1665_v33 }
 0x267   :  { %v1720_v44 = vpack.c.bf16 %v1668_v38, %v1664_v36  ;;  %v1722_v45 = vpack.c.bf16 %v1670_v39, %v1666_v37  ;;  %v1485_v46 = vpop.f32.mrb[44].mxu0  ;;  %v1598_v47 = vpop.f32.mrb[44].mxu1 }
 0x268   :  { %v1486_v48 = vadd.f32 %v1485_v46, %v1326_v40  ;;  %v1599_v49 = vadd.f32 %v1598_v47, %v1326_v40  ;;  %v1487_v50 = vpop.f32.mrb[45].mxu0  ;;  %v1600_v51 = vpop.f32.mrb[45].mxu1 }
 0x269   :  { %v1488_v52 = vadd.f32 %v1487_v50, %v1326_v40  ;;  %v1601_v53 = vadd.f32 %v1600_v51, %v1326_v40  ;;  %v1489_v54 = vpop.f32.mrb[46].mxu0  ;;  %v1602_v55 = vpop.f32.mrb[46].mxu1  ;;  %1907 = vmatprep.subr.bf16.mxu0 %v1720_v44  ;;  %2020 = vmatprep.subr.bf16.mxu1 %v1722_v45 }
 0x26a   :  { %v1490_v56 = vadd.f32 %v1489_v54, %v1331_v41  ;;  %v1603_v57 = vadd.f32 %v1602_v55, %v1331_v41  ;;  %v1491_v58 = vpop.f32.mrb[47].mxu0  ;;  %v1604_v59 = vpop.f32.mrb[47].mxu1  ;;  %1908 = vmatpush1.bf16.msra.mxu0 %v1719_v42  ;;  %2021 = vmatpush1.bf16.msra.mxu1 %v1721_v43  ;;  %v1671_v62 = vmax.f32 %v1486_v48, 0.0  ;;  %v1673_v63 = vmax.f32 %v1599_v49, 0.0 }
 0x26b   :  { %v1492_v60 = vadd.f32 %v1491_v58, %v1331_v41  ;;  %v1605_v61 = vadd.f32 %v1604_v59, %v1331_v41  ;;  %v1672_v3 = vmax.f32 %v1488_v52, 0.0  ;;  %v1674_v4 = vmax.f32 %v1601_v53, 0.0  ;;  %v1346_v37 = vpop.permute.xlu0 %1345  ;;  %v1351_v38 = vpop.permute.xlu1 %1350 }
 0x26c   :  { %v1675_v0 = vmax.f32 %v1490_v56, 0.0  ;;  %v1677_v2 = vmax.f32 %v1603_v57, 0.0 }
 0x26d   :  { %v1676_v5 = vmax.f32 %v1492_v60, 0.0  ;;  %v1678_v6 = vmax.f32 %v1605_v61, 0.0 }
 0x26e   :  { %v1723_v9 = vpack.c.bf16 %v1675_v0, %v1671_v62  ;;  %v1725_v10 = vpack.c.bf16 %v1677_v2, %v1673_v63 }
 0x26f   :  { %v1724_v11 = vpack.c.bf16 %v1676_v5, %v1672_v3  ;;  %v1726_v12 = vpack.c.bf16 %v1678_v6, %v1674_v4  ;;  %v1495_v13 = vpop.f32.mrb[48].mxu0  ;;  %v1608_v14 = vpop.f32.mrb[48].mxu1 }
 0x270   :  { %v1496_v15 = vadd.f32 %v1495_v13, %v1336_v7  ;;  %v1609_v16 = vadd.f32 %v1608_v14, %v1336_v7  ;;  %v1497_v17 = vpop.f32.mrb[49].mxu0  ;;  %v1610_v18 = vpop.f32.mrb[49].mxu1 }
 0x271   :  { %v1498_v19 = vadd.f32 %v1497_v17, %v1336_v7  ;;  %v1611_v20 = vadd.f32 %v1610_v18, %v1336_v7  ;;  %v1499_v21 = vpop.f32.mrb[50].mxu0  ;;  %v1612_v22 = vpop.f32.mrb[50].mxu1  ;;  %1909 = vmatprep.subr.bf16.mxu0 %v1724_v11  ;;  %2022 = vmatprep.subr.bf16.mxu1 %v1726_v12 }
 0x272   :  { %v1500_v23 = vadd.f32 %v1499_v21, %v1341_v8  ;;  %v1613_v24 = vadd.f32 %v1612_v22, %v1341_v8  ;;  %v1501_v25 = vpop.f32.mrb[51].mxu0  ;;  %v1614_v26 = vpop.f32.mrb[51].mxu1  ;;  %1910 = vmatpush1.bf16.msra.mxu0 %v1723_v9  ;;  %2023 = vmatpush1.bf16.msra.mxu1 %v1725_v10  ;;  %v1679_v29 = vmax.f32 %v1496_v15, 0.0  ;;  %v1681_v30 = vmax.f32 %v1609_v16, 0.0 }
 0x273   :  { %v1502_v27 = vadd.f32 %v1501_v25, %v1341_v8  ;;  %v1615_v28 = vadd.f32 %v1614_v26, %v1341_v8  ;;  %v1680_v33 = vmax.f32 %v1498_v19, 0.0  ;;  %v1682_v34 = vmax.f32 %v1611_v20, 0.0  ;;  %v1356_v4 = vpop.permute.xlu0 %1355  ;;  %v1361_v5 = vpop.permute.xlu1 %1360 }
 0x274   :  { %v1683_v31 = vmax.f32 %v1500_v23, 0.0  ;;  %v1685_v32 = vmax.f32 %v1613_v24, 0.0 }
 0x275   :  { %v1684_v35 = vmax.f32 %v1502_v27, 0.0  ;;  %v1686_v36 = vmax.f32 %v1615_v28, 0.0 }
 0x276   :  { %v1727_v39 = vpack.c.bf16 %v1683_v31, %v1679_v29  ;;  %v1729_v40 = vpack.c.bf16 %v1685_v32, %v1681_v30 }
 0x277   :  { %v1728_v41 = vpack.c.bf16 %v1684_v35, %v1680_v33  ;;  %v1730_v42 = vpack.c.bf16 %v1686_v36, %v1682_v34  ;;  %v1505_v43 = vpop.f32.mrb[52].mxu0  ;;  %v1618_v44 = vpop.f32.mrb[52].mxu1 }
 0x278   :  { %v1506_v45 = vadd.f32 %v1505_v43, %v1346_v37  ;;  %v1619_v46 = vadd.f32 %v1618_v44, %v1346_v37  ;;  %v1507_v47 = vpop.f32.mrb[53].mxu0  ;;  %v1620_v48 = vpop.f32.mrb[53].mxu1 }
 0x279   :  { %v1508_v49 = vadd.f32 %v1507_v47, %v1346_v37  ;;  %v1621_v50 = vadd.f32 %v1620_v48, %v1346_v37  ;;  %v1509_v51 = vpop.f32.mrb[54].mxu0  ;;  %v1622_v52 = vpop.f32.mrb[54].mxu1  ;;  %1911 = vmatprep.subr.bf16.mxu0 %v1728_v41  ;;  %2024 = vmatprep.subr.bf16.mxu1 %v1730_v42 }
 0x27a   :  { %v1510_v53 = vadd.f32 %v1509_v51, %v1351_v38  ;;  %v1623_v54 = vadd.f32 %v1622_v52, %v1351_v38  ;;  %v1511_v55 = vpop.f32.mrb[55].mxu0  ;;  %v1624_v56 = vpop.f32.mrb[55].mxu1  ;;  %1912 = vmatpush1.bf16.msra.mxu0 %v1727_v39  ;;  %2025 = vmatpush1.bf16.msra.mxu1 %v1729_v40  ;;  %v1687_v59 = vmax.f32 %v1506_v45, 0.0  ;;  %v1689_v60 = vmax.f32 %v1619_v46, 0.0 }
 0x27b   :  { %v1512_v57 = vadd.f32 %v1511_v55, %v1351_v38  ;;  %v1625_v58 = vadd.f32 %v1624_v56, %v1351_v38  ;;  %v1688_v63 = vmax.f32 %v1508_v49, 0.0  ;;  %v1690_v0 = vmax.f32 %v1621_v50, 0.0  ;;  %v1366_v34 = vpop.permute.xlu0 %1365  ;;  %v1371_v35 = vpop.permute.xlu1 %1370 }
 0x27c   :  { %v1691_v61 = vmax.f32 %v1510_v53, 0.0  ;;  %v1693_v62 = vmax.f32 %v1623_v54, 0.0 }
 0x27d   :  { %v1692_v2 = vmax.f32 %v1512_v57, 0.0  ;;  %v1694_v3 = vmax.f32 %v1625_v58, 0.0 }
 0x27e   :  { %v1731_v6 = vpack.c.bf16 %v1691_v61, %v1687_v59  ;;  %v1733_v7 = vpack.c.bf16 %v1693_v62, %v1689_v60 }
 0x27f   :  { %v1732_v8 = vpack.c.bf16 %v1692_v2, %v1688_v63  ;;  %v1734_v9 = vpack.c.bf16 %v1694_v3, %v1690_v0  ;;  %v1515_v10 = vpop.f32.mrb[56].mxu0  ;;  %v1628_v11 = vpop.f32.mrb[56].mxu1 }
 0x280   :  { %v1516_v12 = vadd.f32 %v1515_v10, %v1356_v4  ;;  %v1629_v13 = vadd.f32 %v1628_v11, %v1356_v4  ;;  %v1517_v14 = vpop.f32.mrb[57].mxu0  ;;  %v1630_v15 = vpop.f32.mrb[57].mxu1  ;;  %v2810_v10 = vld [vmem:[%s3585_s7 + $0x28] sm:$0xff]   ;;  %v2811_v11 = vld [vmem:[%s3585_s7 + $0x30] sm:$0xff]  }
 0x281   :  { %v1518_v16 = vadd.f32 %v1517_v14, %v1356_v4  ;;  %v1631_v17 = vadd.f32 %v1630_v15, %v1356_v4  ;;  %v1519_v18 = vpop.f32.mrb[58].mxu0  ;;  %v1632_v19 = vpop.f32.mrb[58].mxu1  ;;  %1913 = vmatprep.subr.bf16.mxu0 %v1732_v8  ;;  %2026 = vmatprep.subr.bf16.mxu1 %v1734_v9  ;;  %v2808_v8 = vld [vmem:[%s3585_s7 + $0x18] sm:$0xff]   ;;  %v2809_v9 = vld [vmem:[%s3585_s7 + $0x20] sm:$0xff]  }
 0x282   :  { %v1520_v20 = vadd.f32 %v1519_v18, %v1361_v5  ;;  %v1633_v21 = vadd.f32 %v1632_v19, %v1361_v5  ;;  %v1521_v22 = vpop.f32.mrb[59].mxu0  ;;  %v1634_v23 = vpop.f32.mrb[59].mxu1  ;;  %1914 = vmatpush1.bf16.msra.mxu0 %v1731_v6  ;;  %2027 = vmatpush1.bf16.msra.mxu1 %v1733_v7  ;;  %v1695_v26 = vmax.f32 %v1516_v12, 0.0  ;;  %v1697_v27 = vmax.f32 %v1629_v13, 0.0  ;;  %v2806_v6 = vld [vmem:[%s3585_s7 + $0x8] sm:$0xff]   ;;  %v2807_v7 = vld [vmem:[%s3585_s7 + $0x10] sm:$0xff]  }
 0x283   :  { %v1522_v24 = vadd.f32 %v1521_v22, %v1361_v5  ;;  %v1635_v25 = vadd.f32 %v1634_v23, %v1361_v5  ;;  %v1696_v30 = vmax.f32 %v1518_v16, 0.0  ;;  %v1698_v31 = vmax.f32 %v1631_v17, 0.0  ;;  %v2805_v5 = vld [vmem:[%s3585_s7] sm:$0xff]   ;;  %v2812_v12 = vld [vmem:[%s3585_s7 + $0x38] sm:$0xff]   ;;  %v1778_v13 = vpop.permute.xlu0 %1777  ;;  %v1783_v14 = vpop.permute.xlu1 %1782 }
 0x284   :  { %v1699_v28 = vmax.f32 %v1520_v20, 0.0  ;;  %v1701_v29 = vmax.f32 %v1633_v21, 0.0 }
 0x285   :  { %v1700_v32 = vmax.f32 %v1522_v24, 0.0  ;;  %v1702_v33 = vmax.f32 %v1635_v25, 0.0 }
 0x286   :  { %v1735_v36 = vpack.c.bf16 %v1699_v28, %v1695_v26  ;;  %v1737_v37 = vpack.c.bf16 %v1701_v29, %v1697_v27 }
 0x287   :  { %v1736_v38 = vpack.c.bf16 %v1700_v32, %v1696_v30  ;;  %v1738_v39 = vpack.c.bf16 %v1702_v33, %v1698_v31  ;;  %v1525_v40 = vpop.f32.mrb[60].mxu0  ;;  %v1638_v41 = vpop.f32.mrb[60].mxu1 }
 0x288   :  { %v1526_v42 = vadd.f32 %v1525_v40, %v1366_v34  ;;  %v1639_v43 = vadd.f32 %v1638_v41, %v1366_v34  ;;  %v1527_v44 = vpop.f32.mrb[61].mxu0  ;;  %v1640_v45 = vpop.f32.mrb[61].mxu1 }
 0x289   :  { %v1528_v46 = vadd.f32 %v1527_v44, %v1366_v34  ;;  %v1641_v47 = vadd.f32 %v1640_v45, %v1366_v34  ;;  %v1529_v48 = vpop.f32.mrb[62].mxu0  ;;  %v1642_v49 = vpop.f32.mrb[62].mxu1  ;;  %1915 = vmatprep.subr.bf16.mxu0 %v1736_v38  ;;  %2028 = vmatprep.subr.bf16.mxu1 %v1738_v39 }
 0x28a   :  { %v1530_v50 = vadd.f32 %v1529_v48, %v1371_v35  ;;  %v1643_v51 = vadd.f32 %v1642_v49, %v1371_v35  ;;  %v1531_v52 = vpop.f32.mrb[63].mxu0  ;;  %v1644_v53 = vpop.f32.mrb[63].mxu1  ;;  %1916 = vmatpush1.bf16.msra.mxu0 %v1735_v36  ;;  %2029 = vmatpush1.bf16.msra.mxu1 %v1737_v37  ;;  %v1703_v56 = vmax.f32 %v1526_v42, 0.0  ;;  %v1705_v57 = vmax.f32 %v1639_v43, 0.0 }
 0x28b   :  { %v1532_v54 = vadd.f32 %v1531_v52, %v1371_v35  ;;  %v1645_v55 = vadd.f32 %v1644_v53, %v1371_v35  ;;  %v1704_v60 = vmax.f32 %v1528_v46, 0.0  ;;  %v1706_v61 = vmax.f32 %v1641_v47, 0.0  ;;  %v1788_v15 = vpop.permute.xlu0 %1787  ;;  %v3440_v16 = vpop.permute.xlu1 %1792 }
 0x28c   :  { %v1707_v58 = vmax.f32 %v1530_v50, 0.0  ;;  %v1709_v59 = vmax.f32 %v1643_v51, 0.0 }
 0x28d   :  { %v1708_v62 = vmax.f32 %v1532_v54, 0.0  ;;  %v1710_v63 = vmax.f32 %v1645_v55, 0.0 }
 0x28e   :  { %v1739_v0 = vpack.c.bf16 %v1707_v58, %v1703_v56  ;;  %v1741_v2 = vpack.c.bf16 %v1709_v59, %v1705_v57 }
 0x28f   :  { %v1740_v3 = vpack.c.bf16 %v1708_v62, %v1704_v60  ;;  %v1742_v4 = vpack.c.bf16 %v1710_v63, %v1706_v61  ;;  %v2212_v17 = vpop.permute.xlu0 %2211  ;;  %v2217_v18 = vpop.permute.xlu1 %2216 }
 0x291   :  { %1917 = vmatprep.subr.bf16.mxu0 %v1740_v3  ;;  %2030 = vmatprep.subr.bf16.mxu1 %v1742_v4 }
 0x292   :  { %1918 = vmatpush1.bf16.msra.mxu0 %v1739_v0  ;;  %2031 = vmatpush1.bf16.msra.mxu1 %v1741_v2 }
 0x293   :  { %v3442_v19 = vpop.permute.xlu0 %1797  ;;  %v3444_v20 = vpop.permute.xlu1 %2221 }
 0x295   :  { %1936 = vmatmul.mubr.bf16.vlgmr.msra.gmra.mrb[64].mxu0 %v2805_v5  ;;  %2049 = vmatmul.mubr.bf16.vlgmr.msra.gmra.mrb[64].mxu1 %v2805_v5 }
 0x296   :  { %1945 = vmatprep.mubr.bf16.mxu0 %v2829_v1  ;;  %2058 = vmatprep.mubr.bf16.mxu1 %v2829_v1 }
 0x297   :  { %v3446_v21 = vpop.permute.xlu0 %1802 }
 0x29b   :  { %v3450_v22 = vpop.permute.xlu0 %1807 }
 0x29d   :  { %1946 = vmatmul.mubr.bf16.gmra.mrb[68].mxu0 %v2806_v6  ;;  %2059 = vmatmul.mubr.bf16.gmra.mrb[68].mxu1 %v2806_v6 }
 0x29e   :  { %1955 = vmatprep.mubr.bf16.mxu0 %v2829_v1  ;;  %2068 = vmatprep.mubr.bf16.mxu1 %v2829_v1 }
 0x29f   :  { %v3454_v24 = vpop.permute.xlu0 %1812 }
 0x2a3   :  { %v3458_v26 = vpop.permute.xlu0 %1817 }
 0x2a5   :  { %1956 = vmatmul.mubr.bf16.gmra.mrb[72].mxu0 %v2807_v7  ;;  %2069 = vmatmul.mubr.bf16.gmra.mrb[72].mxu1 %v2807_v7 }
 0x2a6   :  { %1965 = vmatprep.mubr.bf16.mxu0 %v2829_v1  ;;  %2078 = vmatprep.mubr.bf16.mxu1 %v2829_v1 }
 0x2a7   :  { %v3462_v52 = vpop.permute.xlu0 %1822 }
 0x2ad   :  { %1966 = vmatmul.mubr.bf16.gmra.mrb[76].mxu0 %v2808_v8  ;;  %2079 = vmatmul.mubr.bf16.gmra.mrb[76].mxu1 %v2808_v8 }
 0x2ae   :  { %1975 = vmatprep.mubr.bf16.mxu0 %v2829_v1  ;;  %2088 = vmatprep.mubr.bf16.mxu1 %v2829_v1 }
 0x2b5   :  { %1976 = vmatmul.mubr.bf16.gmra.mrb[80].mxu0 %v2809_v9  ;;  %2089 = vmatmul.mubr.bf16.gmra.mrb[80].mxu1 %v2809_v9 }
 0x2b6   :  { %1985 = vmatprep.mubr.bf16.mxu0 %v2829_v1  ;;  %2098 = vmatprep.mubr.bf16.mxu1 %v2829_v1 }
 0x2bd   :  { %1986 = vmatmul.mubr.bf16.gmra.mrb[84].mxu0 %v2810_v10  ;;  %2099 = vmatmul.mubr.bf16.gmra.mrb[84].mxu1 %v2810_v10 }
 0x2be   :  { %1995 = vmatprep.mubr.bf16.mxu0 %v2829_v1  ;;  %2108 = vmatprep.mubr.bf16.mxu1 %v2829_v1 }
 0x2c5   :  { %1996 = vmatmul.mubr.bf16.gmra.mrb[88].mxu0 %v2811_v11  ;;  %2109 = vmatmul.mubr.bf16.gmra.mrb[88].mxu1 %v2811_v11 }
 0x2c6   :  { %2005 = vmatprep.mubr.bf16.mxu0 %v2829_v1  ;;  %2118 = vmatprep.mubr.bf16.mxu1 %v2829_v1  ;;  %v3448_v1 = vpop.permute.xlu1 %2226 }
 0x2ca   :  { %v3452_v23 = vpop.permute.xlu1 %2231 }
 0x2cd   :  { %2006 = vmatmul.mubr.bf16.gmra.mrb[92].mxu0 %v2812_v12  ;;  %2119 = vmatmul.mubr.bf16.gmra.mrb[92].mxu1 %v2812_v12 }
 0x2ce   :  { %v3456_v25 = vpop.permute.xlu1 %2236 }
 0x2d2   :  { %v3460_v27 = vpop.permute.xlu1 %2241 }
 0x2d6   :  { %v3464_v53 = vpop.permute.xlu1 %2246 }
 0x368   :  { %v1937_v28 = vpop.f32.mrb[64].mxu0  ;;  %v2050_v29 = vpop.f32.mrb[64].mxu1 }
 0x369   :  { %v1938_v30 = vadd.f32 %v1937_v28, %v1778_v13  ;;  %v2051_v31 = vadd.f32 %v2050_v29, %v1778_v13  ;;  %v1939_v32 = vpop.f32.mrb[65].mxu0  ;;  %v2052_v33 = vpop.f32.mrb[65].mxu1 }
 0x36a   :  { %v1940_v34 = vadd.f32 %v1939_v32, %v1778_v13  ;;  %v2053_v35 = vadd.f32 %v2052_v33, %v1778_v13  ;;  %v1941_v36 = vpop.f32.mrb[66].mxu0  ;;  %v2054_v37 = vpop.f32.mrb[66].mxu1 }
 0x36b   :  { %v2129_v38 = vmax.f32 %v1938_v30, 0.0  ;;  %v2131_v39 = vmax.f32 %v2051_v31, 0.0  ;;  %v1942_v40 = vadd.f32 %v1941_v36, %v1783_v14  ;;  %v2055_v41 = vadd.f32 %v2054_v37, %v1783_v14  ;;  %v1943_v42 = vpop.f32.mrb[67].mxu0  ;;  %v2056_v43 = vpop.f32.mrb[67].mxu1 }
 0x36c   :  { %v2130_v44 = vmax.f32 %v1940_v34, 0.0  ;;  %v2132_v45 = vmax.f32 %v2053_v35, 0.0  ;;  %v1944_v46 = vadd.f32 %v1943_v42, %v1783_v14  ;;  %v2057_v47 = vadd.f32 %v2056_v43, %v1783_v14  ;;  %v3476_v42 = vpop.permute.xlu1 %2251 }
 0x36d   :  { %v2133_v48 = vmax.f32 %v1942_v40, 0.0  ;;  %v2135_v49 = vmax.f32 %v2055_v41, 0.0  ;;  %v2289_v54 = vmul.f32 %v2212_v17, %v2129_v38  ;;  %v2291_v55 = vmul.f32 %v2212_v17, %v2131_v39  ;;  %v3474_v41 = vpop.permute.xlu0 %1827 }
 0x36e   :  { %v2134_v50 = vmax.f32 %v1944_v46, 0.0  ;;  %v2136_v51 = vmax.f32 %v2057_v47, 0.0  ;;  %v2290_v58 = vmul.f32 %v2212_v17, %v2130_v44  ;;  %v2292_v59 = vmul.f32 %v2212_v17, %v2132_v45 }
 0x36f   :  { %v2293_v56 = vmul.f32 %v2217_v18, %v2133_v48  ;;  %v2295_v57 = vmul.f32 %v2217_v18, %v2135_v49 }
 0x370   :  { %v2294_v60 = vmul.f32 %v2217_v18, %v2134_v50  ;;  %v2296_v61 = vmul.f32 %v2217_v18, %v2136_v51  ;;  %v1947_v62 = vpop.f32.mrb[68].mxu0  ;;  %v2060_v63 = vpop.f32.mrb[68].mxu1 }
 0x371   :  { %v2353_v0 = vadd.f32 %v2293_v56, %v2289_v54  ;;  %v2395_v2 = vadd.f32 %v2295_v57, %v2291_v55  ;;  %v1948_v3 = vadd.f32 %v1947_v62, %v1788_v15  ;;  %v2061_v4 = vadd.f32 %v2060_v63, %v1788_v15  ;;  %v1949_v5 = vpop.f32.mrb[69].mxu0  ;;  %v2062_v6 = vpop.f32.mrb[69].mxu1 }
 0x372   :  { %v2374_v7 = vadd.f32 %v2294_v60, %v2290_v58  ;;  %v2416_v8 = vadd.f32 %v2296_v61, %v2292_v59  ;;  %v1950_v9 = vadd.f32 %v1949_v5, %v1788_v15  ;;  %v2063_v10 = vadd.f32 %v2062_v6, %v1788_v15  ;;  %v1951_v11 = vpop.f32.mrb[70].mxu0  ;;  %v2064_v12 = vpop.f32.mrb[70].mxu1 }
 0x373   :  { %v2137_v13 = vmax.f32 %v1948_v3, 0.0  ;;  %v2139_v14 = vmax.f32 %v2061_v4, 0.0  ;;  %v1952_v17 = vadd.f32 %v1951_v11, %v3440_v16  ;;  %v2065_v18 = vadd.f32 %v2064_v12, %v3440_v16  ;;  %v1953_v28 = vpop.f32.mrb[71].mxu0  ;;  %v2066_v29 = vpop.f32.mrb[71].mxu1 }
 0x374   :  { %v2138_v30 = vmax.f32 %v1950_v9, 0.0  ;;  %v2140_v31 = vmax.f32 %v2063_v10, 0.0  ;;  %v1954_v32 = vadd.f32 %v1953_v28, %v3440_v16  ;;  %v2067_v33 = vadd.f32 %v2066_v29, %v3440_v16  ;;  %v3494_v29 = vpop.permute.xlu0 %1832 }
 0x375   :  { %v2297_v34 = vmul.f32 %v3444_v20, %v2137_v13  ;;  %v2299_v15 = vmul.f32 %v3444_v20, %v2139_v14  ;;  %v2141_v35 = vmax.f32 %v1952_v17, 0.0  ;;  %v2143_v36 = vmax.f32 %v2065_v18, 0.0 }
 0x376   :  { %v2298_v37 = vmul.f32 %v3444_v20, %v2138_v30  ;;  %v2300_v38 = vmul.f32 %v3444_v20, %v2140_v31  ;;  %v2142_v39 = vmax.f32 %v1954_v32, 0.0  ;;  %v2144_v40 = vmax.f32 %v2067_v33, 0.0  ;;  %v3496_v30 = vpop.permute.xlu1 %2256 }
 0x377   :  { %v2354_v43 = vadd.f32 %v2353_v0, %v2297_v34  ;;  %v2396_v44 = vadd.f32 %v2395_v2, %v2299_v15  ;;  %v2301_v16 = vmul.f32 %v3448_v1, %v2141_v35  ;;  %v2303_v45 = vmul.f32 %v3448_v1, %v2143_v36 }
 0x378   :  { %v2375_v46 = vadd.f32 %v2374_v7, %v2298_v37  ;;  %v2417_v47 = vadd.f32 %v2416_v8, %v2300_v38  ;;  %v2302_v48 = vmul.f32 %v3448_v1, %v2142_v39  ;;  %v2304_v49 = vmul.f32 %v3448_v1, %v2144_v40  ;;  %v1957_v50 = vpop.f32.mrb[72].mxu0  ;;  %v2070_v20 = vpop.f32.mrb[72].mxu1 }
 0x379   :  { %v2355_v51 = vadd.f32 %v2354_v43, %v2301_v16  ;;  %v2397_v54 = vadd.f32 %v2396_v44, %v2303_v45  ;;  %v1958_v55 = vadd.f32 %v1957_v50, %v3442_v19  ;;  %v2071_v56 = vadd.f32 %v2070_v20, %v3442_v19  ;;  %v1959_v57 = vpop.f32.mrb[73].mxu0  ;;  %v2072_v58 = vpop.f32.mrb[73].mxu1 }
 0x37a   :  { %v2376_v59 = vadd.f32 %v2375_v46, %v2302_v48  ;;  %v2418_v60 = vadd.f32 %v2417_v47, %v2304_v49  ;;  %v1960_v61 = vadd.f32 %v1959_v57, %v3442_v19  ;;  %v2073_v62 = vadd.f32 %v2072_v58, %v3442_v19  ;;  %v1961_v63 = vpop.f32.mrb[74].mxu0  ;;  %v2074_v0 = vpop.f32.mrb[74].mxu1 }
 0x37b   :  { %v2145_v2 = vmax.f32 %v1958_v55, 0.0  ;;  %v2147_v1 = vmax.f32 %v2071_v56, 0.0  ;;  %v1962_v3 = vadd.f32 %v1961_v63, %v3446_v21  ;;  %v2075_v4 = vadd.f32 %v2074_v0, %v3446_v21  ;;  %v1963_v5 = vpop.f32.mrb[75].mxu0  ;;  %v2076_v6 = vpop.f32.mrb[75].mxu1 }
 0x37c   :  { %v2146_v7 = vmax.f32 %v1960_v61, 0.0  ;;  %v2148_v8 = vmax.f32 %v2073_v62, 0.0  ;;  %v1964_v9 = vadd.f32 %v1963_v5, %v3446_v21  ;;  %v2077_v10 = vadd.f32 %v2076_v6, %v3446_v21  ;;  %v3516_v5 = vpop.permute.xlu1 %2261 }
 0x37d   :  { %v2305_v11 = vmul.f32 %v3452_v23, %v2145_v2  ;;  %v2307_v19 = vmul.f32 %v3452_v23, %v2147_v1  ;;  %v2149_v12 = vmax.f32 %v1962_v3, 0.0  ;;  %v2151_v13 = vmax.f32 %v2075_v4, 0.0  ;;  %v3514_v4 = vpop.permute.xlu0 %1837 }
 0x37e   :  { %v2306_v14 = vmul.f32 %v3452_v23, %v2146_v7  ;;  %v2308_v17 = vmul.f32 %v3452_v23, %v2148_v8  ;;  %v2150_v18 = vmax.f32 %v1964_v9, 0.0  ;;  %v2152_v28 = vmax.f32 %v2077_v10, 0.0 }
 0x37f   :  { %v2356_v31 = vadd.f32 %v2355_v51, %v2305_v11  ;;  %v2398_v32 = vadd.f32 %v2397_v54, %v2307_v19  ;;  %v2309_v21 = vmul.f32 %v3456_v25, %v2149_v12  ;;  %v2311_v33 = vmul.f32 %v3456_v25, %v2151_v13 }
 0x380   :  { %v2377_v34 = vadd.f32 %v2376_v59, %v2306_v14  ;;  %v2419_v15 = vadd.f32 %v2418_v60, %v2308_v17  ;;  %v2310_v35 = vmul.f32 %v3456_v25, %v2150_v18  ;;  %v2312_v36 = vmul.f32 %v3456_v25, %v2152_v28  ;;  %v1967_v37 = vpop.f32.mrb[76].mxu0  ;;  %v2080_v23 = vpop.f32.mrb[76].mxu1 }
 0x381   :  { %v2357_v38 = vadd.f32 %v2356_v31, %v2309_v21  ;;  %v2399_v39 = vadd.f32 %v2398_v32, %v2311_v33  ;;  %v1968_v40 = vadd.f32 %v1967_v37, %v3450_v22  ;;  %v2081_v43 = vadd.f32 %v2080_v23, %v3450_v22  ;;  %v1969_v44 = vpop.f32.mrb[77].mxu0  ;;  %v2082_v16 = vpop.f32.mrb[77].mxu1 }
 0x382   :  { %v2378_v45 = vadd.f32 %v2377_v34, %v2310_v35  ;;  %v2420_v46 = vadd.f32 %v2419_v15, %v2312_v36  ;;  %v1970_v47 = vadd.f32 %v1969_v44, %v3450_v22  ;;  %v2083_v48 = vadd.f32 %v2082_v16, %v3450_v22  ;;  %v1971_v49 = vpop.f32.mrb[78].mxu0  ;;  %v2084_v50 = vpop.f32.mrb[78].mxu1 }
 0x383   :  { %v2153_v20 = vmax.f32 %v1968_v40, 0.0  ;;  %v2155_v25 = vmax.f32 %v2081_v43, 0.0  ;;  %v1972_v51 = vadd.f32 %v1971_v49, %v3454_v24  ;;  %v2085_v54 = vadd.f32 %v2084_v50, %v3454_v24  ;;  %v1973_v55 = vpop.f32.mrb[79].mxu0  ;;  %v2086_v56 = vpop.f32.mrb[79].mxu1 }
 0x384   :  { %v2154_v57 = vmax.f32 %v1970_v47, 0.0  ;;  %v2156_v58 = vmax.f32 %v2083_v48, 0.0  ;;  %v1974_v59 = vadd.f32 %v1973_v55, %v3454_v24  ;;  %v2087_v60 = vadd.f32 %v2086_v56, %v3454_v24 }
 0x385   :  { %v2313_v61 = vmul.f32 %v3460_v27, %v2153_v20  ;;  %v2315_v22 = vmul.f32 %v3460_v27, %v2155_v25  ;;  %v2157_v62 = vmax.f32 %v1972_v51, 0.0  ;;  %v2159_v63 = vmax.f32 %v2085_v54, 0.0  ;;  %v3534_v25 = vpop.permute.xlu0 %1842  ;;  %v2267_v51 = vpop.permute.xlu1 %2266 }
 0x386   :  { %v2314_v0 = vmul.f32 %v3460_v27, %v2154_v57  ;;  %v2316_v2 = vmul.f32 %v3460_v27, %v2156_v58  ;;  %v2158_v1 = vmax.f32 %v1974_v59, 0.0  ;;  %v2160_v3 = vmax.f32 %v2087_v60, 0.0 }
 0x387   :  { %v2358_v6 = vadd.f32 %v2357_v38, %v2313_v61  ;;  %v2400_v7 = vadd.f32 %v2399_v39, %v2315_v22  ;;  %v2317_v24 = vmul.f32 %v3464_v53, %v2157_v62  ;;  %v2319_v8 = vmul.f32 %v3464_v53, %v2159_v63 }
 0x388   :  { %v2379_v9 = vadd.f32 %v2378_v45, %v2314_v0  ;;  %v2421_v10 = vadd.f32 %v2420_v46, %v2316_v2  ;;  %v2318_v11 = vmul.f32 %v3464_v53, %v2158_v1  ;;  %v2320_v19 = vmul.f32 %v3464_v53, %v2160_v3  ;;  %v1977_v12 = vpop.f32.mrb[80].mxu0  ;;  %v2090_v27 = vpop.f32.mrb[80].mxu1 }
 0x389   :  { %v2359_v13 = vadd.f32 %v2358_v6, %v2317_v24  ;;  %v2401_v14 = vadd.f32 %v2400_v7, %v2319_v8  ;;  %v1978_v17 = vadd.f32 %v1977_v12, %v3458_v26  ;;  %v2091_v18 = vadd.f32 %v2090_v27, %v3458_v26  ;;  %v1979_v28 = vpop.f32.mrb[81].mxu0  ;;  %v2092_v31 = vpop.f32.mrb[81].mxu1 }
 0x38a   :  { %v2380_v32 = vadd.f32 %v2379_v9, %v2318_v11  ;;  %v2422_v21 = vadd.f32 %v2421_v10, %v2320_v19  ;;  %v1980_v33 = vadd.f32 %v1979_v28, %v3458_v26  ;;  %v2093_v34 = vadd.f32 %v2092_v31, %v3458_v26  ;;  %v1981_v15 = vpop.f32.mrb[82].mxu0  ;;  %v2094_v35 = vpop.f32.mrb[82].mxu1 }
 0x38b   :  { %v2161_v36 = vmax.f32 %v1978_v17, 0.0  ;;  %v2163_v53 = vmax.f32 %v2091_v18, 0.0  ;;  %v1982_v37 = vadd.f32 %v1981_v15, %v3462_v52  ;;  %v2095_v23 = vadd.f32 %v2094_v35, %v3462_v52  ;;  %v1983_v38 = vpop.f32.mrb[83].mxu0  ;;  %v2096_v39 = vpop.f32.mrb[83].mxu1 }
 0x38c   :  { %v2162_v40 = vmax.f32 %v1980_v33, 0.0  ;;  %v2164_v43 = vmax.f32 %v2093_v34, 0.0  ;;  %v1984_v44 = vadd.f32 %v1983_v38, %v3462_v52  ;;  %v2097_v16 = vadd.f32 %v2096_v39, %v3462_v52  ;;  %v3552_v35 = vpop.permute.xlu0 %1847 }
 0x38d   :  { %v2321_v45 = vmul.f32 %v3476_v42, %v2161_v36  ;;  %v2323_v26 = vmul.f32 %v3476_v42, %v2163_v53  ;;  %v2165_v46 = vmax.f32 %v1982_v37, 0.0  ;;  %v2167_v47 = vmax.f32 %v2095_v23, 0.0  ;;  %v2272_v36 = vpop.permute.xlu1 %2271 }
 0x38e   :  { %v2322_v48 = vmul.f32 %v3476_v42, %v2162_v40  ;;  %v2324_v49 = vmul.f32 %v3476_v42, %v2164_v43  ;;  %v2166_v50 = vmax.f32 %v1984_v44, 0.0  ;;  %v2168_v20 = vmax.f32 %v2097_v16, 0.0 }
 0x38f   :  { %v2360_v54 = vadd.f32 %v2359_v13, %v2321_v45  ;;  %v2402_v55 = vadd.f32 %v2401_v14, %v2323_v26  ;;  %v2325_v56 = vmul.f32 %v3496_v30, %v2165_v46  ;;  %v2327_v52 = vmul.f32 %v3496_v30, %v2167_v47 }
 0x390   :  { %v2381_v57 = vadd.f32 %v2380_v32, %v2322_v48  ;;  %v2423_v58 = vadd.f32 %v2422_v21, %v2324_v49  ;;  %v2326_v59 = vmul.f32 %v3496_v30, %v2166_v50  ;;  %v2328_v60 = vmul.f32 %v3496_v30, %v2168_v20  ;;  %v1987_v61 = vpop.f32.mrb[84].mxu0  ;;  %v2100_v22 = vpop.f32.mrb[84].mxu1 }
 0x391   :  { %v2361_v42 = vadd.f32 %v2360_v54, %v2325_v56  ;;  %v2403_v62 = vadd.f32 %v2402_v55, %v2327_v52  ;;  %v1988_v63 = vadd.f32 %v1987_v61, %v3474_v41  ;;  %v2101_v0 = vadd.f32 %v2100_v22, %v3474_v41  ;;  %v1989_v2 = vpop.f32.mrb[85].mxu0  ;;  %v2102_v1 = vpop.f32.mrb[85].mxu1 }
 0x392   :  { %v2382_v3 = vadd.f32 %v2381_v57, %v2326_v59  ;;  %v2424_v6 = vadd.f32 %v2423_v58, %v2328_v60  ;;  %v1990_v7 = vadd.f32 %v1989_v2, %v3474_v41  ;;  %v2103_v24 = vadd.f32 %v2102_v1, %v3474_v41  ;;  %v1991_v8 = vpop.f32.mrb[86].mxu0  ;;  %v2104_v9 = vpop.f32.mrb[86].mxu1 }
 0x393   :  { %v2169_v10 = vmax.f32 %v1988_v63, 0.0  ;;  %v2171_v30 = vmax.f32 %v2101_v0, 0.0  ;;  %v1992_v11 = vadd.f32 %v1991_v8, %v3494_v29  ;;  %v2105_v19 = vadd.f32 %v2104_v9, %v3494_v29  ;;  %v1993_v12 = vpop.f32.mrb[87].mxu0  ;;  %v2106_v27 = vpop.f32.mrb[87].mxu1 }
 0x394   :  { %v2170_v13 = vmax.f32 %v1990_v7, 0.0  ;;  %v2172_v14 = vmax.f32 %v2103_v24, 0.0  ;;  %v1994_v17 = vadd.f32 %v1993_v12, %v3494_v29  ;;  %v2107_v18 = vadd.f32 %v2106_v27, %v3494_v29  ;;  %v1853_v1 = vpop.permute.xlu0 %1852 }
 0x395   :  { %v2329_v28 = vmul.f32 %v3516_v5, %v2169_v10  ;;  %v2331_v41 = vmul.f32 %v3516_v5, %v2171_v30  ;;  %v2173_v31 = vmax.f32 %v1992_v11, 0.0  ;;  %v2175_v32 = vmax.f32 %v2105_v19, 0.0 }
 0x396   :  { %v2330_v21 = vmul.f32 %v3516_v5, %v2170_v13  ;;  %v2332_v33 = vmul.f32 %v3516_v5, %v2172_v14  ;;  %v2174_v34 = vmax.f32 %v1994_v17, 0.0  ;;  %v2176_v15 = vmax.f32 %v2107_v18, 0.0 }
 0x397   :  { %v2362_v53 = vadd.f32 %v2361_v42, %v2329_v28  ;;  %v2404_v37 = vadd.f32 %v2403_v62, %v2331_v41  ;;  %v2333_v23 = vmul.f32 %v2267_v51, %v2173_v31  ;;  %v2335_v38 = vmul.f32 %v2267_v51, %v2175_v32 }
 0x398   :  { %v2383_v29 = vadd.f32 %v2382_v3, %v2330_v21  ;;  %v2425_v39 = vadd.f32 %v2424_v6, %v2332_v33  ;;  %v2334_v40 = vmul.f32 %v2267_v51, %v2174_v34  ;;  %v2336_v43 = vmul.f32 %v2267_v51, %v2176_v15  ;;  %v1997_v44 = vpop.f32.mrb[88].mxu0  ;;  %v2110_v16 = vpop.f32.mrb[88].mxu1 }
 0x399   :  { %v2363_v45 = vadd.f32 %v2362_v53, %v2333_v23  ;;  %v2405_v26 = vadd.f32 %v2404_v37, %v2335_v38  ;;  %v1998_v46 = vadd.f32 %v1997_v44, %v3514_v4  ;;  %v2111_v5 = vadd.f32 %v2110_v16, %v3514_v4  ;;  %v1999_v47 = vpop.f32.mrb[89].mxu0  ;;  %v2112_v48 = vpop.f32.mrb[89].mxu1 }
 0x39a   :  { %v2384_v49 = vadd.f32 %v2383_v29, %v2334_v40  ;;  %v2426_v50 = vadd.f32 %v2425_v39, %v2336_v43  ;;  %v2000_v20 = vadd.f32 %v1999_v47, %v3514_v4  ;;  %v2113_v54 = vadd.f32 %v2112_v48, %v3514_v4  ;;  %v2001_v55 = vpop.f32.mrb[90].mxu0  ;;  %v2114_v56 = vpop.f32.mrb[90].mxu1 }
 0x39b   :  { %v2177_v52 = vmax.f32 %v1998_v46, 0.0  ;;  %v2179_v51 = vmax.f32 %v2111_v5, 0.0  ;;  %v2002_v57 = vadd.f32 %v2001_v55, %v3534_v25  ;;  %v2115_v58 = vadd.f32 %v2114_v56, %v3534_v25  ;;  %v2003_v59 = vpop.f32.mrb[91].mxu0  ;;  %v2116_v60 = vpop.f32.mrb[91].mxu1 }
 0x39c   :  { %v2178_v61 = vmax.f32 %v2000_v20, 0.0  ;;  %v2180_v22 = vmax.f32 %v2113_v54, 0.0  ;;  %v2004_v42 = vadd.f32 %v2003_v59, %v3534_v25  ;;  %v2117_v62 = vadd.f32 %v2116_v60, %v3534_v25  ;;  %v2277_v3 = vpop.permute.xlu1 %2276  ;;  %v2282_v43 = vpop.permute.xlu0 %2281 }
 0x39d   :  { %v2337_v63 = vmul.f32 %v2272_v36, %v2177_v52  ;;  %v2339_v0 = vmul.f32 %v2272_v36, %v2179_v51  ;;  %v2181_v2 = vmax.f32 %v2002_v57, 0.0  ;;  %v2183_v4 = vmax.f32 %v2115_v58, 0.0 }
 0x39e   :  { %v2338_v6 = vmul.f32 %v2272_v36, %v2178_v61  ;;  %v2340_v7 = vmul.f32 %v2272_v36, %v2180_v22  ;;  %v2182_v24 = vmax.f32 %v2004_v42, 0.0  ;;  %v2184_v8 = vmax.f32 %v2117_v62, 0.0 }
 0x39f   :  { %v2364_v9 = vadd.f32 %v2363_v45, %v2337_v63  ;;  %v2406_v10 = vadd.f32 %v2405_v26, %v2339_v0  ;;  %v2341_v30 = vmul.f32 %v2277_v3, %v2181_v2  ;;  %v2343_v11 = vmul.f32 %v2277_v3, %v2183_v4 }
 0x3a0   :  { %v2385_v19 = vadd.f32 %v2384_v49, %v2338_v6  ;;  %v2427_v12 = vadd.f32 %v2426_v50, %v2340_v7  ;;  %v2342_v27 = vmul.f32 %v2277_v3, %v2182_v24  ;;  %v2344_v13 = vmul.f32 %v2277_v3, %v2184_v8  ;;  %v2007_v14 = vpop.f32.mrb[92].mxu0  ;;  %v2120_v25 = vpop.f32.mrb[92].mxu1 }
 0x3a1   :  { %v2365_v17 = vadd.f32 %v2364_v9, %v2341_v30  ;;  %v2407_v18 = vadd.f32 %v2406_v10, %v2343_v11  ;;  %v2008_v28 = vadd.f32 %v2007_v14, %v3552_v35  ;;  %v2121_v41 = vadd.f32 %v2120_v25, %v3552_v35  ;;  %v2009_v31 = vpop.f32.mrb[93].mxu0  ;;  %v2122_v32 = vpop.f32.mrb[93].mxu1 }
 0x3a2   :  { %v2386_v21 = vadd.f32 %v2385_v19, %v2342_v27  ;;  %v2428_v33 = vadd.f32 %v2427_v12, %v2344_v13  ;;  %v2010_v34 = vadd.f32 %v2009_v31, %v3552_v35  ;;  %v2123_v15 = vadd.f32 %v2122_v32, %v3552_v35  ;;  %v2011_v36 = vpop.f32.mrb[94].mxu0  ;;  %v2124_v53 = vpop.f32.mrb[94].mxu1 }
 0x3a3   :  { %v2185_v37 = vmax.f32 %v2008_v28, 0.0  ;;  %v2187_v23 = vmax.f32 %v2121_v41, 0.0  ;;  %v2012_v38 = vadd.f32 %v2011_v36, %v1853_v1  ;;  %v2125_v29 = vadd.f32 %v2124_v53, %v1853_v1  ;;  %v2013_v39 = vpop.f32.mrb[95].mxu0  ;;  %v2126_v40 = vpop.f32.mrb[95].mxu1 }
 0x3a4   :  { %v2186_v44 = vmax.f32 %v2010_v34, 0.0  ;;  %v2188_v16 = vmax.f32 %v2123_v15, 0.0  ;;  %v2014_v45 = vadd.f32 %v2013_v39, %v1853_v1  ;;  %v2127_v26 = vadd.f32 %v2126_v40, %v1853_v1  ;;  %v2287_v49 = vpop.permute.xlu1 %2286  ;;  %v2441_v13 = vpop.permute.xlu0 %2440 }
 0x3a5   :  { %v2345_v46 = vmul.f32 %v2282_v43, %v2185_v37  ;;  %v2347_v5 = vmul.f32 %v2282_v43, %v2187_v23  ;;  %v2189_v47 = vmax.f32 %v2012_v38, 0.0  ;;  %v2191_v48 = vmax.f32 %v2125_v29, 0.0 }
 0x3a6   :  { %v2346_v50 = vmul.f32 %v2282_v43, %v2186_v44  ;;  %v2348_v35 = vmul.f32 %v2282_v43, %v2188_v16  ;;  %v2190_v20 = vmax.f32 %v2014_v45, 0.0  ;;  %v2192_v54 = vmax.f32 %v2127_v26, 0.0 }
 0x3a7   :  { %v2366_v55 = vadd.f32 %v2365_v17, %v2345_v46  ;;  %v2408_v56 = vadd.f32 %v2407_v18, %v2347_v5  ;;  %v2349_v52 = vmul.f32 %v2287_v49, %v2189_v47  ;;  %v2351_v51 = vmul.f32 %v2287_v49, %v2191_v48 }
 0x3a8   :  { %v2387_v57 = vadd.f32 %v2386_v21, %v2346_v50  ;;  %v2429_v58 = vadd.f32 %v2428_v33, %v2348_v35  ;;  %v2350_v59 = vmul.f32 %v2287_v49, %v2190_v20  ;;  %v2352_v60 = vmul.f32 %v2287_v49, %v2192_v54 }
 0x3a9   :  { %v2443_v61 = vlaneseq  ;;  %v2367_v22 = vadd.f32 %v2366_v55, %v2349_v52  ;;  %v2409_v42 = vadd.f32 %v2408_v56, %v2351_v51  ;;  %v2830_v35 = vmov 1966171168  }
 0x3aa   :  { %v2388_v62 = vadd.f32 %v2387_v57, %v2350_v59  ;;  %v2430_v63 = vadd.f32 %v2429_v58, %v2352_v60  ;;  %v2490_v20 = vunpack.c.l.s4 %v2830_v35 }
 0x3ab   :  { %v2368_v0 = vrot.slane %v2367_v22, 4  ;;  %v2410_v2 = vrot.slane %v2409_v42, 4  ;;  %v3567_v3 = vshrl.u32 %v2443_v61, 7  ;;  %vm2514_vm0 = vcmp.lt.s32.totalorder %v2443_v61, 512 }
 0x3ac   :  { %v2389_v4 = vrot.slane %v2388_v62, 4  ;;  %v2431_v1 = vrot.slane %v2430_v63, 4  ;;  %v2491_v56 = vunpack.c.0.s8 %v2490_v20 }
 0x3ad   :  { %v2369_v6 = vadd.f32 %v2368_v0, %v2367_v22  ;;  %v2411_v7 = vadd.f32 %v2410_v2, %v2409_v42  ;;  %v2445_v19 = vsub.s32 0, %v3567_v3 }
 0x3ae   :  { %v2390_v24 = vadd.f32 %v2389_v4, %v2388_v62  ;;  %v2432_v8 = vadd.f32 %v2431_v1, %v2430_v63  ;;  %v2494_v62 = vsub.s32 %v2491_v56, %v3567_v3 }
 0x3af   :  { %v2370_v9 = vrot.slane %v2369_v6, 2  ;;  %v2412_v10 = vrot.slane %v2411_v7, 2  ;;  %v2446_v31 = vrot.slane %v2441_v13, %v2445_v19 }
 0x3b0   :  { %v2391_v30 = vrot.slane %v2390_v24, 2  ;;  %v2433_v11 = vrot.slane %v2432_v8, 2 }
 0x3b1   :  { %v2371_v12 = vadd.f32 %v2370_v9, %v2369_v6  ;;  %v2413_v27 = vadd.f32 %v2412_v10, %v2411_v7 }
 0x3b2   :  { %v2392_v14 = vadd.f32 %v2391_v30, %v2390_v24  ;;  %v2434_v25 = vadd.f32 %v2433_v11, %v2432_v8 }
 0x3b3   :  { %v2372_v17 = vrot.slane %v2371_v12, 1  ;;  %v2414_v18 = vrot.slane %v2413_v27, 1 }
 0x3b4   :  { %v2393_v28 = vrot.slane %v2392_v14, 1  ;;  %v2435_v41 = vrot.slane %v2434_v25, 1 }
 0x3b5   :  { %v2373_v32 = vadd.f32 %v2372_v17, %v2371_v12  ;;  %v2415_v21 = vadd.f32 %v2414_v18, %v2413_v27 }
 0x3b6   :  { %v2394_v33 = vadd.f32 %v2393_v28, %v2392_v14  ;;  %v2436_v34 = vadd.f32 %v2435_v41, %v2434_v25 }
 0x3b7   :  { %v2447_v15 = vadd.f32 %v2446_v31, %v2373_v32  ;;  %v2449_v36 = vadd.f32 %v2446_v31, %v2415_v21 }
 0x3b8   :  { %v2448_v53 = vadd.f32 %v2446_v31, %v2394_v33  ;;  %v2450_v37 = vadd.f32 %v2446_v31, %v2436_v34 }
 0x3b9   :  { %v2451_v23 = vsub.f32 0.0, %v2447_v15  ;;  %v2453_v38 = vsub.f32 0.0, %v2449_v36 }
 0x3ba   :  { %v2452_v29 = vsub.f32 0.0, %v2448_v53  ;;  %v2454_v39 = vsub.f32 0.0, %v2450_v37 }
 0x3bb   :  { %v2455_v40 = vmul.f32 1.442695, %v2451_v23  ;;  %v2459_v43 = vmul.f32 1.442695, %v2453_v38 }
 0x3bc   :  { %v2457_v44 = vmul.f32 1.442695, %v2452_v29  ;;  %v2461_v16 = vmul.f32 1.442695, %v2454_v39 }
 0x3bd   :  { %2813 = vpow2.f32 %v2455_v40 }
 0x3be   :  { %2815 = vpow2.f32 %v2459_v43 }
 0x3bf   :  { %2817 = vpow2.f32 %v2457_v44 }
 0x3c0   :  { %2819 = vpow2.f32 %v2461_v16 }
 0x3c7   :  { %v2814_v45 = vpop.eup %2813 }
 0x3c8   :  { %v2816_v26 = vpop.eup %2815  ;;  %v2463_v46 = vadd.f32 1.0, %v2814_v45 }
 0x3c9   :  { %v2818_v5 = vpop.eup %2817  ;;  %v2465_v47 = vadd.f32 1.0, %v2816_v26 }
 0x3ca   :  { %v2820_v48 = vpop.eup %2819  ;;  %2821 = vrcp.f32 %v2463_v46  ;;  %v2464_v49 = vadd.f32 1.0, %v2818_v5 }
 0x3cb   :  { %2823 = vrcp.f32 %v2465_v47  ;;  %v2466_v50 = vadd.f32 1.0, %v2820_v48 }
 0x3cc   :  { %2825 = vrcp.f32 %v2464_v49 }
 0x3cd   :  { %2827 = vrcp.f32 %v2466_v50 }
 0x3d4   :  { %v2822_v54 = vpop.eup %2821 }
 0x3d5   :  { %v2824_v55 = vpop.eup %2823  ;;  %v2475_v52 = vmul.f32 4.0, %v2822_v54 }
 0x3d6   :  { %v2826_v51 = vpop.eup %2825  ;;  %v2477_v57 = vmul.f32 4.0, %v2824_v55 }
 0x3d7   :  { %v2828_v58 = vpop.eup %2827  ;;  %v2479_v59 = vadd.f32 1.0, %v2475_v52  ;;  %v2476_v60 = vmul.f32 4.0, %v2826_v51 }
 0x3d8   :  { %v2481_v22 = vadd.f32 1.0, %v2477_v57  ;;  %v2478_v42 = vmul.f32 4.0, %v2828_v58 }
 0x3d9   :  { %v2480_v63 = vadd.f32 1.0, %v2476_v60 }
 0x3da   :  { %v2482_v0 = vadd.f32 1.0, %v2478_v42 }
 0x3db   :  { %v2487_v2 = vcombine.low %v2479_v59, %v2480_v63 }
 0x3dc   :  { %v2488_v4 = vcombine.low %v2481_v22, %v2482_v0 }
 0x3dd   :  { %v2495_v1 = vrot.slane %v2487_v2, %v2494_v62 }
 0x3de   :  { %v2502_v6 = vrot.slane %v2488_v4, %v2494_v62 }
 0x3e0   :  { %v2503_v7 = vcombine.low %v2495_v1, %v2502_v6 }
 0x3e2   :  { %v2510_v24 = vrot.slane %v2503_v7, %v2494_v62 }
 0x3e4   :  { %2516 = vst.msk [vmem:[%s3586_s11] sm:$0xf] %vm2514_vm0, %v2510_v24 }

</bundles_post_ra>
